<compile_context>
chip_gen: v6e
topology: v6e:2x2x1
jax: 0.10.0
libtpu: 0.0.40
codegen_flags: <defaults>
</compile_context>

<pallas_src>
import functools

import jax
import jax.numpy as jnp
from jax.experimental import pallas as pl
from jax.experimental.pallas import tpu as pltpu


# ----------------------------------------------------------------------------
# generation-aware VMEM budget + blocking selection
# ----------------------------------------------------------------------------
def _vmem_limit_bytes():
    """Scoped VMEM limit derived from the physical per-core VMEM (v7x: 64 MiB,
    v5e/v6e: 128 MiB)."""
    phys = 64 * 1024 * 1024  # conservative default (v7x per-TC VMEM)
    try:
        info = pltpu.get_tpu_info()
        phys = int(getattr(info, "vmem_capacity_bytes", phys))
    except Exception:
        pass
    return max(32 * 1024 * 1024, min(int(phys * 3 // 4), 100 * 1024 * 1024))


def _vmem_estimate(bb, c_in, c_out, n, tile_n, pool, kn):
    """Rough per-grid-step VMEM footprint, including in-kernel temporaries."""
    mb_in, mb_out = bb * c_in, bb * c_out
    tp = tile_n // pool
    est = 0
    est += 2 * mb_in * n * 4                 # x block (double-buffered, f32)
    est += 2 * mb_out * (n // pool) * 4      # output block (double-buffered)
    est += 2 * 2 * kn * n * 4                # idx + neighbour-weight blocks
    est += mb_out * n * 4                    # x1 scratch (f32)
    est += (mb_in + mb_out) * n * 2          # bf16 copies of the two slabs
    est += n * tile_n * 4                    # gather source iota (int32)
    est += 2 * n * tile_n * 2                # live one-hot panels (bf16)
    est += pool * tile_n * tp * 4            # pooling compaction constants
    est += 4 * (mb_in + mb_out) * tile_n * 4 # per-tile working set
    est += 2 * 1024 * 1024                   # slack
    return est


def _select_blocking(batch, c_in, c_out, n, pool, kn, vmem_limit):
    """Pick (batch block, node tile) under a VMEM byte budget.

    Constraints: node tile is the whole slab (only for N <= 1024) or a
    128*pool-aligned divisor of N; batch blocks keep the stacked sublane axis
    8-aligned (or cover the full batch)."""
    budget = vmem_limit // 2
    cand_t = []
    if n <= 1024:
        cand_t.append(n)
    for t in (4096, 2048, 1024, 512):
        if t < n and n % t == 0 and t % (128 * pool) == 0:
            cand_t.append(t)
    if not cand_t:
        # TODO(synk): huge / ill-factored N needs the halo or DMA-gather path.
        cand_t = [n]
    cand_b = sorted({d for d in range(1, batch + 1) if batch % d == 0},
                    reverse=True)
    for tile_n in cand_t:
        for bb in cand_b:
            if bb != batch and ((bb * c_in) % 8 or (bb * c_out) % 8):
                continue                      # keep stacked blocks sublane-aligned
            if bb * max(c_in, c_out) > 512:
                continue                      # don't over-stack the MXU M dim
            if _vmem_estimate(bb, c_in, c_out, n, tile_n, pool, kn) <= budget:
                return bb, tile_n
    return batch, cand_t[-1]                  # spec-legal fallback


# ----------------------------------------------------------------------------
# fused kernel: SDPAConv x2 + skip 'sum' + ReLU + node max-pool
# ----------------------------------------------------------------------------
def _slb_fused_kernel(x_ref, idx_ref, w_ref, bd0_ref, bd1_ref, b0_ref, b1_ref,
                      psel_ref, o_ref, x1_ref, *, n_nodes, tile_n, kn, pool,
                      use_roll):
    num_tiles = n_nodes // tile_n
    tp = tile_n // pool
    f32, bf16 = jnp.float32, jnp.bfloat16

    # Gather source-node iota: shared by both convs, every tile and every k.
    src = jax.lax.broadcasted_iota(jnp.int32, (n_nodes, tile_n), 0)

    bd0 = bd0_ref[...].astype(bf16)     # (K, Mout, Min)  block-diag over batch
    bd1 = bd1_ref[...].astype(bf16)     # (K, Mout, Mout)
    psel = psel_ref[...].astype(bf16)   # (P, tile_n, tp) 0/1 pool compaction

    def sdpa_conv(slab_bf, bd, bias, t):
        """One SDPAConv output tile, gathering from the full VMEM-resident slab."""
        n0 = t * tile_n
        center = slab_bf if num_tiles == 1 else slab_bf[:, n0:n0 + tile_n]
        idx_t = idx_ref[:, n0:n0 + tile_n]                 # (kn, tile_n) int32
        w_t = w_ref[:, n0:n0 + tile_n]                     # (kn, tile_n) f32
        acc = jnp.dot(bd[0], center, preferred_element_type=f32)
        for k in range(kn):
            # Exact 0/1 one-hot (single nonzero per column) -> the MXU
            # contraction below is an exact lane gather of bf16(slab).
            # TODO(synk): out-of-range indices silently gather 0 (valid_index
            # masking path not exercised in this configuration).
            onehot = jnp.where(src == idx_t[k:k + 1, :], 1.0, 0.0).astype(bf16)
            g = jnp.dot(slab_bf, onehot, preferred_element_type=f32)  # (M, tile_n)
            g = g * w_t[k:k + 1, :]                        # neighbour weight, f32
            acc = acc + jnp.dot(bd[k + 1], g.astype(bf16),
                                preferred_element_type=f32)
        return acc + bias                                  # (Mout, tile_n) f32

    # ---- conv #0 : stacked (Bblk*Cin, N) -> x1 (Bblk*Cout, N), staged in VMEM
    x_bf = x_ref[...].astype(bf16)
    b0 = b0_ref[...]
    # TODO(synk): for very large num_tiles this static unroll should become a
    # grid axis / fori_loop with a halo- or DMA-gather source path.
    for t in range(num_tiles):
        x1_ref[:, t * tile_n:(t + 1) * tile_n] = sdpa_conv(x_bf, bd0, b0, t)

    # ---- conv #1 + skip 'sum' + ReLU + node max-pool, fused epilogue
    x1_bf = x1_ref[...].astype(bf16)
    b1 = b1_ref[...]
    for t in range(num_tiles):
        n0 = t * tile_n
        x2 = sdpa_conv(x1_bf, bd1, b1, t)                  # (Mout, tile_n)
        y = jnp.maximum(x2 + x1_ref[:, n0:n0 + tile_n], 0.0)  # skip 'sum' + ReLU
        if use_roll:
            # Group max via XLU lane rotations, then ONE 0/1 compaction matmul.
            m = y
            for s in range(1, pool):
                m = jnp.maximum(m, pltpu.roll(y, tile_n - s, 1))
            pooled = jnp.dot(m.astype(bf16), psel[0], preferred_element_type=f32)
        else:
            # Lane dim not 128-aligned (small demo slabs): use the `pool`
            # precomputed 0/1 selection panels (hoisted, no in-kernel builds).
            yb = y.astype(bf16)
            pooled = jnp.dot(yb, psel[0], preferred_element_type=f32)
            for r in range(1, pool):
                pooled = jnp.maximum(
                    pooled, jnp.dot(yb, psel[r], preferred_element_type=f32))
        o_ref[:, t * tp:(t + 1) * tp] = pooled


def _slb_fused_call(x_flat, idxT, wT, bd0, bd1, b0s, b1s, psel, *, batch, bblk,
                    c_in, c_out, n_nodes, tile_n, pool, kn, use_roll,
                    vmem_limit):
    k_tot = kn + 1
    m_in, m_out = bblk * c_in, bblk * c_out
    n_pool = n_nodes // pool
    tp = tile_n // pool
    planes = psel.shape[0]

    kernel = functools.partial(_slb_fused_kernel, n_nodes=n_nodes, tile_n=tile_n,
                               kn=kn, pool=pool, use_roll=use_roll)
    flops = 2 * kn * n_nodes * n_nodes * batch * (c_in + c_out)
    bytes_acc = 4 * (batch * c_in * n_nodes + batch * c_out * n_pool
                     + 2 * kn * n_nodes)

    return pl.pallas_call(
        kernel,
        out_shape=jax.ShapeDtypeStruct((batch * c_out, n_pool), jnp.float32),
        grid_spec=pltpu.PrefetchScalarGridSpec(
            num_scalar_prefetch=0,
            grid=(batch // bblk,),
            in_specs=[
                pl.BlockSpec((m_in, n_nodes), lambda b: (b, 0)),      # x (stacked)
                pl.BlockSpec((kn, n_nodes), lambda b: (0, 0)),        # neighbour idx
                pl.BlockSpec((kn, n_nodes), lambda b: (0, 0)),        # neighbour w
                pl.BlockSpec((k_tot, m_out, m_in), lambda b: (0, 0, 0)),   # BD W0
                pl.BlockSpec((k_tot, m_out, m_out), lambda b: (0, 0, 0)),  # BD W1
                pl.BlockSpec((m_out, 1), lambda b: (0, 0)),           # bias 0
                pl.BlockSpec((m_out, 1), lambda b: (0, 0)),           # bias 1
                pl.BlockSpec((planes, tile_n, tp), lambda b: (0, 0, 0)),   # pool sel
            ],
            out_specs=pl.BlockSpec((m_out, n_pool), lambda b: (b, 0)),
            scratch_shapes=[pltpu.VMEM((m_out, n_nodes), jnp.float32)],   # x1 stage
        ),
        compiler_params=pltpu.CompilerParams(
            dimension_semantics=("parallel",),
            vmem_limit_bytes=int(vmem_limit),
        ),
        cost_estimate=pl.CostEstimate(flops=int(flops), transcendentals=0,
                                      bytes_accessed=int(bytes_acc)),
    )(x_flat, idxT, wT, bd0, bd1, b0s, b1s, psel)


# ----------------------------------------------------------------------------
# SLB_Downsample forward (SDPAConv x2 -> skip 'sum' -> ReLU -> max_pool)
# ----------------------------------------------------------------------------
def slb_downsample_forward(params, x, index, weight, pool_size):
    """x: (B, N, Cin) channels-last (node_dim=1, as in the torch module)."""
    B, N, Cin = x.shape
    K, _, Cout = params["W0"].shape
    kn = K - 1
    assert N % pool_size == 0

    vmem_limit = _vmem_limit_bytes()
    Bblk, tile_n = _select_blocking(B, Cin, Cout, N, pool_size, kn, vmem_limit)
    use_roll = (tile_n % 128 == 0)
    tp = tile_n // pool_size

    # Channel-major + batch-stacked layout: nodes on lanes, (batch, channel) rows.
    x_flat = jnp.transpose(x, (0, 2, 1)).reshape(B * Cin, N).astype(jnp.float32)
    idxT = jnp.transpose(index, (1, 0)).astype(jnp.int32)        # (kn, N)
    wT = jnp.transpose(weight, (1, 0)).astype(jnp.float32)       # (kn, N)

    # Block-diagonal (over the batch block) transposed conv weights + stacked bias.
    W0t = jnp.transpose(params["W0"], (0, 2, 1)).astype(jnp.float32)  # (K,Cout,Cin)
    W1t = jnp.transpose(params["W1"], (0, 2, 1)).astype(jnp.float32)  # (K,Cout,Cout)
    eye_b = jnp.eye(Bblk, dtype=jnp.float32)
    bd0 = jnp.stack([jnp.kron(eye_b, W0t[k]) for k in range(K)])
    bd1 = jnp.stack([jnp.kron(eye_b, W1t[k]) for k in range(K)])
    b0s = jnp.tile(params["b0"].astype(jnp.float32), Bblk).reshape(Bblk * Cout, 1)
    b1s = jnp.tile(params["b1"].astype(jnp.float32), Bblk).reshape(Bblk * Cout, 1)

    # Constant 0/1 pooling compaction panels (hoisted out of the kernel).
    lane = jnp.arange(tile_n, dtype=jnp.int32)[:, None]
    pcol = jnp.arange(tp, dtype=jnp.int32)[None, :]
    n_planes = 1 if use_roll else pool_size
    psel = jnp.stack([(lane == pool_size * pcol + r).astype(jnp.float32)
                      for r in range(n_planes)])                 # (P, tile_n, tp)

    # TODO(synk): `mapping` index_select and `valid_index` masking paths are not
    # exercised (both None in this configuration).
    o_flat = _slb_fused_call(x_flat, idxT, wT, bd0, bd1, b0s, b1s, psel,
                             batch=B, bblk=Bblk, c_in=Cin, c_out=Cout,
                             n_nodes=N, tile_n=tile_n, pool=pool_size, kn=kn,
                             use_roll=use_roll, vmem_limit=vmem_limit)
    return jnp.transpose(o_flat.reshape(B, Cout, N // pool_size), (0, 2, 1))


def init_params(key, in_channels, out_channels, kernel_size):
    k0, k1, k2, k3 = jax.random.split(key, 4)
    scale = 0.1
    return {
        "W0": scale * jax.random.normal(
            k0, (kernel_size, in_channels, out_channels), jnp.float32),
        "b0": scale * jax.random.normal(k1, (out_channels,), jnp.float32),
        "W1": scale * jax.random.normal(
            k2, (kernel_size, out_channels, out_channels), jnp.float32),
        "b1": scale * jax.random.normal(k3, (out_channels,), jnp.float32),
    }


if __name__ == "__main__":
    # Small healpix-like problem: nside=4 -> 192 nodes, 8 first-hop neighbors.
    B, N, C_IN, C_OUT = 2, 192, 4, 8
    N_NEIGHBORS = 8
    KERNEL_SIZE = N_NEIGHBORS + 1          # = 9, as in SLB_Downsample.__init__
    POOL_SIZE_SQRT = 2
    POOL_SIZE = POOL_SIZE_SQRT * POOL_SIZE_SQRT

    key = jax.random.PRNGKey(0)
    kx, ki, kw, kp = jax.random.split(key, 4)

    x = jax.random.normal(kx, (B, N, C_IN), jnp.float32)
    index = jax.random.randint(ki, (N, N_NEIGHBORS), 0, N, jnp.int32)
    weight = jax.random.uniform(kw, (N, N_NEIGHBORS), jnp.float32)
    params = init_params(kp, C_IN, C_OUT, KERNEL_SIZE)

    fwd = jax.jit(lambda p, a, b, c: slb_downsample_forward(p, a, b, c, POOL_SIZE))
    out = jax.block_until_ready(fwd(params, x, index, weight))

    assert out.shape == (B, N // POOL_SIZE, C_OUT), out.shape
    assert out.dtype == jnp.float32
    assert bool(jnp.all(jnp.isfinite(out)))

    # Pure-JAX reference for the same forward pass (exact f32 matmuls).
    hi = jax.lax.Precision.HIGHEST

    def _conv_ref(xv, Wk, bk):
        y = jnp.einsum("bnc,cd->bnd", xv, Wk[0], precision=hi) + bk
        for k in range(N_NEIGHBORS):
            y = y + weight[:, k][None, :, None] * jnp.einsum(
                "bnc,cd->bnd", xv[:, index[:, k], :], Wk[k + 1], precision=hi)
        return y

    x1 = _conv_ref(x, params["W0"], params["b0"])
    x2 = _conv_ref(x1, params["W1"], params["b1"])
    y_ref = jax.nn.relu(x1 + x2)
    ref = jnp.max(y_ref.reshape(B, N // POOL_SIZE, POOL_SIZE, C_OUT), axis=2)
    max_err = float(jnp.max(jnp.abs(out - ref)))
    assert jnp.allclose(out, ref, rtol=5e-2, atol=5e-2), max_err

    print("KERNEL_OK")
</pallas_src>

<mosaic_0001>
module attributes {stable_mosaic.version = 11 : i64} {
  func.func @_slb_fused_kernel(%arg0: i32, %arg1: memref<8x192xf32, #tpu.memory_space<vmem>>, %arg2: memref<8x192xi32, #tpu.memory_space<vmem>>, %arg3: memref<8x192xf32, #tpu.memory_space<vmem>>, %arg4: memref<9x16x8xf32, #tpu.memory_space<vmem>>, %arg5: memref<9x16x16xf32, #tpu.memory_space<vmem>>, %arg6: memref<16x1xf32, #tpu.memory_space<vmem>>, %arg7: memref<16x1xf32, #tpu.memory_space<vmem>>, %arg8: memref<4x192x48xf32, #tpu.memory_space<vmem>>, %arg9: memref<16x48xf32, #tpu.memory_space<vmem>>, %arg10: memref<16x192xf32, #tpu.memory_space<vmem>>) attributes {dimension_semantics = [#tpu.dimension_semantics<parallel>], iteration_bounds = array<i64: 1>, scalar_prefetch = 0 : i64, scratch_operands = 1 : i64, tpu.core_type = #tpu.core_type<tc>, window_params = [{transform_indices = @transform_0, window_bounds = array<i64: 8, 192>}, {pipeline_mode = #tpu.pipeline_mode<synchronous>, transform_indices = @transform_1, window_bounds = array<i64: 8, 192>}, {pipeline_mode = #tpu.pipeline_mode<synchronous>, transform_indices = @transform_2, window_bounds = array<i64: 8, 192>}, {pipeline_mode = #tpu.pipeline_mode<synchronous>, transform_indices = @transform_3, window_bounds = array<i64: 9, 16, 8>}, {pipeline_mode = #tpu.pipeline_mode<synchronous>, transform_indices = @transform_4, window_bounds = array<i64: 9, 16, 16>}, {pipeline_mode = #tpu.pipeline_mode<synchronous>, transform_indices = @transform_5, window_bounds = array<i64: 16, 1>}, {pipeline_mode = #tpu.pipeline_mode<synchronous>, transform_indices = @transform_6, window_bounds = array<i64: 16, 1>}, {pipeline_mode = #tpu.pipeline_mode<synchronous>, transform_indices = @transform_7, window_bounds = array<i64: 4, 192, 48>}, {transform_indices = @transform_8, window_bounds = array<i64: 16, 48>}]} {
    %0 = tpu.iota {dimensions = array<i32: 0>} : vector<192x192xi32>
    %c0 = arith.constant 0 : index
    %c0_0 = arith.constant 0 : index
    %c0_1 = arith.constant 0 : index
    %1 = vector.load %arg4[%c0, %c0_0, %c0_1] : memref<9x16x8xf32, #tpu.memory_space<vmem>>, vector<9x16x8xf32>
    %2 = arith.truncf %1 : vector<9x16x8xf32> to vector<9x16x8xbf16>
    %c0_2 = arith.constant 0 : index
    %c0_3 = arith.constant 0 : index
    %c0_4 = arith.constant 0 : index
    %3 = vector.load %arg5[%c0_2, %c0_3, %c0_4] : memref<9x16x16xf32, #tpu.memory_space<vmem>>, vector<9x16x16xf32>
    %4 = arith.truncf %3 : vector<9x16x16xf32> to vector<9x16x16xbf16>
    %c0_5 = arith.constant 0 : index
    %c0_6 = arith.constant 0 : index
    %c0_7 = arith.constant 0 : index
    %5 = vector.load %arg8[%c0_5, %c0_6, %c0_7] : memref<4x192x48xf32, #tpu.memory_space<vmem>>, vector<4x192x48xf32>
    %6 = arith.truncf %5 : vector<4x192x48xf32> to vector<4x192x48xbf16>
    %c0_8 = arith.constant 0 : index
    %c0_9 = arith.constant 0 : index
    %7 = vector.load %arg1[%c0_8, %c0_9] : memref<8x192xf32, #tpu.memory_space<vmem>>, vector<8x192xf32>
    %8 = arith.truncf %7 : vector<8x192xf32> to vector<8x192xbf16>
    %c0_10 = arith.constant 0 : index
    %c0_11 = arith.constant 0 : index
    %9 = vector.load %arg6[%c0_10, %c0_11] : memref<16x1xf32, #tpu.memory_space<vmem>>, vector<16x1xf32>
    %c0_12 = arith.constant 0 : index
    %c0_13 = arith.constant 0 : index
    %10 = vector.load %arg2[%c0_12, %c0_13] : memref<8x192xi32, #tpu.memory_space<vmem>>, vector<8x192xi32>
    %c0_14 = arith.constant 0 : index
    %c0_15 = arith.constant 0 : index
    %11 = vector.load %arg3[%c0_14, %c0_15] : memref<8x192xf32, #tpu.memory_space<vmem>>, vector<8x192xf32>
    %12 = vector.extract_strided_slice %2 {offsets = [0, 0, 0], sizes = [1, 16, 8], strides = [1, 1, 1]} : vector<9x16x8xbf16> to vector<1x16x8xbf16>
    %13 = vector.shape_cast %12 : vector<1x16x8xbf16> to vector<16x8xbf16>
    %cst = arith.constant dense<0.000000e+00> : vector<16x192xf32>
    %14 = tpu.matmul %13, %8, %cst {dimension_numbers = #tpu.dot_dimension_numbers<[1], [0], [0], [1], [0, 0, 1, 1], [], []>} : vector<16x8xbf16>, vector<8x192xbf16>, vector<16x192xf32> -> vector<16x192xf32>
    %15 = vector.extract_strided_slice %10 {offsets = [0, 0], sizes = [1, 192], strides = [1, 1]} : vector<8x192xi32> to vector<1x192xi32>
    %16 = vector.broadcast %15 : vector<1x192xi32> to vector<192x192xi32>
    %17 = arith.cmpi eq, %0, %16 : vector<192x192xi32>
    %cst_16 = arith.constant 1.000000e+00 : f32
    %cst_17 = arith.constant 0.000000e+00 : f32
    %18 = vector.broadcast %cst_16 : f32 to vector<192x192xf32>
    %19 = vector.broadcast %cst_17 : f32 to vector<192x192xf32>
    %20 = arith.select %17, %18, %19 : vector<192x192xi1>, vector<192x192xf32>
    %21 = arith.truncf %20 : vector<192x192xf32> to vector<192x192xbf16>
    %cst_18 = arith.constant dense<0.000000e+00> : vector<8x192xf32>
    %22 = tpu.matmul %8, %21, %cst_18 {dimension_numbers = #tpu.dot_dimension_numbers<[1], [0], [0], [1], [0, 0, 1, 1], [], []>} : vector<8x192xbf16>, vector<192x192xbf16>, vector<8x192xf32> -> vector<8x192xf32>
    %23 = vector.extract_strided_slice %11 {offsets = [0, 0], sizes = [1, 192], strides = [1, 1]} : vector<8x192xf32> to vector<1x192xf32>
    %24 = vector.broadcast %23 : vector<1x192xf32> to vector<8x192xf32>
    %25 = arith.mulf %22, %24 : vector<8x192xf32>
    %26 = vector.extract_strided_slice %2 {offsets = [1, 0, 0], sizes = [1, 16, 8], strides = [1, 1, 1]} : vector<9x16x8xbf16> to vector<1x16x8xbf16>
    %27 = vector.shape_cast %26 : vector<1x16x8xbf16> to vector<16x8xbf16>
    %28 = arith.truncf %25 : vector<8x192xf32> to vector<8x192xbf16>
    %cst_19 = arith.constant dense<0.000000e+00> : vector<16x192xf32>
    %29 = tpu.matmul %27, %28, %cst_19 {dimension_numbers = #tpu.dot_dimension_numbers<[1], [0], [0], [1], [0, 0, 1, 1], [], []>} : vector<16x8xbf16>, vector<8x192xbf16>, vector<16x192xf32> -> vector<16x192xf32>
    %30 = arith.addf %14, %29 : vector<16x192xf32>
    %31 = vector.extract_strided_slice %10 {offsets = [1, 0], sizes = [1, 192], strides = [1, 1]} : vector<8x192xi32> to vector<1x192xi32>
    %32 = vector.broadcast %31 : vector<1x192xi32> to vector<192x192xi32>
    %33 = arith.cmpi eq, %0, %32 : vector<192x192xi32>
    %cst_20 = arith.constant 1.000000e+00 : f32
    %cst_21 = arith.constant 0.000000e+00 : f32
    %34 = vector.broadcast %cst_20 : f32 to vector<192x192xf32>
    %35 = vector.broadcast %cst_21 : f32 to vector<192x192xf32>
    %36 = arith.select %33, %34, %35 : vector<192x192xi1>, vector<192x192xf32>
    %37 = arith.truncf %36 : vector<192x192xf32> to vector<192x192xbf16>
    %cst_22 = arith.constant dense<0.000000e+00> : vector<8x192xf32>
    %38 = tpu.matmul %8, %37, %cst_22 {dimension_numbers = #tpu.dot_dimension_numbers<[1], [0], [0], [1], [0, 0, 1, 1], [], []>} : vector<8x192xbf16>, vector<192x192xbf16>, vector<8x192xf32> -> vector<8x192xf32>
    %39 = vector.extract_strided_slice %11 {offsets = [1, 0], sizes = [1, 192], strides = [1, 1]} : vector<8x192xf32> to vector<1x192xf32>
    %40 = vector.broadcast %39 : vector<1x192xf32> to vector<8x192xf32>
    %41 = arith.mulf %38, %40 : vector<8x192xf32>
    %42 = vector.extract_strided_slice %2 {offsets = [2, 0, 0], sizes = [1, 16, 8], strides = [1, 1, 1]} : vector<9x16x8xbf16> to vector<1x16x8xbf16>
    %43 = vector.shape_cast %42 : vector<1x16x8xbf16> to vector<16x8xbf16>
    %44 = arith.truncf %41 : vector<8x192xf32> to vector<8x192xbf16>
    %cst_23 = arith.constant dense<0.000000e+00> : vector<16x192xf32>
    %45 = tpu.matmul %43, %44, %cst_23 {dimension_numbers = #tpu.dot_dimension_numbers<[1], [0], [0], [1], [0, 0, 1, 1], [], []>} : vector<16x8xbf16>, vector<8x192xbf16>, vector<16x192xf32> -> vector<16x192xf32>
    %46 = arith.addf %30, %45 : vector<16x192xf32>
    %47 = vector.extract_strided_slice %10 {offsets = [2, 0], sizes = [1, 192], strides = [1, 1]} : vector<8x192xi32> to vector<1x192xi32>
    %48 = vector.broadcast %47 : vector<1x192xi32> to vector<192x192xi32>
    %49 = arith.cmpi eq, %0, %48 : vector<192x192xi32>
    %cst_24 = arith.constant 1.000000e+00 : f32
    %cst_25 = arith.constant 0.000000e+00 : f32
    %50 = vector.broadcast %cst_24 : f32 to vector<192x192xf32>
    %51 = vector.broadcast %cst_25 : f32 to vector<192x192xf32>
    %52 = arith.select %49, %50, %51 : vector<192x192xi1>, vector<192x192xf32>
    %53 = arith.truncf %52 : vector<192x192xf32> to vector<192x192xbf16>
    %cst_26 = arith.constant dense<0.000000e+00> : vector<8x192xf32>
    %54 = tpu.matmul %8, %53, %cst_26 {dimension_numbers = #tpu.dot_dimension_numbers<[1], [0], [0], [1], [0, 0, 1, 1], [], []>} : vector<8x192xbf16>, vector<192x192xbf16>, vector<8x192xf32> -> vector<8x192xf32>
    %55 = vector.extract_strided_slice %11 {offsets = [2, 0], sizes = [1, 192], strides = [1, 1]} : vector<8x192xf32> to vector<1x192xf32>
    %56 = vector.broadcast %55 : vector<1x192xf32> to vector<8x192xf32>
    %57 = arith.mulf %54, %56 : vector<8x192xf32>
    %58 = vector.extract_strided_slice %2 {offsets = [3, 0, 0], sizes = [1, 16, 8], strides = [1, 1, 1]} : vector<9x16x8xbf16> to vector<1x16x8xbf16>
    %59 = vector.shape_cast %58 : vector<1x16x8xbf16> to vector<16x8xbf16>
    %60 = arith.truncf %57 : vector<8x192xf32> to vector<8x192xbf16>
    %cst_27 = arith.constant dense<0.000000e+00> : vector<16x192xf32>
    %61 = tpu.matmul %59, %60, %cst_27 {dimension_numbers = #tpu.dot_dimension_numbers<[1], [0], [0], [1], [0, 0, 1, 1], [], []>} : vector<16x8xbf16>, vector<8x192xbf16>, vector<16x192xf32> -> vector<16x192xf32>
    %62 = arith.addf %46, %61 : vector<16x192xf32>
    %63 = vector.extract_strided_slice %10 {offsets = [3, 0], sizes = [1, 192], strides = [1, 1]} : vector<8x192xi32> to vector<1x192xi32>
    %64 = vector.broadcast %63 : vector<1x192xi32> to vector<192x192xi32>
    %65 = arith.cmpi eq, %0, %64 : vector<192x192xi32>
    %cst_28 = arith.constant 1.000000e+00 : f32
    %cst_29 = arith.constant 0.000000e+00 : f32
    %66 = vector.broadcast %cst_28 : f32 to vector<192x192xf32>
    %67 = vector.broadcast %cst_29 : f32 to vector<192x192xf32>
    %68 = arith.select %65, %66, %67 : vector<192x192xi1>, vector<192x192xf32>
    %69 = arith.truncf %68 : vector<192x192xf32> to vector<192x192xbf16>
    %cst_30 = arith.constant dense<0.000000e+00> : vector<8x192xf32>
    %70 = tpu.matmul %8, %69, %cst_30 {dimension_numbers = #tpu.dot_dimension_numbers<[1], [0], [0], [1], [0, 0, 1, 1], [], []>} : vector<8x192xbf16>, vector<192x192xbf16>, vector<8x192xf32> -> vector<8x192xf32>
    %71 = vector.extract_strided_slice %11 {offsets = [3, 0], sizes = [1, 192], strides = [1, 1]} : vector<8x192xf32> to vector<1x192xf32>
    %72 = vector.broadcast %71 : vector<1x192xf32> to vector<8x192xf32>
    %73 = arith.mulf %70, %72 : vector<8x192xf32>
    %74 = vector.extract_strided_slice %2 {offsets = [4, 0, 0], sizes = [1, 16, 8], strides = [1, 1, 1]} : vector<9x16x8xbf16> to vector<1x16x8xbf16>
    %75 = vector.shape_cast %74 : vector<1x16x8xbf16> to vector<16x8xbf16>
    %76 = arith.truncf %73 : vector<8x192xf32> to vector<8x192xbf16>
    %cst_31 = arith.constant dense<0.000000e+00> : vector<16x192xf32>
    %77 = tpu.matmul %75, %76, %cst_31 {dimension_numbers = #tpu.dot_dimension_numbers<[1], [0], [0], [1], [0, 0, 1, 1], [], []>} : vector<16x8xbf16>, vector<8x192xbf16>, vector<16x192xf32> -> vector<16x192xf32>
    %78 = arith.addf %62, %77 : vector<16x192xf32>
    %79 = vector.extract_strided_slice %10 {offsets = [4, 0], sizes = [1, 192], strides = [1, 1]} : vector<8x192xi32> to vector<1x192xi32>
    %80 = vector.broadcast %79 : vector<1x192xi32> to vector<192x192xi32>
    %81 = arith.cmpi eq, %0, %80 : vector<192x192xi32>
    %cst_32 = arith.constant 1.000000e+00 : f32
    %cst_33 = arith.constant 0.000000e+00 : f32
    %82 = vector.broadcast %cst_32 : f32 to vector<192x192xf32>
    %83 = vector.broadcast %cst_33 : f32 to vector<192x192xf32>
    %84 = arith.select %81, %82, %83 : vector<192x192xi1>, vector<192x192xf32>
    %85 = arith.truncf %84 : vector<192x192xf32> to vector<192x192xbf16>
    %cst_34 = arith.constant dense<0.000000e+00> : vector<8x192xf32>
    %86 = tpu.matmul %8, %85, %cst_34 {dimension_numbers = #tpu.dot_dimension_numbers<[1], [0], [0], [1], [0, 0, 1, 1], [], []>} : vector<8x192xbf16>, vector<192x192xbf16>, vector<8x192xf32> -> vector<8x192xf32>
    %87 = vector.extract_strided_slice %11 {offsets = [4, 0], sizes = [1, 192], strides = [1, 1]} : vector<8x192xf32> to vector<1x192xf32>
    %88 = vector.broadcast %87 : vector<1x192xf32> to vector<8x192xf32>
    %89 = arith.mulf %86, %88 : vector<8x192xf32>
    %90 = vector.extract_strided_slice %2 {offsets = [5, 0, 0], sizes = [1, 16, 8], strides = [1, 1, 1]} : vector<9x16x8xbf16> to vector<1x16x8xbf16>
    %91 = vector.shape_cast %90 : vector<1x16x8xbf16> to vector<16x8xbf16>
    %92 = arith.truncf %89 : vector<8x192xf32> to vector<8x192xbf16>
    %cst_35 = arith.constant dense<0.000000e+00> : vector<16x192xf32>
    %93 = tpu.matmul %91, %92, %cst_35 {dimension_numbers = #tpu.dot_dimension_numbers<[1], [0], [0], [1], [0, 0, 1, 1], [], []>} : vector<16x8xbf16>, vector<8x192xbf16>, vector<16x192xf32> -> vector<16x192xf32>
    %94 = arith.addf %78, %93 : vector<16x192xf32>
    %95 = vector.extract_strided_slice %10 {offsets = [5, 0], sizes = [1, 192], strides = [1, 1]} : vector<8x192xi32> to vector<1x192xi32>
    %96 = vector.broadcast %95 : vector<1x192xi32> to vector<192x192xi32>
    %97 = arith.cmpi eq, %0, %96 : vector<192x192xi32>
    %cst_36 = arith.constant 1.000000e+00 : f32
    %cst_37 = arith.constant 0.000000e+00 : f32
    %98 = vector.broadcast %cst_36 : f32 to vector<192x192xf32>
    %99 = vector.broadcast %cst_37 : f32 to vector<192x192xf32>
    %100 = arith.select %97, %98, %99 : vector<192x192xi1>, vector<192x192xf32>
    %101 = arith.truncf %100 : vector<192x192xf32> to vector<192x192xbf16>
    %cst_38 = arith.constant dense<0.000000e+00> : vector<8x192xf32>
    %102 = tpu.matmul %8, %101, %cst_38 {dimension_numbers = #tpu.dot_dimension_numbers<[1], [0], [0], [1], [0, 0, 1, 1], [], []>} : vector<8x192xbf16>, vector<192x192xbf16>, vector<8x192xf32> -> vector<8x192xf32>
    %103 = vector.extract_strided_slice %11 {offsets = [5, 0], sizes = [1, 192], strides = [1, 1]} : vector<8x192xf32> to vector<1x192xf32>
    %104 = vector.broadcast %103 : vector<1x192xf32> to vector<8x192xf32>
    %105 = arith.mulf %102, %104 : vector<8x192xf32>
    %106 = vector.extract_strided_slice %2 {offsets = [6, 0, 0], sizes = [1, 16, 8], strides = [1, 1, 1]} : vector<9x16x8xbf16> to vector<1x16x8xbf16>
    %107 = vector.shape_cast %106 : vector<1x16x8xbf16> to vector<16x8xbf16>
    %108 = arith.truncf %105 : vector<8x192xf32> to vector<8x192xbf16>
    %cst_39 = arith.constant dense<0.000000e+00> : vector<16x192xf32>
    %109 = tpu.matmul %107, %108, %cst_39 {dimension_numbers = #tpu.dot_dimension_numbers<[1], [0], [0], [1], [0, 0, 1, 1], [], []>} : vector<16x8xbf16>, vector<8x192xbf16>, vector<16x192xf32> -> vector<16x192xf32>
    %110 = arith.addf %94, %109 : vector<16x192xf32>
    %111 = vector.extract_strided_slice %10 {offsets = [6, 0], sizes = [1, 192], strides = [1, 1]} : vector<8x192xi32> to vector<1x192xi32>
    %112 = vector.broadcast %111 : vector<1x192xi32> to vector<192x192xi32>
    %113 = arith.cmpi eq, %0, %112 : vector<192x192xi32>
    %cst_40 = arith.constant 1.000000e+00 : f32
    %cst_41 = arith.constant 0.000000e+00 : f32
    %114 = vector.broadcast %cst_40 : f32 to vector<192x192xf32>
    %115 = vector.broadcast %cst_41 : f32 to vector<192x192xf32>
    %116 = arith.select %113, %114, %115 : vector<192x192xi1>, vector<192x192xf32>
    %117 = arith.truncf %116 : vector<192x192xf32> to vector<192x192xbf16>
    %cst_42 = arith.constant dense<0.000000e+00> : vector<8x192xf32>
    %118 = tpu.matmul %8, %117, %cst_42 {dimension_numbers = #tpu.dot_dimension_numbers<[1], [0], [0], [1], [0, 0, 1, 1], [], []>} : vector<8x192xbf16>, vector<192x192xbf16>, vector<8x192xf32> -> vector<8x192xf32>
    %119 = vector.extract_strided_slice %11 {offsets = [6, 0], sizes = [1, 192], strides = [1, 1]} : vector<8x192xf32> to vector<1x192xf32>
    %120 = vector.broadcast %119 : vector<1x192xf32> to vector<8x192xf32>
    %121 = arith.mulf %118, %120 : vector<8x192xf32>
    %122 = vector.extract_strided_slice %2 {offsets = [7, 0, 0], sizes = [1, 16, 8], strides = [1, 1, 1]} : vector<9x16x8xbf16> to vector<1x16x8xbf16>
    %123 = vector.shape_cast %122 : vector<1x16x8xbf16> to vector<16x8xbf16>
    %124 = arith.truncf %121 : vector<8x192xf32> to vector<8x192xbf16>
    %cst_43 = arith.constant dense<0.000000e+00> : vector<16x192xf32>
    %125 = tpu.matmul %123, %124, %cst_43 {dimension_numbers = #tpu.dot_dimension_numbers<[1], [0], [0], [1], [0, 0, 1, 1], [], []>} : vector<16x8xbf16>, vector<8x192xbf16>, vector<16x192xf32> -> vector<16x192xf32>
    %126 = arith.addf %110, %125 : vector<16x192xf32>
    %127 = vector.extract_strided_slice %10 {offsets = [7, 0], sizes = [1, 192], strides = [1, 1]} : vector<8x192xi32> to vector<1x192xi32>
    %128 = vector.broadcast %127 : vector<1x192xi32> to vector<192x192xi32>
    %129 = arith.cmpi eq, %0, %128 : vector<192x192xi32>
    %cst_44 = arith.constant 1.000000e+00 : f32
    %cst_45 = arith.constant 0.000000e+00 : f32
    %130 = vector.broadcast %cst_44 : f32 to vector<192x192xf32>
    %131 = vector.broadcast %cst_45 : f32 to vector<192x192xf32>
    %132 = arith.select %129, %130, %131 : vector<192x192xi1>, vector<192x192xf32>
    %133 = arith.truncf %132 : vector<192x192xf32> to vector<192x192xbf16>
    %cst_46 = arith.constant dense<0.000000e+00> : vector<8x192xf32>
    %134 = tpu.matmul %8, %133, %cst_46 {dimension_numbers = #tpu.dot_dimension_numbers<[1], [0], [0], [1], [0, 0, 1, 1], [], []>} : vector<8x192xbf16>, vector<192x192xbf16>, vector<8x192xf32> -> vector<8x192xf32>
    %135 = vector.extract_strided_slice %11 {offsets = [7, 0], sizes = [1, 192], strides = [1, 1]} : vector<8x192xf32> to vector<1x192xf32>
    %136 = vector.broadcast %135 : vector<1x192xf32> to vector<8x192xf32>
    %137 = arith.mulf %134, %136 : vector<8x192xf32>
    %138 = vector.extract_strided_slice %2 {offsets = [8, 0, 0], sizes = [1, 16, 8], strides = [1, 1, 1]} : vector<9x16x8xbf16> to vector<1x16x8xbf16>
    %139 = vector.shape_cast %138 : vector<1x16x8xbf16> to vector<16x8xbf16>
    %140 = arith.truncf %137 : vector<8x192xf32> to vector<8x192xbf16>
    %cst_47 = arith.constant dense<0.000000e+00> : vector<16x192xf32>
    %141 = tpu.matmul %139, %140, %cst_47 {dimension_numbers = #tpu.dot_dimension_numbers<[1], [0], [0], [1], [0, 0, 1, 1], [], []>} : vector<16x8xbf16>, vector<8x192xbf16>, vector<16x192xf32> -> vector<16x192xf32>
    %142 = arith.addf %126, %141 : vector<16x192xf32>
    %143 = vector.broadcast %9 : vector<16x1xf32> to vector<16x192xf32>
    %144 = arith.addf %142, %143 : vector<16x192xf32>
    %c0_48 = arith.constant 0 : index
    %c0_49 = arith.constant 0 : index
    %145 = vector.load %arg10[%c0_48, %c0_49] : memref<16x192xf32, #tpu.memory_space<vmem>>, vector<16x192xf32>
    tpu.vector_store %arg10[%c0_48, %c0_49], %144 {strides = array<i32>} : memref<16x192xf32, #tpu.memory_space<vmem>>, vector<16x192xf32>,
    %c0_50 = arith.constant 0 : index
    %c0_51 = arith.constant 0 : index
    %146 = vector.load %arg10[%c0_50, %c0_51] : memref<16x192xf32, #tpu.memory_space<vmem>>, vector<16x192xf32>
    %147 = arith.truncf %146 : vector<16x192xf32> to vector<16x192xbf16>
    %c0_52 = arith.constant 0 : index
    %c0_53 = arith.constant 0 : index
    %148 = vector.load %arg7[%c0_52, %c0_53] : memref<16x1xf32, #tpu.memory_space<vmem>>, vector<16x1xf32>
    %c0_54 = arith.constant 0 : index
    %c0_55 = arith.constant 0 : index
    %149 = vector.load %arg2[%c0_54, %c0_55] : memref<8x192xi32, #tpu.memory_space<vmem>>, vector<8x192xi32>
    %c0_56 = arith.constant 0 : index
    %c0_57 = arith.constant 0 : index
    %150 = vector.load %arg3[%c0_56, %c0_57] : memref<8x192xf32, #tpu.memory_space<vmem>>, vector<8x192xf32>
    %151 = vector.extract_strided_slice %4 {offsets = [0, 0, 0], sizes = [1, 16, 16], strides = [1, 1, 1]} : vector<9x16x16xbf16> to vector<1x16x16xbf16>
    %152 = vector.shape_cast %151 : vector<1x16x16xbf16> to vector<16x16xbf16>
    %cst_58 = arith.constant dense<0.000000e+00> : vector<16x192xf32>
    %153 = tpu.matmul %152, %147, %cst_58 {dimension_numbers = #tpu.dot_dimension_numbers<[1], [0], [0], [1], [0, 0, 1, 1], [], []>} : vector<16x16xbf16>, vector<16x192xbf16>, vector<16x192xf32> -> vector<16x192xf32>
    %154 = vector.extract_strided_slice %149 {offsets = [0, 0], sizes = [1, 192], strides = [1, 1]} : vector<8x192xi32> to vector<1x192xi32>
    %155 = vector.broadcast %154 : vector<1x192xi32> to vector<192x192xi32>
    %156 = arith.cmpi eq, %0, %155 : vector<192x192xi32>
    %cst_59 = arith.constant 1.000000e+00 : f32
    %cst_60 = arith.constant 0.000000e+00 : f32
    %157 = vector.broadcast %cst_59 : f32 to vector<192x192xf32>
    %158 = vector.broadcast %cst_60 : f32 to vector<192x192xf32>
    %159 = arith.select %156, %157, %158 : vector<192x192xi1>, vector<192x192xf32>
    %160 = arith.truncf %159 : vector<192x192xf32> to vector<192x192xbf16>
    %cst_61 = arith.constant dense<0.000000e+00> : vector<16x192xf32>
    %161 = tpu.matmul %147, %160, %cst_61 {dimension_numbers = #tpu.dot_dimension_numbers<[1], [0], [0], [1], [0, 0, 1, 1], [], []>} : vector<16x192xbf16>, vector<192x192xbf16>, vector<16x192xf32> -> vector<16x192xf32>
    %162 = vector.extract_strided_slice %150 {offsets = [0, 0], sizes = [1, 192], strides = [1, 1]} : vector<8x192xf32> to vector<1x192xf32>
    %163 = vector.broadcast %162 : vector<1x192xf32> to vector<16x192xf32>
    %164 = arith.mulf %161, %163 : vector<16x192xf32>
    %165 = vector.extract_strided_slice %4 {offsets = [1, 0, 0], sizes = [1, 16, 16], strides = [1, 1, 1]} : vector<9x16x16xbf16> to vector<1x16x16xbf16>
    %166 = vector.shape_cast %165 : vector<1x16x16xbf16> to vector<16x16xbf16>
    %167 = arith.truncf %164 : vector<16x192xf32> to vector<16x192xbf16>
    %cst_62 = arith.constant dense<0.000000e+00> : vector<16x192xf32>
    %168 = tpu.matmul %166, %167, %cst_62 {dimension_numbers = #tpu.dot_dimension_numbers<[1], [0], [0], [1], [0, 0, 1, 1], [], []>} : vector<16x16xbf16>, vector<16x192xbf16>, vector<16x192xf32> -> vector<16x192xf32>
    %169 = arith.addf %153, %168 : vector<16x192xf32>
    %170 = vector.extract_strided_slice %149 {offsets = [1, 0], sizes = [1, 192], strides = [1, 1]} : vector<8x192xi32> to vector<1x192xi32>
    %171 = vector.broadcast %170 : vector<1x192xi32> to vector<192x192xi32>
    %172 = arith.cmpi eq, %0, %171 : vector<192x192xi32>
    %cst_63 = arith.constant 1.000000e+00 : f32
    %cst_64 = arith.constant 0.000000e+00 : f32
    %173 = vector.broadcast %cst_63 : f32 to vector<192x192xf32>
    %174 = vector.broadcast %cst_64 : f32 to vector<192x192xf32>
    %175 = arith.select %172, %173, %174 : vector<192x192xi1>, vector<192x192xf32>
    %176 = arith.truncf %175 : vector<192x192xf32> to vector<192x192xbf16>
    %cst_65 = arith.constant dense<0.000000e+00> : vector<16x192xf32>
    %177 = tpu.matmul %147, %176, %cst_65 {dimension_numbers = #tpu.dot_dimension_numbers<[1], [0], [0], [1], [0, 0, 1, 1], [], []>} : vector<16x192xbf16>, vector<192x192xbf16>, vector<16x192xf32> -> vector<16x192xf32>
    %178 = vector.extract_strided_slice %150 {offsets = [1, 0], sizes = [1, 192], strides = [1, 1]} : vector<8x192xf32> to vector<1x192xf32>
    %179 = vector.broadcast %178 : vector<1x192xf32> to vector<16x192xf32>
    %180 = arith.mulf %177, %179 : vector<16x192xf32>
    %181 = vector.extract_strided_slice %4 {offsets = [2, 0, 0], sizes = [1, 16, 16], strides = [1, 1, 1]} : vector<9x16x16xbf16> to vector<1x16x16xbf16>
    %182 = vector.shape_cast %181 : vector<1x16x16xbf16> to vector<16x16xbf16>
    %183 = arith.truncf %180 : vector<16x192xf32> to vector<16x192xbf16>
    %cst_66 = arith.constant dense<0.000000e+00> : vector<16x192xf32>
    %184 = tpu.matmul %182, %183, %cst_66 {dimension_numbers = #tpu.dot_dimension_numbers<[1], [0], [0], [1], [0, 0, 1, 1], [], []>} : vector<16x16xbf16>, vector<16x192xbf16>, vector<16x192xf32> -> vector<16x192xf32>
    %185 = arith.addf %169, %184 : vector<16x192xf32>
    %186 = vector.extract_strided_slice %149 {offsets = [2, 0], sizes = [1, 192], strides = [1, 1]} : vector<8x192xi32> to vector<1x192xi32>
    %187 = vector.broadcast %186 : vector<1x192xi32> to vector<192x192xi32>
    %188 = arith.cmpi eq, %0, %187 : vector<192x192xi32>
    %cst_67 = arith.constant 1.000000e+00 : f32
    %cst_68 = arith.constant 0.000000e+00 : f32
    %189 = vector.broadcast %cst_67 : f32 to vector<192x192xf32>
    %190 = vector.broadcast %cst_68 : f32 to vector<192x192xf32>
    %191 = arith.select %188, %189, %190 : vector<192x192xi1>, vector<192x192xf32>
    %192 = arith.truncf %191 : vector<192x192xf32> to vector<192x192xbf16>
    %cst_69 = arith.constant dense<0.000000e+00> : vector<16x192xf32>
    %193 = tpu.matmul %147, %192, %cst_69 {dimension_numbers = #tpu.dot_dimension_numbers<[1], [0], [0], [1], [0, 0, 1, 1], [], []>} : vector<16x192xbf16>, vector<192x192xbf16>, vector<16x192xf32> -> vector<16x192xf32>
    %194 = vector.extract_strided_slice %150 {offsets = [2, 0], sizes = [1, 192], strides = [1, 1]} : vector<8x192xf32> to vector<1x192xf32>
    %195 = vector.broadcast %194 : vector<1x192xf32> to vector<16x192xf32>
    %196 = arith.mulf %193, %195 : vector<16x192xf32>
    %197 = vector.extract_strided_slice %4 {offsets = [3, 0, 0], sizes = [1, 16, 16], strides = [1, 1, 1]} : vector<9x16x16xbf16> to vector<1x16x16xbf16>
    %198 = vector.shape_cast %197 : vector<1x16x16xbf16> to vector<16x16xbf16>
    %199 = arith.truncf %196 : vector<16x192xf32> to vector<16x192xbf16>
    %cst_70 = arith.constant dense<0.000000e+00> : vector<16x192xf32>
    %200 = tpu.matmul %198, %199, %cst_70 {dimension_numbers = #tpu.dot_dimension_numbers<[1], [0], [0], [1], [0, 0, 1, 1], [], []>} : vector<16x16xbf16>, vector<16x192xbf16>, vector<16x192xf32> -> vector<16x192xf32>
    %201 = arith.addf %185, %200 : vector<16x192xf32>
    %202 = vector.extract_strided_slice %149 {offsets = [3, 0], sizes = [1, 192], strides = [1, 1]} : vector<8x192xi32> to vector<1x192xi32>
    %203 = vector.broadcast %202 : vector<1x192xi32> to vector<192x192xi32>
    %204 = arith.cmpi eq, %0, %203 : vector<192x192xi32>
    %cst_71 = arith.constant 1.000000e+00 : f32
    %cst_72 = arith.constant 0.000000e+00 : f32
    %205 = vector.broadcast %cst_71 : f32 to vector<192x192xf32>
    %206 = vector.broadcast %cst_72 : f32 to vector<192x192xf32>
    %207 = arith.select %204, %205, %206 : vector<192x192xi1>, vector<192x192xf32>
    %208 = arith.truncf %207 : vector<192x192xf32> to vector<192x192xbf16>
    %cst_73 = arith.constant dense<0.000000e+00> : vector<16x192xf32>
    %209 = tpu.matmul %147, %208, %cst_73 {dimension_numbers = #tpu.dot_dimension_numbers<[1], [0], [0], [1], [0, 0, 1, 1], [], []>} : vector<16x192xbf16>, vector<192x192xbf16>, vector<16x192xf32> -> vector<16x192xf32>
    %210 = vector.extract_strided_slice %150 {offsets = [3, 0], sizes = [1, 192], strides = [1, 1]} : vector<8x192xf32> to vector<1x192xf32>
    %211 = vector.broadcast %210 : vector<1x192xf32> to vector<16x192xf32>
    %212 = arith.mulf %209, %211 : vector<16x192xf32>
    %213 = vector.extract_strided_slice %4 {offsets = [4, 0, 0], sizes = [1, 16, 16], strides = [1, 1, 1]} : vector<9x16x16xbf16> to vector<1x16x16xbf16>
    %214 = vector.shape_cast %213 : vector<1x16x16xbf16> to vector<16x16xbf16>
    %215 = arith.truncf %212 : vector<16x192xf32> to vector<16x192xbf16>
    %cst_74 = arith.constant dense<0.000000e+00> : vector<16x192xf32>
    %216 = tpu.matmul %214, %215, %cst_74 {dimension_numbers = #tpu.dot_dimension_numbers<[1], [0], [0], [1], [0, 0, 1, 1], [], []>} : vector<16x16xbf16>, vector<16x192xbf16>, vector<16x192xf32> -> vector<16x192xf32>
    %217 = arith.addf %201, %216 : vector<16x192xf32>
    %218 = vector.extract_strided_slice %149 {offsets = [4, 0], sizes = [1, 192], strides = [1, 1]} : vector<8x192xi32> to vector<1x192xi32>
    %219 = vector.broadcast %218 : vector<1x192xi32> to vector<192x192xi32>
    %220 = arith.cmpi eq, %0, %219 : vector<192x192xi32>
    %cst_75 = arith.constant 1.000000e+00 : f32
    %cst_76 = arith.constant 0.000000e+00 : f32
    %221 = vector.broadcast %cst_75 : f32 to vector<192x192xf32>
    %222 = vector.broadcast %cst_76 : f32 to vector<192x192xf32>
    %223 = arith.select %220, %221, %222 : vector<192x192xi1>, vector<192x192xf32>
    %224 = arith.truncf %223 : vector<192x192xf32> to vector<192x192xbf16>
    %cst_77 = arith.constant dense<0.000000e+00> : vector<16x192xf32>
    %225 = tpu.matmul %147, %224, %cst_77 {dimension_numbers = #tpu.dot_dimension_numbers<[1], [0], [0], [1], [0, 0, 1, 1], [], []>} : vector<16x192xbf16>, vector<192x192xbf16>, vector<16x192xf32> -> vector<16x192xf32>
    %226 = vector.extract_strided_slice %150 {offsets = [4, 0], sizes = [1, 192], strides = [1, 1]} : vector<8x192xf32> to vector<1x192xf32>
    %227 = vector.broadcast %226 : vector<1x192xf32> to vector<16x192xf32>
    %228 = arith.mulf %225, %227 : vector<16x192xf32>
    %229 = vector.extract_strided_slice %4 {offsets = [5, 0, 0], sizes = [1, 16, 16], strides = [1, 1, 1]} : vector<9x16x16xbf16> to vector<1x16x16xbf16>
    %230 = vector.shape_cast %229 : vector<1x16x16xbf16> to vector<16x16xbf16>
    %231 = arith.truncf %228 : vector<16x192xf32> to vector<16x192xbf16>
    %cst_78 = arith.constant dense<0.000000e+00> : vector<16x192xf32>
    %232 = tpu.matmul %230, %231, %cst_78 {dimension_numbers = #tpu.dot_dimension_numbers<[1], [0], [0], [1], [0, 0, 1, 1], [], []>} : vector<16x16xbf16>, vector<16x192xbf16>, vector<16x192xf32> -> vector<16x192xf32>
    %233 = arith.addf %217, %232 : vector<16x192xf32>
    %234 = vector.extract_strided_slice %149 {offsets = [5, 0], sizes = [1, 192], strides = [1, 1]} : vector<8x192xi32> to vector<1x192xi32>
    %235 = vector.broadcast %234 : vector<1x192xi32> to vector<192x192xi32>
    %236 = arith.cmpi eq, %0, %235 : vector<192x192xi32>
    %cst_79 = arith.constant 1.000000e+00 : f32
    %cst_80 = arith.constant 0.000000e+00 : f32
    %237 = vector.broadcast %cst_79 : f32 to vector<192x192xf32>
    %238 = vector.broadcast %cst_80 : f32 to vector<192x192xf32>
    %239 = arith.select %236, %237, %238 : vector<192x192xi1>, vector<192x192xf32>
    %240 = arith.truncf %239 : vector<192x192xf32> to vector<192x192xbf16>
    %cst_81 = arith.constant dense<0.000000e+00> : vector<16x192xf32>
    %241 = tpu.matmul %147, %240, %cst_81 {dimension_numbers = #tpu.dot_dimension_numbers<[1], [0], [0], [1], [0, 0, 1, 1], [], []>} : vector<16x192xbf16>, vector<192x192xbf16>, vector<16x192xf32> -> vector<16x192xf32>
    %242 = vector.extract_strided_slice %150 {offsets = [5, 0], sizes = [1, 192], strides = [1, 1]} : vector<8x192xf32> to vector<1x192xf32>
    %243 = vector.broadcast %242 : vector<1x192xf32> to vector<16x192xf32>
    %244 = arith.mulf %241, %243 : vector<16x192xf32>
    %245 = vector.extract_strided_slice %4 {offsets = [6, 0, 0], sizes = [1, 16, 16], strides = [1, 1, 1]} : vector<9x16x16xbf16> to vector<1x16x16xbf16>
    %246 = vector.shape_cast %245 : vector<1x16x16xbf16> to vector<16x16xbf16>
    %247 = arith.truncf %244 : vector<16x192xf32> to vector<16x192xbf16>
    %cst_82 = arith.constant dense<0.000000e+00> : vector<16x192xf32>
    %248 = tpu.matmul %246, %247, %cst_82 {dimension_numbers = #tpu.dot_dimension_numbers<[1], [0], [0], [1], [0, 0, 1, 1], [], []>} : vector<16x16xbf16>, vector<16x192xbf16>, vector<16x192xf32> -> vector<16x192xf32>
    %249 = arith.addf %233, %248 : vector<16x192xf32>
    %250 = vector.extract_strided_slice %149 {offsets = [6, 0], sizes = [1, 192], strides = [1, 1]} : vector<8x192xi32> to vector<1x192xi32>
    %251 = vector.broadcast %250 : vector<1x192xi32> to vector<192x192xi32>
    %252 = arith.cmpi eq, %0, %251 : vector<192x192xi32>
    %cst_83 = arith.constant 1.000000e+00 : f32
    %cst_84 = arith.constant 0.000000e+00 : f32
    %253 = vector.broadcast %cst_83 : f32 to vector<192x192xf32>
    %254 = vector.broadcast %cst_84 : f32 to vector<192x192xf32>
    %255 = arith.select %252, %253, %254 : vector<192x192xi1>, vector<192x192xf32>
    %256 = arith.truncf %255 : vector<192x192xf32> to vector<192x192xbf16>
    %cst_85 = arith.constant dense<0.000000e+00> : vector<16x192xf32>
    %257 = tpu.matmul %147, %256, %cst_85 {dimension_numbers = #tpu.dot_dimension_numbers<[1], [0], [0], [1], [0, 0, 1, 1], [], []>} : vector<16x192xbf16>, vector<192x192xbf16>, vector<16x192xf32> -> vector<16x192xf32>
    %258 = vector.extract_strided_slice %150 {offsets = [6, 0], sizes = [1, 192], strides = [1, 1]} : vector<8x192xf32> to vector<1x192xf32>
    %259 = vector.broadcast %258 : vector<1x192xf32> to vector<16x192xf32>
    %260 = arith.mulf %257, %259 : vector<16x192xf32>
    %261 = vector.extract_strided_slice %4 {offsets = [7, 0, 0], sizes = [1, 16, 16], strides = [1, 1, 1]} : vector<9x16x16xbf16> to vector<1x16x16xbf16>
    %262 = vector.shape_cast %261 : vector<1x16x16xbf16> to vector<16x16xbf16>
    %263 = arith.truncf %260 : vector<16x192xf32> to vector<16x192xbf16>
    %cst_86 = arith.constant dense<0.000000e+00> : vector<16x192xf32>
    %264 = tpu.matmul %262, %263, %cst_86 {dimension_numbers = #tpu.dot_dimension_numbers<[1], [0], [0], [1], [0, 0, 1, 1], [], []>} : vector<16x16xbf16>, vector<16x192xbf16>, vector<16x192xf32> -> vector<16x192xf32>
    %265 = arith.addf %249, %264 : vector<16x192xf32>
    %266 = vector.extract_strided_slice %149 {offsets = [7, 0], sizes = [1, 192], strides = [1, 1]} : vector<8x192xi32> to vector<1x192xi32>
    %267 = vector.broadcast %266 : vector<1x192xi32> to vector<192x192xi32>
    %268 = arith.cmpi eq, %0, %267 : vector<192x192xi32>
    %cst_87 = arith.constant 1.000000e+00 : f32
    %cst_88 = arith.constant 0.000000e+00 : f32
    %269 = vector.broadcast %cst_87 : f32 to vector<192x192xf32>
    %270 = vector.broadcast %cst_88 : f32 to vector<192x192xf32>
    %271 = arith.select %268, %269, %270 : vector<192x192xi1>, vector<192x192xf32>
    %272 = arith.truncf %271 : vector<192x192xf32> to vector<192x192xbf16>
    %cst_89 = arith.constant dense<0.000000e+00> : vector<16x192xf32>
    %273 = tpu.matmul %147, %272, %cst_89 {dimension_numbers = #tpu.dot_dimension_numbers<[1], [0], [0], [1], [0, 0, 1, 1], [], []>} : vector<16x192xbf16>, vector<192x192xbf16>, vector<16x192xf32> -> vector<16x192xf32>
    %274 = vector.extract_strided_slice %150 {offsets = [7, 0], sizes = [1, 192], strides = [1, 1]} : vector<8x192xf32> to vector<1x192xf32>
    %275 = vector.broadcast %274 : vector<1x192xf32> to vector<16x192xf32>
    %276 = arith.mulf %273, %275 : vector<16x192xf32>
    %277 = vector.extract_strided_slice %4 {offsets = [8, 0, 0], sizes = [1, 16, 16], strides = [1, 1, 1]} : vector<9x16x16xbf16> to vector<1x16x16xbf16>
    %278 = vector.shape_cast %277 : vector<1x16x16xbf16> to vector<16x16xbf16>
    %279 = arith.truncf %276 : vector<16x192xf32> to vector<16x192xbf16>
    %cst_90 = arith.constant dense<0.000000e+00> : vector<16x192xf32>
    %280 = tpu.matmul %278, %279, %cst_90 {dimension_numbers = #tpu.dot_dimension_numbers<[1], [0], [0], [1], [0, 0, 1, 1], [], []>} : vector<16x16xbf16>, vector<16x192xbf16>, vector<16x192xf32> -> vector<16x192xf32>
    %281 = arith.addf %265, %280 : vector<16x192xf32>
    %282 = vector.broadcast %148 : vector<16x1xf32> to vector<16x192xf32>
    %283 = arith.addf %281, %282 : vector<16x192xf32>
    %c0_91 = arith.constant 0 : index
    %c0_92 = arith.constant 0 : index
    %284 = vector.load %arg10[%c0_91, %c0_92] : memref<16x192xf32, #tpu.memory_space<vmem>>, vector<16x192xf32>
    %285 = arith.addf %283, %284 : vector<16x192xf32>
    %cst_93 = arith.constant 0.000000e+00 : f32
    %286 = vector.broadcast %cst_93 : f32 to vector<16x192xf32>
    %287 = arith.maximumf %285, %286 : vector<16x192xf32>
    %288 = arith.truncf %287 : vector<16x192xf32> to vector<16x192xbf16>
    %289 = vector.extract_strided_slice %6 {offsets = [0, 0, 0], sizes = [1, 192, 48], strides = [1, 1, 1]} : vector<4x192x48xbf16> to vector<1x192x48xbf16>
    %290 = vector.shape_cast %289 : vector<1x192x48xbf16> to vector<192x48xbf16>
    %cst_94 = arith.constant dense<0.000000e+00> : vector<16x48xf32>
    %291 = tpu.matmul %288, %290, %cst_94 {dimension_numbers = #tpu.dot_dimension_numbers<[1], [0], [0], [1], [0, 0, 1, 1], [], []>} : vector<16x192xbf16>, vector<192x48xbf16>, vector<16x48xf32> -> vector<16x48xf32>
    %292 = vector.extract_strided_slice %6 {offsets = [1, 0, 0], sizes = [1, 192, 48], strides = [1, 1, 1]} : vector<4x192x48xbf16> to vector<1x192x48xbf16>
    %293 = vector.shape_cast %292 : vector<1x192x48xbf16> to vector<192x48xbf16>
    %cst_95 = arith.constant dense<0.000000e+00> : vector<16x48xf32>
    %294 = tpu.matmul %288, %293, %cst_95 {dimension_numbers = #tpu.dot_dimension_numbers<[1], [0], [0], [1], [0, 0, 1, 1], [], []>} : vector<16x192xbf16>, vector<192x48xbf16>, vector<16x48xf32> -> vector<16x48xf32>
    %295 = arith.maximumf %291, %294 : vector<16x48xf32>
    %296 = vector.extract_strided_slice %6 {offsets = [2, 0, 0], sizes = [1, 192, 48], strides = [1, 1, 1]} : vector<4x192x48xbf16> to vector<1x192x48xbf16>
    %297 = vector.shape_cast %296 : vector<1x192x48xbf16> to vector<192x48xbf16>
    %cst_96 = arith.constant dense<0.000000e+00> : vector<16x48xf32>
    %298 = tpu.matmul %288, %297, %cst_96 {dimension_numbers = #tpu.dot_dimension_numbers<[1], [0], [0], [1], [0, 0, 1, 1], [], []>} : vector<16x192xbf16>, vector<192x48xbf16>, vector<16x48xf32> -> vector<16x48xf32>
    %299 = arith.maximumf %295, %298 : vector<16x48xf32>
    %300 = vector.extract_strided_slice %6 {offsets = [3, 0, 0], sizes = [1, 192, 48], strides = [1, 1, 1]} : vector<4x192x48xbf16> to vector<1x192x48xbf16>
    %301 = vector.shape_cast %300 : vector<1x192x48xbf16> to vector<192x48xbf16>
    %cst_97 = arith.constant dense<0.000000e+00> : vector<16x48xf32>
    %302 = tpu.matmul %288, %301, %cst_97 {dimension_numbers = #tpu.dot_dimension_numbers<[1], [0], [0], [1], [0, 0, 1, 1], [], []>} : vector<16x192xbf16>, vector<192x48xbf16>, vector<16x48xf32> -> vector<16x48xf32>
    %303 = arith.maximumf %299, %302 : vector<16x48xf32>
    %c0_98 = arith.constant 0 : index
    %c0_99 = arith.constant 0 : index
    %304 = vector.load %arg9[%c0_98, %c0_99] : memref<16x48xf32, #tpu.memory_space<vmem>>, vector<16x48xf32>
    tpu.vector_store %arg9[%c0_98, %c0_99], %303 {strides = array<i32>} : memref<16x48xf32, #tpu.memory_space<vmem>>, vector<16x48xf32>,
    return
  }
  func.func @transform_0(%arg0: i32) -> (i32, i32) {
    %c0_i32 = arith.constant 0 : i32
    %c0_i32_0 = arith.constant 0 : i32
    return %arg0, %c0_i32 : i32, i32
  }
  func.func @transform_1(%arg0: i32) -> (i32, i32) {
    %c0_i32 = arith.constant 0 : i32
    %c0_i32_0 = arith.constant 0 : i32
    %c0_i32_1 = arith.constant 0 : i32
    return %c0_i32, %c0_i32_0 : i32, i32
  }
  func.func @transform_2(%arg0: i32) -> (i32, i32) {
    %c0_i32 = arith.constant 0 : i32
    %c0_i32_0 = arith.constant 0 : i32
    %c0_i32_1 = arith.constant 0 : i32
    return %c0_i32, %c0_i32_0 : i32, i32
  }
  func.func @transform_3(%arg0: i32) -> (i32, i32, i32) {
    %c0_i32 = arith.constant 0 : i32
    %c0_i32_0 = arith.constant 0 : i32
    %c0_i32_1 = arith.constant 0 : i32
    %c0_i32_2 = arith.constant 0 : i32
    return %c0_i32, %c0_i32_0, %c0_i32_1 : i32, i32, i32
  }
  func.func @transform_4(%arg0: i32) -> (i32, i32, i32) {
    %c0_i32 = arith.constant 0 : i32
    %c0_i32_0 = arith.constant 0 : i32
    %c0_i32_1 = arith.constant 0 : i32
    %c0_i32_2 = arith.constant 0 : i32
    return %c0_i32, %c0_i32_0, %c0_i32_1 : i32, i32, i32
  }
  func.func @transform_5(%arg0: i32) -> (i32, i32) {
    %c0_i32 = arith.constant 0 : i32
    %c0_i32_0 = arith.constant 0 : i32
    %c0_i32_1 = arith.constant 0 : i32
    return %c0_i32, %c0_i32_0 : i32, i32
  }
  func.func @transform_6(%arg0: i32) -> (i32, i32) {
    %c0_i32 = arith.constant 0 : i32
    %c0_i32_0 = arith.constant 0 : i32
    %c0_i32_1 = arith.constant 0 : i32
    return %c0_i32, %c0_i32_0 : i32, i32
  }
  func.func @transform_7(%arg0: i32) -> (i32, i32, i32) {
    %c0_i32 = arith.constant 0 : i32
    %c0_i32_0 = arith.constant 0 : i32
    %c0_i32_1 = arith.constant 0 : i32
    %c0_i32_2 = arith.constant 0 : i32
    return %c0_i32, %c0_i32_0, %c0_i32_1 : i32, i32, i32
  }
  func.func @transform_8(%arg0: i32) -> (i32, i32) {
    %c0_i32 = arith.constant 0 : i32
    %c0_i32_0 = arith.constant 0 : i32
    return %arg0, %c0_i32 : i32, i32
  }
}

</mosaic_0001>

<bundles_post_ra>
// kernel: tile.13
= control target key start
LH: loop header
LB: loop body
LE: loop exit
PB: predicated region body
PF: predicated region fallthrough
CT: control target
= control target key end

     0   :  { %s22_s0 = inlined_call_operand.vmem [shape: f32[8], index: 0, kind: input, shape index: {}]   ;;  %s23_s1 = inlined_call_operand.vmem [shape: f32[2,8], index: 1, kind: output, shape index: {}]  }
   0x1   :  { %v4_v0 = vld [vmem:[%s22_s0] ss:$0 sm:$0xff] }
   0x2   :  { %5 = vst [vmem:[%s23_s1] sm:$0x3] %v4_v0 }

// kernel: tile.0
= control target key start
LH: loop header
LB: loop body
LE: loop exit
PB: predicated region body
PF: predicated region fallthrough
CT: control target
= control target key end

     0   :  { %s67_s8 = smov 125   ;;  %vm8_vm0 = vcmask 7168   ;;  %s68_s11 = smov 126   ;;  %s118_s0 = inlined_call_operand.vmem [shape: f32[2,8], index: 0, kind: input, shape index: {}]   ;;  %s119_s1 = inlined_call_operand.vmem [shape: f32[16,1], index: 1, kind: output, shape index: {}]  }
   0x1   :  { %v5_v0 = vld [vmem:[%s118_s0] sm:$0x3]  ;;  %s66_s0 = smov 127   ;;  %s69_s12 = smov 124  }
   0x2   :  { %6 = vst [vmem:[#allocation0] sm:$0x3] %v5_v0  ;;  %s70_s13 = smov 123   ;;  %s71_s14 = smov 122  }
   0x3   :  { %s72_s15 = smov 121  }
   0x9   :  { %v10_v1 = vld [vmem:[#allocation0] sm:$0x3]  }
   0xa   :  { %v22_v2 = vld [vmem:[#allocation0] sm:$0x3]   ;;  %11 = vrot.lane.b32.xlu0 %v10_v1, %s66_s0 }
   0xb   :  { %23 = vrot.lane.b32.xlu1 %v22_v2, %s67_s8  ;;  %v16_v3 = vld [vmem:[#allocation0] sm:$0x3]  }
   0xc   :  { %v28_v4 = vld [vmem:[#allocation0] sm:$0x3]  }
   0xd   :  { %v7_v5 = vld [vmem:[#allocation0] sm:$0x3]  }
   0xe   :  { %9 = vst.msk [vmem:[%s119_s1] ss:$8 sm:$0x3] %vm8_vm0, %v7_v5   ;;  %17 = vrot.lane.b32.xlu0 %v16_v3, %s68_s11  ;;  %v34_v6 = vld [vmem:[#allocation0] sm:$0x3]  }
   0xf   :  { %29 = vrot.lane.b32.xlu1 %v28_v4, %s69_s12  ;;  %v40_v7 = vld [vmem:[#allocation0] sm:$0x3]  }
  0x10   :  { %v46_v8 = vld [vmem:[#allocation0] sm:$0x3]  }
  0x12   :  { %35 = vrot.lane.b32.xlu0 %v34_v6, %s70_s13 }
  0x13   :  { %41 = vrot.lane.b32.xlu1 %v40_v7, %s71_s14 }
  0x16   :  { %47 = vrot.lane.b32.xlu0 %v46_v8, %s72_s15 }
  0x7c   :  { %v12_v9 = vpop.permute.xlu0 %11  }
  0x7d   :  { %v24_v10 = vpop.permute.xlu1 %23   ;;  %52 = vst.msk [vmem:[%s119_s1 + $0x1] ss:$8 sm:$0x3] %vm8_vm0, %v12_v9  }
  0x7e   :  { %54 = vst.msk [vmem:[%s119_s1 + $0x3] ss:$8 sm:$0x3] %vm8_vm0, %v24_v10  }
  0x80   :  { %v18_v11 = vpop.permute.xlu0 %17  }
  0x81   :  { %v30_v12 = vpop.permute.xlu1 %29   ;;  %53 = vst.msk [vmem:[%s119_s1 + $0x2] ss:$8 sm:$0x3] %vm8_vm0, %v18_v11  }
  0x82   :  { %55 = vst.msk [vmem:[%s119_s1 + $0x4] ss:$8 sm:$0x3] %vm8_vm0, %v30_v12  }
  0x84   :  { %v36_v13 = vpop.permute.xlu0 %35  }
  0x85   :  { %v42_v14 = vpop.permute.xlu1 %41   ;;  %56 = vst.msk [vmem:[%s119_s1 + $0x5] ss:$8 sm:$0x3] %vm8_vm0, %v36_v13  }
  0x86   :  { %57 = vst.msk [vmem:[%s119_s1 + $0x6] ss:$8 sm:$0x3] %vm8_vm0, %v42_v14  }
  0x88   :  { %v48_v15 = vpop.permute.xlu0 %47  }
  0x89   :  { %58 = vst.msk [vmem:[%s119_s1 + $0x7] ss:$8 sm:$0x3] %vm8_vm0, %v48_v15  }

// kernel: _lambda_.1
= control target key start
LH: loop header
LB: loop body
LE: loop exit
PB: predicated region body
PF: predicated region fallthrough
CT: control target
= control target key end

     0   :  { %vm453_vm0 = vcmask 1043456   ;;  %v31_v2 = vlaneseq  ;;  %v5241_v8 = vmov 0   ;;  %vm8348_vm1 = vcmask 523264   ;;  %s8339_s0 = inlined_call_operand.vmem [shape: f32[8,192], index: 0, kind: input, shape index: {}]   ;;  %s8340_s1 = inlined_call_operand.vmem [shape: s32[8,192], index: 1, kind: input, shape index: {}]   ;;  %s8341_s2 = inlined_call_operand.vmem [shape: f32[8,192], index: 2, kind: input, shape index: {}]   ;;  %s8342_s3 = inlined_call_operand.vmem [shape: f32[9,16,8], index: 3, kind: input, shape index: {}]   ;;  %s8343_s4 = inlined_call_operand.vmem [shape: f32[9,16,16], index: 4, kind: input, shape index: {}]   ;;  %s8344_s5 = inlined_call_operand.vmem [shape: f32[16,1], index: 5, kind: input, shape index: {}]   ;;  %s8345_s6 = inlined_call_operand.vmem [shape: f32[16,1], index: 6, kind: input, shape index: {}]   ;;  %s8346_s7 = inlined_call_operand.vmem [shape: f32[4,192,48], index: 7, kind: input, shape index: {}]   ;;  %s8347_s8 = inlined_call_operand.hbm [shape: f32[16,48], index: 8, kind: output, shape index: {}]  }
   0x1   :  { %v255_v0 = vld [vmem:[%s8339_s0 + $0x8] sm:$0xff]  ;;  %v254_v1 = vld [vmem:[%s8339_s0] sm:$0xff]  ;;  %543 = vmatprep.mubr.bf16.mxu1 %v5241_v8  ;;  %5205 = vset.pattern.permute.xlu0 %v5241_v8 }
   0x2   :  { %v5297_v3 = vpack.c.bf16 %v255_v0, %v255_v0  ;;  %v5299_v4 = vpack.c.bf16 %v254_v1, %v254_v1  ;;  %v56_v5 = vld [vmem:[%s8342_s3] sm:$0xff]  ;;  %v57_v6 = vld [vmem:[%s8342_s3 + $0x8] sm:$0xff]  ;;  %v5307_v7 = vshrl.u32 %v31_v2, 7 }
   0x3   :  { %13 = vsyncpa [#allocation4], 0  ;;  %v5318_v10 = vld [vmem:[%s8340_s1 + $0x8] sm:$0xff]  ;;  %v5323_v11 = vld [vmem:[%s8340_s1] sm:$0xff]  ;;  %v74_v12 = vpack.c.bf16 %v57_v6, %v56_v5  ;;  %vm449_vm2 = vcmask 64512   ;;  %5206 = vset.pattern.permute.xlu1 %v5241_v8 }
   0x4   :  { %4436 = vmatprep.subr.msk.bf16.mxu1 %vm453_vm0, %v5297_v3  ;;  %v507_v9 = vsel %vm453_vm0, %v5299_v4, 0  ;;  %4433 = vmatprep.mubr.msk.bf16.mxu0 %vm8348_vm1, %v5297_v3  ;;  %v5328_v13 = vadd.s32 112, %v5307_v7  ;;  %v5331_v14 = vadd.s32 120, %v5307_v7  ;;  %v5334_v15 = vsub.s32 0, %v5307_v7  ;;  %v5673_v45 = vld [vmem:[%s8341_s2] sm:$0xff]  ;;  %v5680_v47 = vld [vmem:[%s8341_s2 + $0x8] sm:$0xff] }
   0x5   :  { %526 = vmatpush1.bf16.msra.mxu1 %v507_v9  ;;  %v5337_v16 = vsub.s32 1, %v5307_v7  ;;  %v5341_v17 = vadd.s32 96, %v5307_v7  ;;  %v5344_v18 = vadd.s32 104, %v5307_v7  ;;  %v5242_v23 = vmov 1.0|1.0   ;;  %v58_v61 = vld [vmem:[%s8342_s3 + $0x10] sm:$0xff] }
   0x6   :  { %v5348_v19 = vrot.slane %v5318_v10, %v5334_v15  ;;  %v5352_v20 = vrot.slane %v5323_v11, %v5334_v15  ;;  %v5387_v24 = vadd.s32 80, %v5307_v7  ;;  %v5390_v25 = vadd.s32 88, %v5307_v7  ;;  %v59_v62 = vld [vmem:[%s8342_s3 + $0x18] sm:$0xff] }
   0x7   :  { %v5356_v21 = vrot.slane %v5318_v10, %v5337_v16  ;;  %v5360_v22 = vrot.slane %v5323_v11, %v5337_v16  ;;  %v5413_v26 = vadd.s32 64, %v5307_v7  ;;  %v5416_v27 = vadd.s32 72, %v5307_v7 }
   0x8   :  { %4437 = vmatmul.mubr.msk.bf16.vlgmr.msra.gmra.mxu1 %vm449_vm2, %v74_v12  ;;  %vm301_vm3 = vcmp.eq.s32.totalorder %v5328_v13, %v5348_v19  ;;  %vm303_vm4 = vcmp.eq.s32.totalorder %v5331_v14, %v5348_v19  ;;  %vm300_vm5 = vcmp.eq.s32.totalorder %v5328_v13, %v5352_v20  ;;  %vm302_vm6 = vcmp.eq.s32.totalorder %v5331_v14, %v5352_v20 }
   0x9   :  { %4486 = vmatprep.mubr.msk.bf16.mxu1 %vm8348_vm1, %v5297_v3  ;;  %vm4385_vm7 = vmpackc.low %vm303_vm4, %vm301_vm3  ;;  %vm591_vm8 = vcmp.eq.s32.totalorder %v5328_v13, %v5356_v21  ;;  %vm593_vm9 = vcmp.eq.s32.totalorder %v5331_v14, %v5356_v21  ;;  %vm590_vm10 = vcmp.eq.s32.totalorder %v5328_v13, %v5360_v22  ;;  %vm592_vm11 = vcmp.eq.s32.totalorder %v5331_v14, %v5360_v22 }
   0xa   :  { %4386 = vmatprep.subr.msk.bf16.mxu0 %vm4385_vm7, %v5242_v23  ;;  %vm4387_vm12 = vmpackc.low %vm302_vm6, %vm300_vm5  ;;  %vm297_vm13 = vcmp.eq.s32.totalorder %v5341_v17, %v5348_v19  ;;  %vm299_vm14 = vcmp.eq.s32.totalorder %v5344_v18, %v5348_v19  ;;  %vm296_vm3 = vcmp.eq.s32.totalorder %v5341_v17, %v5352_v20  ;;  %vm298_vm4 = vcmp.eq.s32.totalorder %v5344_v18, %v5352_v20 }
   0xb   :  { %4388 = vmatpush1.bf16.msk.msra.mxu0 %vm4387_vm12, %v5242_v23  ;;  %vm4438_vm15 = vmpackc.low %vm593_vm9, %vm591_vm8  ;;  %vm587_vm6 = vcmp.eq.s32.totalorder %v5341_v17, %v5356_v21  ;;  %vm589_vm7 = vcmp.eq.s32.totalorder %v5344_v18, %v5356_v21  ;;  %vm586_vm8 = vcmp.eq.s32.totalorder %v5341_v17, %v5360_v22  ;;  %vm588_vm9 = vcmp.eq.s32.totalorder %v5344_v18, %v5360_v22 }
   0xc   :  { %4439 = vmatprep.subr.msk.bf16.mxu1 %vm4438_vm15, %v5242_v23  ;;  %vm4440_vm5 = vmpackc.low %vm592_vm11, %vm590_vm10  ;;  %vm293_vm10 = vcmp.eq.s32.totalorder %v5387_v24, %v5348_v19  ;;  %vm295_vm11 = vcmp.eq.s32.totalorder %v5390_v25, %v5348_v19  ;;  %v5439_v28 = vadd.s32 48, %v5307_v7  ;;  %v5442_v29 = vadd.s32 56, %v5307_v7 }
   0xd   :  { %4441 = vmatpush1.bf16.msk.msra.mxu1 %vm4440_vm5, %v5242_v23  ;;  %vm4389_vm1 = vmpackc.low %vm299_vm14, %vm297_vm13  ;;  %vm292_vm14 = vcmp.eq.s32.totalorder %v5387_v24, %v5352_v20  ;;  %v5465_v30 = vadd.s32 32, %v5307_v7  ;;  %v5468_v31 = vadd.s32 40, %v5307_v7  ;;  %v5491_v32 = vadd.s32 16, %v5307_v7 }
   0xe   :  { %4390 = vmatprep.subr.msk.bf16.mxu0 %vm4389_vm1, %v5242_v23  ;;  %vm4391_vm12 = vmpackc.low %vm298_vm4, %vm296_vm3  ;;  %vm294_vm1 = vcmp.eq.s32.totalorder %v5390_v25, %v5352_v20  ;;  %vm583_vm3 = vcmp.eq.s32.totalorder %v5387_v24, %v5356_v21  ;;  %vm585_vm4 = vcmp.eq.s32.totalorder %v5390_v25, %v5356_v21  ;;  %v5494_v33 = vadd.s32 24, %v5307_v7 }
   0xf   :  { %4392 = vmatpush1.bf16.msk.msra.mxu0 %vm4391_vm12, %v5242_v23  ;;  %vm4442_vm13 = vmpackc.low %vm589_vm7, %vm587_vm6  ;;  %vm582_vm6 = vcmp.eq.s32.totalorder %v5387_v24, %v5360_v22  ;;  %vm584_vm7 = vcmp.eq.s32.totalorder %v5390_v25, %v5360_v22  ;;  %v5517_v34 = vadd.s32 8, %v5307_v7  ;;  %v5540_v35 = vadd.s32 176, %v5307_v7 }
  0x10   :  { %4443 = vmatprep.subr.msk.bf16.mxu1 %vm4442_vm13, %v5242_v23  ;;  %vm4444_vm15 = vmpackc.low %vm588_vm9, %vm586_vm8  ;;  %vm289_vm8 = vcmp.eq.s32.totalorder %v5413_v26, %v5348_v19  ;;  %vm291_vm9 = vcmp.eq.s32.totalorder %v5416_v27, %v5348_v19  ;;  %vm290_vm13 = vcmp.eq.s32.totalorder %v5416_v27, %v5352_v20  ;;  %v5543_v36 = vadd.s32 184, %v5307_v7 }
  0x11   :  { %4445 = vmatpush1.bf16.msk.msra.mxu1 %vm4444_vm15, %v5242_v23  ;;  %vm4393_vm5 = vmpackc.low %vm295_vm11, %vm293_vm10  ;;  %vm288_vm11 = vcmp.eq.s32.totalorder %v5413_v26, %v5352_v20  ;;  %vm581_vm15 = vcmp.eq.s32.totalorder %v5416_v27, %v5356_v21  ;;  %v5566_v37 = vadd.s32 160, %v5307_v7  ;;  %v5569_v38 = vadd.s32 168, %v5307_v7 }
  0x12   :  { %4394 = vmatprep.subr.msk.bf16.mxu0 %vm4393_vm5, %v5242_v23  ;;  %vm4395_vm12 = vmpackc.low %vm294_vm1, %vm292_vm14  ;;  %vm579_vm1 = vcmp.eq.s32.totalorder %v5413_v26, %v5356_v21  ;;  %v5592_v39 = vadd.s32 144, %v5307_v7  ;;  %v5595_v40 = vadd.s32 152, %v5307_v7  ;;  %v5618_v41 = vadd.s32 128, %v5307_v7 }
  0x13   :  { %4396 = vmatpush1.bf16.msk.msra.mxu0 %vm4395_vm12, %v5242_v23  ;;  %vm4446_vm10 = vmpackc.low %vm585_vm4, %vm583_vm3  ;;  %vm578_vm3 = vcmp.eq.s32.totalorder %v5413_v26, %v5360_v22  ;;  %vm580_vm4 = vcmp.eq.s32.totalorder %v5416_v27, %v5360_v22  ;;  %v5621_v42 = vadd.s32 136, %v5307_v7  ;;  %v440_v48 = vrot.slane %v5673_v45, %v5334_v15 }
  0x14   :  { %4447 = vmatprep.subr.msk.bf16.mxu1 %vm4446_vm10, %v5242_v23  ;;  %vm4448_vm14 = vmpackc.low %vm584_vm7, %vm582_vm6  ;;  %vm285_vm6 = vcmp.eq.s32.totalorder %v5439_v28, %v5348_v19  ;;  %vm287_vm7 = vcmp.eq.s32.totalorder %v5442_v29, %v5348_v19  ;;  %vm286_vm10 = vcmp.eq.s32.totalorder %v5442_v29, %v5352_v20  ;;  %v726_v49 = vrot.slane %v5673_v45, %v5337_v16 }
  0x15   :  { %4449 = vmatpush1.bf16.msk.msra.mxu1 %vm4448_vm14, %v5242_v23  ;;  %vm4397_vm5 = vmpackc.low %vm291_vm9, %vm289_vm8  ;;  %vm284_vm9 = vcmp.eq.s32.totalorder %v5439_v28, %v5352_v20  ;;  %vm577_vm14 = vcmp.eq.s32.totalorder %v5442_v29, %v5356_v21  ;;  %v444_v50 = vrot.slane %v5680_v47, %v5334_v15  ;;  %v5689_v51 = vsub.s32 2, %v5307_v7 }
  0x16   :  { %4398 = vmatprep.subr.msk.bf16.mxu0 %vm4397_vm5, %v5242_v23  ;;  %vm4399_vm12 = vmpackc.low %vm290_vm13, %vm288_vm11  ;;  %vm575_vm13 = vcmp.eq.s32.totalorder %v5439_v28, %v5356_v21  ;;  %v730_v55 = vrot.slane %v5680_v47, %v5337_v16 }
  0x17   :  { %4400 = vmatpush1.bf16.msk.msra.mxu0 %vm4399_vm12, %v5242_v23  ;;  %vm4450_vm8 = vmpackc.low %vm581_vm15, %vm579_vm1  ;;  %vm574_vm1 = vcmp.eq.s32.totalorder %v5439_v28, %v5360_v22  ;;  %vm576_vm15 = vcmp.eq.s32.totalorder %v5442_v29, %v5360_v22  ;;  %v5703_v63 = vrot.slane %v5318_v10, %v5689_v51 }
  0x18   :  { %4451 = vmatprep.subr.msk.bf16.mxu1 %vm4450_vm8, %v5242_v23  ;;  %vm4452_vm11 = vmpackc.low %vm580_vm4, %vm578_vm3  ;;  %vm281_vm3 = vcmp.eq.s32.totalorder %v5465_v30, %v5348_v19  ;;  %vm283_vm4 = vcmp.eq.s32.totalorder %v5468_v31, %v5348_v19  ;;  %vm282_vm8 = vcmp.eq.s32.totalorder %v5468_v31, %v5352_v20 }
  0x19   :  { %4453 = vmatpush1.bf16.msk.msra.mxu1 %vm4452_vm11, %v5242_v23  ;;  %vm4401_vm5 = vmpackc.low %vm287_vm7, %vm285_vm6  ;;  %vm280_vm7 = vcmp.eq.s32.totalorder %v5465_v30, %v5352_v20  ;;  %vm573_vm11 = vcmp.eq.s32.totalorder %v5468_v31, %v5356_v21 }
  0x1a   :  { %4402 = vmatprep.subr.msk.bf16.mxu0 %vm4401_vm5, %v5242_v23  ;;  %vm4403_vm12 = vmpackc.low %vm286_vm10, %vm284_vm9  ;;  %vm571_vm10 = vcmp.eq.s32.totalorder %v5465_v30, %v5356_v21 }
  0x1b   :  { %4404 = vmatpush1.bf16.msk.msra.mxu0 %vm4403_vm12, %v5242_v23  ;;  %vm4454_vm6 = vmpackc.low %vm577_vm14, %vm575_vm13  ;;  %vm570_vm13 = vcmp.eq.s32.totalorder %v5465_v30, %v5360_v22  ;;  %vm572_vm14 = vcmp.eq.s32.totalorder %v5468_v31, %v5360_v22 }
  0x1c   :  { %4455 = vmatprep.subr.msk.bf16.mxu1 %vm4454_vm6, %v5242_v23  ;;  %vm4456_vm9 = vmpackc.low %vm576_vm15, %vm574_vm1  ;;  %vm277_vm1 = vcmp.eq.s32.totalorder %v5491_v32, %v5348_v19  ;;  %vm279_vm15 = vcmp.eq.s32.totalorder %v5494_v33, %v5348_v19  ;;  %vm278_vm6 = vcmp.eq.s32.totalorder %v5494_v33, %v5352_v20 }
  0x1d   :  { %4457 = vmatpush1.bf16.msk.msra.mxu1 %vm4456_vm9, %v5242_v23  ;;  %vm4405_vm5 = vmpackc.low %vm283_vm4, %vm281_vm3  ;;  %vm276_vm4 = vcmp.eq.s32.totalorder %v5491_v32, %v5352_v20  ;;  %vm569_vm9 = vcmp.eq.s32.totalorder %v5494_v33, %v5356_v21 }
  0x1e   :  { %4406 = vmatprep.subr.msk.bf16.mxu0 %vm4405_vm5, %v5242_v23  ;;  %vm4407_vm12 = vmpackc.low %vm282_vm8, %vm280_vm7  ;;  %vm567_vm8 = vcmp.eq.s32.totalorder %v5491_v32, %v5356_v21 }
  0x1f   :  { %4408 = vmatpush1.bf16.msk.msra.mxu0 %vm4407_vm12, %v5242_v23  ;;  %vm4458_vm3 = vmpackc.low %vm573_vm11, %vm571_vm10  ;;  %vm566_vm10 = vcmp.eq.s32.totalorder %v5491_v32, %v5360_v22  ;;  %vm568_vm11 = vcmp.eq.s32.totalorder %v5494_v33, %v5360_v22 }
  0x20   :  { %4459 = vmatprep.subr.msk.bf16.mxu1 %vm4458_vm3, %v5242_v23  ;;  %vm4460_vm7 = vmpackc.low %vm572_vm14, %vm570_vm13  ;;  %vm273_vm13 = vcmp.eq.s32.totalorder %v5307_v7, %v5348_v19  ;;  %vm275_vm14 = vcmp.eq.s32.totalorder %v5517_v34, %v5348_v19  ;;  %vm274_vm3 = vcmp.eq.s32.totalorder %v5517_v34, %v5352_v20 }
  0x21   :  { %4461 = vmatpush1.bf16.msk.msra.mxu1 %vm4460_vm7, %v5242_v23  ;;  %vm4409_vm5 = vmpackc.low %vm279_vm15, %vm277_vm1  ;;  %vm272_vm15 = vcmp.eq.s32.totalorder %v5307_v7, %v5352_v20  ;;  %vm565_vm7 = vcmp.eq.s32.totalorder %v5517_v34, %v5356_v21 }
  0x22   :  { %4410 = vmatprep.subr.msk.bf16.mxu0 %vm4409_vm5, %v5242_v23  ;;  %vm4411_vm12 = vmpackc.low %vm278_vm6, %vm276_vm4  ;;  %vm563_vm6 = vcmp.eq.s32.totalorder %v5307_v7, %v5356_v21 }
  0x23   :  { %4412 = vmatpush1.bf16.msk.msra.mxu0 %vm4411_vm12, %v5242_v23  ;;  %vm4462_vm1 = vmpackc.low %vm569_vm9, %vm567_vm8  ;;  %vm562_vm8 = vcmp.eq.s32.totalorder %v5307_v7, %v5360_v22  ;;  %vm564_vm9 = vcmp.eq.s32.totalorder %v5517_v34, %v5360_v22 }
  0x24   :  { %4463 = vmatprep.subr.msk.bf16.mxu1 %vm4462_vm1, %v5242_v23  ;;  %vm4464_vm4 = vmpackc.low %vm568_vm11, %vm566_vm10  ;;  %vm317_vm10 = vcmp.eq.s32.totalorder %v5540_v35, %v5348_v19  ;;  %vm319_vm11 = vcmp.eq.s32.totalorder %v5543_v36, %v5348_v19  ;;  %vm318_vm1 = vcmp.eq.s32.totalorder %v5543_v36, %v5352_v20 }
  0x25   :  { %4465 = vmatpush1.bf16.msk.msra.mxu1 %vm4464_vm4, %v5242_v23  ;;  %vm4413_vm5 = vmpackc.low %vm275_vm14, %vm273_vm13  ;;  %vm316_vm14 = vcmp.eq.s32.totalorder %v5540_v35, %v5352_v20  ;;  %vm609_vm4 = vcmp.eq.s32.totalorder %v5543_v36, %v5356_v21 }
  0x26   :  { %4414 = vmatprep.subr.msk.bf16.mxu0 %vm4413_vm5, %v5242_v23  ;;  %vm4415_vm12 = vmpackc.low %vm274_vm3, %vm272_vm15  ;;  %vm607_vm3 = vcmp.eq.s32.totalorder %v5540_v35, %v5356_v21 }
  0x27   :  { %4416 = vmatpush1.bf16.msk.msra.mxu0 %vm4415_vm12, %v5242_v23  ;;  %vm4466_vm13 = vmpackc.low %vm565_vm7, %vm563_vm6  ;;  %vm606_vm6 = vcmp.eq.s32.totalorder %v5540_v35, %v5360_v22  ;;  %vm608_vm7 = vcmp.eq.s32.totalorder %v5543_v36, %v5360_v22 }
  0x28   :  { %4467 = vmatprep.subr.msk.bf16.mxu1 %vm4466_vm13, %v5242_v23  ;;  %vm4468_vm15 = vmpackc.low %vm564_vm9, %vm562_vm8  ;;  %vm313_vm8 = vcmp.eq.s32.totalorder %v5566_v37, %v5348_v19  ;;  %vm315_vm9 = vcmp.eq.s32.totalorder %v5569_v38, %v5348_v19  ;;  %vm314_vm13 = vcmp.eq.s32.totalorder %v5569_v38, %v5352_v20 }
  0x29   :  { %4469 = vmatpush1.bf16.msk.msra.mxu1 %vm4468_vm15, %v5242_v23  ;;  %vm4417_vm5 = vmpackc.low %vm319_vm11, %vm317_vm10  ;;  %vm312_vm11 = vcmp.eq.s32.totalorder %v5566_v37, %v5352_v20  ;;  %vm605_vm15 = vcmp.eq.s32.totalorder %v5569_v38, %v5356_v21 }
  0x2a   :  { %4418 = vmatprep.subr.msk.bf16.mxu0 %vm4417_vm5, %v5242_v23  ;;  %vm4419_vm12 = vmpackc.low %vm318_vm1, %vm316_vm14  ;;  %vm603_vm1 = vcmp.eq.s32.totalorder %v5566_v37, %v5356_v21 }
  0x2b   :  { %4420 = vmatpush2.bf16.msk.msra.mxu0 %vm4419_vm12, %v5242_v23  ;;  %vm4470_vm10 = vmpackc.low %vm609_vm4, %vm607_vm3  ;;  %vm602_vm3 = vcmp.eq.s32.totalorder %v5566_v37, %v5360_v22  ;;  %vm604_vm4 = vcmp.eq.s32.totalorder %v5569_v38, %v5360_v22 }
  0x2c   :  { %4471 = vmatprep.subr.msk.bf16.mxu1 %vm4470_vm10, %v5242_v23  ;;  %vm4472_vm14 = vmpackc.low %vm608_vm7, %vm606_vm6  ;;  %vm309_vm6 = vcmp.eq.s32.totalorder %v5592_v39, %v5348_v19  ;;  %vm311_vm7 = vcmp.eq.s32.totalorder %v5595_v40, %v5348_v19  ;;  %vm310_vm10 = vcmp.eq.s32.totalorder %v5595_v40, %v5352_v20 }
  0x2d   :  { %4473 = vmatpush2.bf16.msk.msra.mxu1 %vm4472_vm14, %v5242_v23  ;;  %vm4421_vm5 = vmpackc.low %vm315_vm9, %vm313_vm8  ;;  %vm308_vm9 = vcmp.eq.s32.totalorder %v5592_v39, %v5352_v20  ;;  %vm601_vm14 = vcmp.eq.s32.totalorder %v5595_v40, %v5356_v21 }
  0x2e   :  { %4422 = vmatprep.subr.msk.bf16.mxu0 %vm4421_vm5, %v5242_v23  ;;  %vm4423_vm12 = vmpackc.low %vm314_vm13, %vm312_vm11  ;;  %vm599_vm13 = vcmp.eq.s32.totalorder %v5592_v39, %v5356_v21 }
  0x2f   :  { %4424 = vmatpush2.bf16.msk.msra.mxu0 %vm4423_vm12, %v5242_v23  ;;  %vm4474_vm8 = vmpackc.low %vm605_vm15, %vm603_vm1  ;;  %vm598_vm1 = vcmp.eq.s32.totalorder %v5592_v39, %v5360_v22  ;;  %vm600_vm15 = vcmp.eq.s32.totalorder %v5595_v40, %v5360_v22 }
  0x30   :  { %4475 = vmatprep.subr.msk.bf16.mxu1 %vm4474_vm8, %v5242_v23  ;;  %vm4476_vm11 = vmpackc.low %vm604_vm4, %vm602_vm3  ;;  %vm305_vm3 = vcmp.eq.s32.totalorder %v5618_v41, %v5348_v19  ;;  %vm307_vm4 = vcmp.eq.s32.totalorder %v5621_v42, %v5348_v19  ;;  %v75_v19 = vpack.c.bf16 %v59_v62, %v58_v61 }
  0x31   :  { %4477 = vmatpush2.bf16.msk.msra.mxu1 %vm4476_vm11, %v5242_v23  ;;  %vm4425_vm5 = vmpackc.low %vm311_vm7, %vm309_vm6  ;;  %vm304_vm6 = vcmp.eq.s32.totalorder %v5618_v41, %v5352_v20  ;;  %vm306_vm7 = vcmp.eq.s32.totalorder %v5621_v42, %v5352_v20 }
  0x32   :  { %4426 = vmatprep.subr.msk.bf16.mxu0 %vm4425_vm5, %v5242_v23  ;;  %vm4427_vm12 = vmpackc.low %vm310_vm10, %vm308_vm9  ;;  %vm595_vm9 = vcmp.eq.s32.totalorder %v5618_v41, %v5356_v21  ;;  %vm597_vm10 = vcmp.eq.s32.totalorder %v5621_v42, %v5356_v21 }
  0x33   :  { %4428 = vmatpush2.bf16.msk.msra.mxu0 %vm4427_vm12, %v5242_v23  ;;  %vm4478_vm8 = vmpackc.low %vm601_vm14, %vm599_vm13  ;;  %vm594_vm13 = vcmp.eq.s32.totalorder %v5618_v41, %v5360_v22  ;;  %vm596_vm14 = vcmp.eq.s32.totalorder %v5621_v42, %v5360_v22 }
  0x34   :  { %4479 = vmatprep.subr.msk.bf16.mxu1 %vm4478_vm8, %v5242_v23  ;;  %vm4480_vm11 = vmpackc.low %vm600_vm15, %vm598_vm1 }
  0x35   :  { %4481 = vmatpush2.bf16.msk.msra.mxu1 %vm4480_vm11, %v5242_v23  ;;  %vm4429_vm5 = vmpackc.low %vm307_vm4, %vm305_vm3  ;;  %vm828_vm3 = vcmp.eq.s32.totalorder %v5328_v13, %v5703_v63  ;;  %vm830_vm4 = vcmp.eq.s32.totalorder %v5331_v14, %v5703_v63  ;;  %vm824_vm11 = vcmp.eq.s32.totalorder %v5341_v17, %v5703_v63 }
  0x36   :  { %4430 = vmatprep.subr.msk.bf16.mxu0 %vm4429_vm5, %v5242_v23  ;;  %vm4431_vm12 = vmpackc.low %vm306_vm7, %vm304_vm6 }
  0x37   :  { %4432 = vmatpush2.bf16.msk.msra.mxu0 %vm4431_vm12, %v5242_v23  ;;  %vm4482_vm1 = vmpackc.low %vm597_vm10, %vm595_vm9  ;;  %vm826_vm9 = vcmp.eq.s32.totalorder %v5344_v18, %v5703_v63  ;;  %vm820_vm12 = vcmp.eq.s32.totalorder %v5387_v24, %v5703_v63 }
  0x38   :  { %4483 = vmatprep.subr.msk.bf16.mxu1 %vm4482_vm1, %v5242_v23  ;;  %vm4484_vm15 = vmpackc.low %vm596_vm14, %vm594_vm13  ;;  %vm822_vm1 = vcmp.eq.s32.totalorder %v5390_v25, %v5703_v63 }
  0x39   :  { %4485 = vmatpush2.bf16.msk.msra.mxu1 %vm4484_vm15, %v5242_v23  ;;  %vm4489_vm8 = vmpackc.low %vm830_vm4, %vm828_vm3  ;;  %vm8349_vm15 = vcmask 523264  }
  0x3a   :  { %429 = vmatmul.mubr.bf16.vlgmr.msra.gmra.mxu0 %v5299_v4  ;;  %vm4493_vm5 = vmpackc.low %vm826_vm9, %vm824_vm11  ;;  %vm818_vm11 = vcmp.eq.s32.totalorder %v5416_v27, %v5703_v63 }
  0x3b   :  { %492 = vmatprep.mubr.bf16.mxu0 %v5241_v8  ;;  %vm4497_vm4 = vmpackc.low %vm822_vm1, %vm820_vm12  ;;  %vm814_vm12 = vcmp.eq.s32.totalorder %v5442_v29, %v5703_v63 }
  0x3c   :  { %715 = vmatmul.mubr.bf16.vlgmr.msra.gmra.mxu1 %v5299_v4 }
  0x3d   :  { %1013 = vmatprep.mubr.bf16.mxu1 %v5241_v8 }
  0xc8   :  { %v5666_v43 = vpop.f32.mrf.mxu1 }
  0xca   :  { %v5668_v44 = vpop.f32.mrf.mxu1 }
  0xcc   :  { %v5675_v46 = vpop.f32.mrf.mxu1 }
  0xce   :  { %v5691_v52 = vpop.f32.mrf.mxu1 }
  0xfa   :  { %v430_v53 = vpop.f32.mrf.mxu0 }
  0xfb   :  { %v445_v54 = vmul.f32 %v440_v48, %v430_v53  ;;  %v61_v53 = vld [vmem:[%s8342_s3 + $0x28] sm:$0xff] }
  0xfc   :  { %v716_v56 = vpop.f32.mrf.mxu1  ;;  %v432_v57 = vpop.f32.mrf.mxu0 }
  0xfd   :  { %v447_v58 = vpack.c.bf16 %v445_v54, %v445_v54  ;;  %v731_v59 = vmul.f32 %v726_v49, %v716_v56  ;;  %v446_v60 = vmul.f32 %v444_v50, %v432_v57  ;;  %v5715_v49 = vrot.slane %v5323_v11, %v5689_v51  ;;  %v60_v50 = vld [vmem:[%s8342_s3 + $0x20] sm:$0xff] }
  0xfe   :  { %v718_v0 = vpop.f32.mrf.mxu1  ;;  %v434_v1 = vpop.f32.mrf.mxu0  ;;  %v76_v54 = vpack.c.bf16 %v61_v53, %v60_v50  ;;  %v63_v53 = vld [vmem:[%s8342_s3 + $0x38] sm:$0xff] }
  0xff   :  { %v733_v2 = vpack.c.bf16 %v731_v59, %v731_v59  ;;  %v448_v5 = vpack.c.bf16 %v446_v60, %v446_v60  ;;  %v732_v6 = vmul.f32 %v730_v55, %v718_v0  ;;  %v455_v20 = vsel %vm453_vm0, %v447_v58, 0 }
 0x100   :  { %v720_v9 = vpop.f32.mrf.mxu1  ;;  %v435_v12 = vpop.f32.mrf.mxu0  ;;  %vm827_vm6 = vcmp.eq.s32.totalorder %v5328_v13, %v5715_v49  ;;  %vm829_vm7 = vcmp.eq.s32.totalorder %v5331_v14, %v5715_v49  ;;  %vm823_vm13 = vcmp.eq.s32.totalorder %v5341_v17, %v5715_v49  ;;  %vm825_vm14 = vcmp.eq.s32.totalorder %v5344_v18, %v5715_v49 }
 0x101   :  { %v734_v21 = vpack.c.bf16 %v732_v6, %v732_v6  ;;  %4434 = vmatprep.subr.msk.bf16.mxu0 %vm453_vm0, %v448_v5  ;;  %v739_v48 = vsel %vm453_vm0, %v733_v2, 0  ;;  %vm4491_vm10 = vmpackc.low %vm829_vm7, %vm827_vm6  ;;  %vm821_vm6 = vcmp.eq.s32.totalorder %v5390_v25, %v5715_v49  ;;  %vm816_vm7 = vcmp.eq.s32.totalorder %v5413_v26, %v5703_v63 }
 0x102   :  { %v721_v22 = vpop.f32.mrf.mxu1  ;;  %475 = vmatpush1.bf16.msra.mxu0 %v455_v20  ;;  %vm4495_vm3 = vmpackc.low %vm825_vm14, %vm823_vm13  ;;  %vm817_vm13 = vcmp.eq.s32.totalorder %v5416_v27, %v5715_v49  ;;  %vm812_vm14 = vcmp.eq.s32.totalorder %v5439_v28, %v5703_v63 }
 0x103   :  { %4487 = vmatprep.subr.msk.bf16.mxu0 %vm453_vm0, %v734_v21 }
 0x105   :  { %4435 = vmatmul.mubr.msk.bf16.vlgmr.msra.gmra.mxu0 %vm449_vm2, %v75_v19  ;;  %v967_v19 = vrot.slane %v5680_v47, %v5689_v51 }
 0x106   :  { %759 = vmatpush1.bf16.msra.mxu0 %v739_v48  ;;  %776 = vmatprep.mubr.bf16.mxu0 %v5241_v8 }
 0x107   :  { %4490 = vmatprep.subr.msk.bf16.mxu0 %vm4489_vm8, %v5242_v23  ;;  %vm819_vm8 = vcmp.eq.s32.totalorder %v5387_v24, %v5715_v49 }
 0x108   :  { %vm4499_vm9 = vmpackc.low %vm821_vm6, %vm819_vm8  ;;  %vm808_vm8 = vcmp.eq.s32.totalorder %v5465_v30, %v5703_v63  ;;  %vm810_vm6 = vcmp.eq.s32.totalorder %v5468_v31, %v5703_v63 }
 0x10d   :  { %4488 = vmatmul.mubr.msk.bf16.vlgmr.msra.gmra.mxu0 %vm449_vm2, %v76_v54 }
 0x10e   :  { %4492 = vmatpush1.bf16.msk.msra.mxu0 %vm4491_vm10, %v5242_v23  ;;  %4537 = vmatprep.mubr.msk.bf16.mxu0 %vm8349_vm15, %v5297_v3  ;;  %vm4501_vm10 = vmpackc.low %vm818_vm11, %vm816_vm7 }
 0x10f   :  { %4494 = vmatprep.subr.msk.bf16.mxu0 %vm4493_vm5, %v5242_v23  ;;  %vm815_vm5 = vcmp.eq.s32.totalorder %v5413_v26, %v5715_v49  ;;  %vm4505_vm15 = vmpackc.low %vm814_vm12, %vm812_vm14 }
 0x110   :  { %vm4503_vm1 = vmpackc.low %vm817_vm13, %vm815_vm5  ;;  %vm804_vm5 = vcmp.eq.s32.totalorder %v5491_v32, %v5703_v63  ;;  %vm806_vm13 = vcmp.eq.s32.totalorder %v5494_v33, %v5703_v63 }
 0x111   :  { %vm4509_vm11 = vmpackc.low %vm810_vm6, %vm808_vm8 }
 0x112   :  { %4496 = vmatpush1.bf16.msk.msra.mxu0 %vm4495_vm3, %v5242_v23  ;;  %vm811_vm3 = vcmp.eq.s32.totalorder %v5439_v28, %v5715_v49  ;;  %vm4513_vm12 = vmpackc.low %vm806_vm13, %vm804_vm5 }
 0x113   :  { %4498 = vmatprep.subr.msk.bf16.mxu0 %vm4497_vm4, %v5242_v23  ;;  %vm813_vm4 = vcmp.eq.s32.totalorder %v5442_v29, %v5715_v49 }
 0x114   :  { %vm4507_vm7 = vmpackc.low %vm813_vm4, %vm811_vm3  ;;  %vm800_vm3 = vcmp.eq.s32.totalorder %v5307_v7, %v5703_v63  ;;  %vm802_vm4 = vcmp.eq.s32.totalorder %v5517_v34, %v5703_v63 }
 0x115   :  { %vm4517_vm6 = vmpackc.low %vm802_vm4, %vm800_vm3 }
 0x116   :  { %4500 = vmatpush1.bf16.msk.msra.mxu0 %vm4499_vm9, %v5242_v23  ;;  %vm807_vm9 = vcmp.eq.s32.totalorder %v5465_v30, %v5715_v49 }
 0x117   :  { %4502 = vmatprep.subr.msk.bf16.mxu0 %vm4501_vm10, %v5242_v23  ;;  %vm809_vm10 = vcmp.eq.s32.totalorder %v5468_v31, %v5715_v49 }
 0x118   :  { %vm4511_vm14 = vmpackc.low %vm809_vm10, %vm807_vm9  ;;  %vm844_vm9 = vcmp.eq.s32.totalorder %v5540_v35, %v5703_v63  ;;  %vm846_vm10 = vcmp.eq.s32.totalorder %v5543_v36, %v5703_v63 }
 0x119   :  { %vm4521_vm13 = vmpackc.low %vm846_vm10, %vm844_vm9 }
 0x11a   :  { %4504 = vmatpush1.bf16.msk.msra.mxu0 %vm4503_vm1, %v5242_v23  ;;  %vm803_vm1 = vcmp.eq.s32.totalorder %v5491_v32, %v5715_v49 }
 0x11b   :  { %4506 = vmatprep.subr.msk.bf16.mxu0 %vm4505_vm15, %v5242_v23  ;;  %vm805_vm15 = vcmp.eq.s32.totalorder %v5494_v33, %v5715_v49 }
 0x11c   :  { %vm4515_vm8 = vmpackc.low %vm805_vm15, %vm803_vm1  ;;  %vm840_vm1 = vcmp.eq.s32.totalorder %v5566_v37, %v5703_v63  ;;  %vm842_vm15 = vcmp.eq.s32.totalorder %v5569_v38, %v5703_v63 }
 0x11d   :  { %vm4525_vm4 = vmpackc.low %vm842_vm15, %vm840_vm1 }
 0x11e   :  { %4508 = vmatpush1.bf16.msk.msra.mxu0 %vm4507_vm7, %v5242_v23  ;;  %vm799_vm7 = vcmp.eq.s32.totalorder %v5307_v7, %v5715_v49 }
 0x11f   :  { %4510 = vmatprep.subr.msk.bf16.mxu0 %vm4509_vm11, %v5242_v23  ;;  %vm801_vm11 = vcmp.eq.s32.totalorder %v5517_v34, %v5715_v49 }
 0x120   :  { %vm4519_vm5 = vmpackc.low %vm801_vm11, %vm799_vm7  ;;  %vm836_vm7 = vcmp.eq.s32.totalorder %v5592_v39, %v5703_v63  ;;  %vm838_vm11 = vcmp.eq.s32.totalorder %v5595_v40, %v5703_v63 }
 0x121   :  { %vm4529_vm10 = vmpackc.low %vm838_vm11, %vm836_vm7 }
 0x122   :  { %4512 = vmatpush1.bf16.msk.msra.mxu0 %vm4511_vm14, %v5242_v23  ;;  %vm843_vm14 = vcmp.eq.s32.totalorder %v5540_v35, %v5715_v49 }
 0x123   :  { %4514 = vmatprep.subr.msk.bf16.mxu0 %vm4513_vm12, %v5242_v23  ;;  %vm845_vm12 = vcmp.eq.s32.totalorder %v5543_v36, %v5715_v49 }
 0x124   :  { %vm4523_vm3 = vmpackc.low %vm845_vm12, %vm843_vm14  ;;  %vm832_vm14 = vcmp.eq.s32.totalorder %v5618_v41, %v5703_v63  ;;  %vm834_vm12 = vcmp.eq.s32.totalorder %v5621_v42, %v5703_v63 }
 0x125   :  { %vm4533_vm15 = vmpackc.low %vm834_vm12, %vm832_vm14 }
 0x126   :  { %4516 = vmatpush1.bf16.msk.msra.mxu0 %vm4515_vm8, %v5242_v23  ;;  %vm839_vm8 = vcmp.eq.s32.totalorder %v5566_v37, %v5715_v49 }
 0x127   :  { %4518 = vmatprep.subr.msk.bf16.mxu0 %vm4517_vm6, %v5242_v23  ;;  %vm841_vm6 = vcmp.eq.s32.totalorder %v5569_v38, %v5715_v49 }
 0x128   :  { %vm4527_vm9 = vmpackc.low %vm841_vm6, %vm839_vm8 }
 0x12a   :  { %4520 = vmatpush1.bf16.msk.msra.mxu0 %vm4519_vm5, %v5242_v23  ;;  %vm835_vm5 = vcmp.eq.s32.totalorder %v5592_v39, %v5715_v49 }
 0x12b   :  { %4522 = vmatprep.subr.msk.bf16.mxu0 %vm4521_vm13, %v5242_v23  ;;  %vm837_vm13 = vcmp.eq.s32.totalorder %v5595_v40, %v5715_v49 }
 0x12c   :  { %vm4531_vm1 = vmpackc.low %vm837_vm13, %vm835_vm5 }
 0x12e   :  { %4524 = vmatpush2.bf16.msk.msra.mxu0 %vm4523_vm3, %v5242_v23  ;;  %vm831_vm3 = vcmp.eq.s32.totalorder %v5618_v41, %v5715_v49 }
 0x12f   :  { %4526 = vmatprep.subr.msk.bf16.mxu0 %vm4525_vm4, %v5242_v23  ;;  %vm833_vm4 = vcmp.eq.s32.totalorder %v5621_v42, %v5715_v49 }
 0x130   :  { %vm4535_vm8 = vmpackc.low %vm833_vm4, %vm831_vm3 }
 0x132   :  { %4528 = vmatpush2.bf16.msk.msra.mxu0 %vm4527_vm9, %v5242_v23 }
 0x133   :  { %4530 = vmatprep.subr.msk.bf16.mxu0 %vm4529_vm10, %v5242_v23 }
 0x136   :  { %4532 = vmatpush2.bf16.msk.msra.mxu0 %vm4531_vm1, %v5242_v23 }
 0x137   :  { %4534 = vmatprep.subr.msk.bf16.mxu0 %vm4533_vm15, %v5242_v23 }
 0x13a   :  { %4536 = vmatpush2.bf16.msk.msra.mxu0 %vm4535_vm8, %v5242_v23  ;;  %vm8350_vm8 = vcmask 523264  }
 0x13d   :  { %952 = vmatmul.mubr.bf16.vlgmr.msra.gmra.mxu0 %v5299_v4 }
 0x13e   :  { %1250 = vmatprep.mubr.bf16.mxu0 %v5241_v8 }
 0x1c5   :  { %v494_v55 = vpop.f32.mrf.mxu0 }
 0x1c6   :  { %v546_v59 = vadd.f32 %v5666_v43, %v494_v55  ;;  %v5859_v43 = vsub.s32 3, %v5307_v7 }
 0x1c7   :  { %v496_v56 = vpop.f32.mrf.mxu0 }
 0x1c8   :  { %v548_v61 = vadd.f32 %v5668_v44, %v496_v56  ;;  %v963_v44 = vrot.slane %v5673_v45, %v5689_v51  ;;  %v5871_v22 = vrot.slane %v5323_v11, %v5859_v43 }
 0x1c9   :  { %v498_v57 = vpop.f32.mrf.mxu0 }
 0x1ca   :  { %v550_v0 = vadd.f32 %v5675_v46, %v498_v57  ;;  %v5867_v46 = vrot.slane %v5318_v10, %v5859_v43  ;;  %v62_v10 = vld [vmem:[%s8342_s3 + $0x30] sm:$0xff]  ;;  %vm1064_vm9 = vcmp.eq.s32.totalorder %v5328_v13, %v5871_v22  ;;  %vm1066_vm10 = vcmp.eq.s32.totalorder %v5331_v14, %v5871_v22 }
 0x1cb   :  { %v500_v58 = vpop.f32.mrf.mxu0  ;;  %v77_v56 = vpack.c.bf16 %v63_v53, %v62_v10  ;;  %vm4542_vm14 = vmpackc.low %vm1066_vm10, %vm1064_vm9  ;;  %vm1060_vm1 = vcmp.eq.s32.totalorder %v5341_v17, %v5871_v22  ;;  %vm1062_vm15 = vcmp.eq.s32.totalorder %v5344_v18, %v5871_v22  ;;  %vm1058_vm9 = vcmp.eq.s32.totalorder %v5390_v25, %v5871_v22 }
 0x1cc   :  { %v552_v5 = vadd.f32 %v5691_v52, %v500_v58  ;;  %vm1065_vm6 = vcmp.eq.s32.totalorder %v5328_v13, %v5867_v46  ;;  %vm1067_vm7 = vcmp.eq.s32.totalorder %v5331_v14, %v5867_v46  ;;  %vm1061_vm5 = vcmp.eq.s32.totalorder %v5341_v17, %v5867_v46 }
 0x1cd   :  { %v778_v60 = vpop.f32.mrf.mxu0  ;;  %vm4540_vm11 = vmpackc.low %vm1067_vm7, %vm1065_vm6  ;;  %vm1063_vm13 = vcmp.eq.s32.totalorder %v5344_v18, %v5867_v46  ;;  %vm1057_vm3 = vcmp.eq.s32.totalorder %v5387_v24, %v5867_v46  ;;  %vm1059_vm4 = vcmp.eq.s32.totalorder %v5390_v25, %v5867_v46  ;;  %vm1053_vm10 = vcmp.eq.s32.totalorder %v5413_v26, %v5867_v46 }
 0x1ce   :  { %v5848_v62 = vadd.f32 %v778_v60, %v546_v59  ;;  %vm4544_vm12 = vmpackc.low %vm1063_vm13, %vm1061_vm5  ;;  %vm1055_vm5 = vcmp.eq.s32.totalorder %v5416_v27, %v5867_v46 }
 0x1cf   :  { %v780_v63 = vpop.f32.mrf.mxu0  ;;  %vm4546_vm6 = vmpackc.low %vm1062_vm15, %vm1060_vm1  ;;  %vm1054_vm1 = vcmp.eq.s32.totalorder %v5416_v27, %v5871_v22  ;;  %vm1049_vm15 = vcmp.eq.s32.totalorder %v5439_v28, %v5867_v46 }
 0x1d0   :  { %v5851_v1 = vadd.f32 %v780_v63, %v548_v61  ;;  %vm4548_vm7 = vmpackc.low %vm1059_vm4, %vm1057_vm3  ;;  %vm1051_vm3 = vcmp.eq.s32.totalorder %v5442_v29, %v5867_v46 }
 0x1d1   :  { %v782_v2 = vpop.f32.mrf.mxu0 }
 0x1d2   :  { %v5854_v6 = vadd.f32 %v782_v2, %v550_v0 }
 0x1d3   :  { %v784_v9 = vpop.f32.mrf.mxu0 }
 0x1d4   :  { %v5856_v12 = vadd.f32 %v784_v9, %v552_v5  ;;  %v6019_v5 = vsub.s32 4, %v5307_v7  ;;  %v1200_v9 = vrot.slane %v5673_v45, %v5859_v43 }
 0x1fd   :  { %v953_v20 = vpop.f32.mrf.mxu0 }
 0x1fe   :  { %v968_v52 = vmul.f32 %v963_v44, %v953_v20 }
 0x1ff   :  { %v955_v21 = vpop.f32.mrf.mxu0 }
 0x200   :  { %v970_v48 = vpack.c.bf16 %v968_v52, %v968_v52  ;;  %v969_v49 = vmul.f32 %v967_v19, %v955_v21 }
 0x201   :  { %v957_v50 = vpop.f32.mrf.mxu0 }
 0x202   :  { %v971_v54 = vpack.c.bf16 %v969_v49, %v969_v49  ;;  %v976_v55 = vsel %vm453_vm0, %v970_v48, 0  ;;  %v64_v48 = vld [vmem:[%s8342_s3 + $0x40] sm:$0xff]  ;;  %v65_v49 = vld [vmem:[%s8342_s3 + $0x48] sm:$0xff] }
 0x203   :  { %v958_v11 = vpop.f32.mrf.mxu0 }
 0x204   :  { %4538 = vmatprep.subr.msk.bf16.mxu1 %vm453_vm0, %v971_v54  ;;  %v78_v54 = vpack.c.bf16 %v65_v49, %v64_v48 }
 0x205   :  { %996 = vmatpush1.bf16.msra.mxu1 %v976_v55 }
 0x206   :  { %4541 = vmatprep.subr.msk.bf16.mxu1 %vm4540_vm11, %v5242_v23  ;;  %vm1056_vm11 = vcmp.eq.s32.totalorder %v5387_v24, %v5871_v22 }
 0x207   :  { %vm4550_vm13 = vmpackc.low %vm1058_vm9, %vm1056_vm11  ;;  %vm1045_vm11 = vcmp.eq.s32.totalorder %v5465_v30, %v5867_v46  ;;  %vm1047_vm9 = vcmp.eq.s32.totalorder %v5468_v31, %v5867_v46 }
 0x208   :  { %4539 = vmatmul.mubr.msk.bf16.vlgmr.msra.gmra.mxu1 %vm449_vm2, %v77_v56 }
 0x209   :  { %4543 = vmatpush1.bf16.msk.msra.mxu1 %vm4542_vm14, %v5242_v23  ;;  %4588 = vmatprep.mubr.msk.bf16.mxu1 %vm8350_vm8, %v5297_v3  ;;  %vm4552_vm14 = vmpackc.low %vm1055_vm5, %vm1053_vm10 }
 0x20a   :  { %4545 = vmatprep.subr.msk.bf16.mxu1 %vm4544_vm12, %v5242_v23  ;;  %vm1052_vm12 = vcmp.eq.s32.totalorder %v5413_v26, %v5871_v22  ;;  %vm4556_vm8 = vmpackc.low %vm1051_vm3, %vm1049_vm15 }
 0x20b   :  { %vm4554_vm4 = vmpackc.low %vm1054_vm1, %vm1052_vm12  ;;  %vm1041_vm12 = vcmp.eq.s32.totalorder %v5491_v32, %v5867_v46  ;;  %vm1043_vm1 = vcmp.eq.s32.totalorder %v5494_v33, %v5867_v46 }
 0x20c   :  { %vm4560_vm5 = vmpackc.low %vm1047_vm9, %vm1045_vm11 }
 0x20d   :  { %4547 = vmatpush1.bf16.msk.msra.mxu1 %vm4546_vm6, %v5242_v23  ;;  %vm1048_vm6 = vcmp.eq.s32.totalorder %v5439_v28, %v5871_v22  ;;  %vm4564_vm3 = vmpackc.low %vm1043_vm1, %vm1041_vm12 }
 0x20e   :  { %4549 = vmatprep.subr.msk.bf16.mxu1 %vm4548_vm7, %v5242_v23  ;;  %vm1050_vm7 = vcmp.eq.s32.totalorder %v5442_v29, %v5871_v22 }
 0x20f   :  { %vm4558_vm10 = vmpackc.low %vm1050_vm7, %vm1048_vm6  ;;  %vm1037_vm6 = vcmp.eq.s32.totalorder %v5307_v7, %v5867_v46  ;;  %vm1039_vm7 = vcmp.eq.s32.totalorder %v5517_v34, %v5867_v46 }
 0x210   :  { %vm4568_vm9 = vmpackc.low %vm1039_vm7, %vm1037_vm6 }
 0x211   :  { %4551 = vmatpush1.bf16.msk.msra.mxu1 %vm4550_vm13, %v5242_v23  ;;  %vm1044_vm13 = vcmp.eq.s32.totalorder %v5465_v30, %v5871_v22 }
 0x212   :  { %4553 = vmatprep.subr.msk.bf16.mxu1 %vm4552_vm14, %v5242_v23  ;;  %vm1046_vm14 = vcmp.eq.s32.totalorder %v5468_v31, %v5871_v22 }
 0x213   :  { %vm4562_vm15 = vmpackc.low %vm1046_vm14, %vm1044_vm13  ;;  %vm1081_vm13 = vcmp.eq.s32.totalorder %v5540_v35, %v5867_v46  ;;  %vm1083_vm14 = vcmp.eq.s32.totalorder %v5543_v36, %v5867_v46 }
 0x214   :  { %vm4572_vm1 = vmpackc.low %vm1083_vm14, %vm1081_vm13 }
 0x215   :  { %4555 = vmatpush1.bf16.msk.msra.mxu1 %vm4554_vm4, %v5242_v23  ;;  %vm1040_vm4 = vcmp.eq.s32.totalorder %v5491_v32, %v5871_v22 }
 0x216   :  { %4557 = vmatprep.subr.msk.bf16.mxu1 %vm4556_vm8, %v5242_v23  ;;  %vm1042_vm8 = vcmp.eq.s32.totalorder %v5494_v33, %v5871_v22 }
 0x217   :  { %vm4566_vm11 = vmpackc.low %vm1042_vm8, %vm1040_vm4  ;;  %vm1077_vm4 = vcmp.eq.s32.totalorder %v5566_v37, %v5867_v46  ;;  %vm1079_vm8 = vcmp.eq.s32.totalorder %v5569_v38, %v5867_v46 }
 0x218   :  { %vm4576_vm7 = vmpackc.low %vm1079_vm8, %vm1077_vm4 }
 0x219   :  { %4559 = vmatpush1.bf16.msk.msra.mxu1 %vm4558_vm10, %v5242_v23  ;;  %vm1036_vm10 = vcmp.eq.s32.totalorder %v5307_v7, %v5871_v22 }
 0x21a   :  { %4561 = vmatprep.subr.msk.bf16.mxu1 %vm4560_vm5, %v5242_v23  ;;  %vm1038_vm5 = vcmp.eq.s32.totalorder %v5517_v34, %v5871_v22 }
 0x21b   :  { %vm4570_vm12 = vmpackc.low %vm1038_vm5, %vm1036_vm10  ;;  %vm1073_vm10 = vcmp.eq.s32.totalorder %v5592_v39, %v5867_v46  ;;  %vm1075_vm5 = vcmp.eq.s32.totalorder %v5595_v40, %v5867_v46 }
 0x21c   :  { %vm4580_vm14 = vmpackc.low %vm1075_vm5, %vm1073_vm10 }
 0x21d   :  { %4563 = vmatpush1.bf16.msk.msra.mxu1 %vm4562_vm15, %v5242_v23  ;;  %vm1080_vm15 = vcmp.eq.s32.totalorder %v5540_v35, %v5871_v22 }
 0x21e   :  { %4565 = vmatprep.subr.msk.bf16.mxu1 %vm4564_vm3, %v5242_v23  ;;  %vm1082_vm3 = vcmp.eq.s32.totalorder %v5543_v36, %v5871_v22 }
 0x21f   :  { %vm4574_vm6 = vmpackc.low %vm1082_vm3, %vm1080_vm15  ;;  %vm1069_vm15 = vcmp.eq.s32.totalorder %v5618_v41, %v5867_v46  ;;  %vm1071_vm3 = vcmp.eq.s32.totalorder %v5621_v42, %v5867_v46  ;;  %v6037_v46 = vld [vmem:[%s8340_s1] sm:$0xff] }
 0x220   :  { %vm4584_vm8 = vmpackc.low %vm1071_vm3, %vm1069_vm15  ;;  %v6041_v20 = vrot.slane %v6037_v46, %v6019_v5 }
 0x221   :  { %4567 = vmatpush1.bf16.msk.msra.mxu1 %vm4566_vm11, %v5242_v23  ;;  %vm1076_vm11 = vcmp.eq.s32.totalorder %v5566_v37, %v5871_v22 }
 0x222   :  { %4569 = vmatprep.subr.msk.bf16.mxu1 %vm4568_vm9, %v5242_v23  ;;  %vm1078_vm9 = vcmp.eq.s32.totalorder %v5569_v38, %v5871_v22 }
 0x223   :  { %vm4578_vm13 = vmpackc.low %vm1078_vm9, %vm1076_vm11 }
 0x225   :  { %4571 = vmatpush1.bf16.msk.msra.mxu1 %vm4570_vm12, %v5242_v23  ;;  %vm1072_vm12 = vcmp.eq.s32.totalorder %v5592_v39, %v5871_v22 }
 0x226   :  { %4573 = vmatprep.subr.msk.bf16.mxu1 %vm4572_vm1, %v5242_v23  ;;  %vm1074_vm1 = vcmp.eq.s32.totalorder %v5595_v40, %v5871_v22 }
 0x227   :  { %vm4582_vm4 = vmpackc.low %vm1074_vm1, %vm1072_vm12 }
 0x229   :  { %4575 = vmatpush2.bf16.msk.msra.mxu1 %vm4574_vm6, %v5242_v23  ;;  %vm1068_vm6 = vcmp.eq.s32.totalorder %v5618_v41, %v5871_v22 }
 0x22a   :  { %4577 = vmatprep.subr.msk.bf16.mxu1 %vm4576_vm7, %v5242_v23  ;;  %vm1070_vm7 = vcmp.eq.s32.totalorder %v5621_v42, %v5871_v22 }
 0x22b   :  { %vm4586_vm11 = vmpackc.low %vm1070_vm7, %vm1068_vm6 }
 0x22d   :  { %4579 = vmatpush2.bf16.msk.msra.mxu1 %vm4578_vm13, %v5242_v23  ;;  %vm1301_vm13 = vcmp.eq.s32.totalorder %v5328_v13, %v6041_v20 }
 0x22e   :  { %4581 = vmatprep.subr.msk.bf16.mxu1 %vm4580_vm14, %v5242_v23  ;;  %vm1303_vm14 = vcmp.eq.s32.totalorder %v5331_v14, %v6041_v20 }
 0x22f   :  { %vm4593_vm15 = vmpackc.low %vm1303_vm14, %vm1301_vm13  ;;  %vm1295_vm13 = vcmp.eq.s32.totalorder %v5390_v25, %v6041_v20 }
 0x231   :  { %4583 = vmatpush2.bf16.msk.msra.mxu1 %vm4582_vm4, %v5242_v23  ;;  %vm1297_vm4 = vcmp.eq.s32.totalorder %v5341_v17, %v6041_v20 }
 0x232   :  { %4585 = vmatprep.subr.msk.bf16.mxu1 %vm4584_vm8, %v5242_v23  ;;  %vm1299_vm8 = vcmp.eq.s32.totalorder %v5344_v18, %v6041_v20 }
 0x235   :  { %4587 = vmatpush2.bf16.msk.msra.mxu1 %vm4586_vm11, %v5242_v23  ;;  %vm8351_vm11 = vcmask 523264  }
 0x238   :  { %1189 = vmatmul.mubr.bf16.vlgmr.msra.gmra.mxu1 %v5299_v4 }
 0x239   :  { %1487 = vmatprep.mubr.bf16.mxu1 %v5241_v8 }
 0x2c8   :  { %v1015_v57 = vpop.f32.mrf.mxu1 }
 0x2c9   :  { %v6007_v58 = vadd.f32 %v1015_v57, %v5848_v62  ;;  %v1204_v62 = vrot.slane %v5680_v47, %v5859_v43 }
 0x2ca   :  { %v1017_v59 = vpop.f32.mrf.mxu1 }
 0x2cb   :  { %v6010_v60 = vadd.f32 %v1017_v59, %v5851_v1  ;;  %v6028_v1 = vld [vmem:[%s8340_s1 + $0x8] sm:$0xff] }
 0x2cc   :  { %v1019_v61 = vpop.f32.mrf.mxu1 }
 0x2cd   :  { %v6013_v63 = vadd.f32 %v1019_v61, %v5854_v6  ;;  %v6032_v6 = vrot.slane %v6028_v1, %v6019_v5 }
 0x2ce   :  { %v1021_v0 = vpop.f32.mrf.mxu1 }
 0x2cf   :  { %v6016_v2 = vadd.f32 %v1021_v0, %v5856_v12  ;;  %vm1302_vm9 = vcmp.eq.s32.totalorder %v5328_v13, %v6032_v6  ;;  %vm1304_vm10 = vcmp.eq.s32.totalorder %v5331_v14, %v6032_v6  ;;  %vm1298_vm12 = vcmp.eq.s32.totalorder %v5341_v17, %v6032_v6 }
 0x2d0   :  { %vm4591_vm5 = vmpackc.low %vm1304_vm10, %vm1302_vm9  ;;  %vm1300_vm1 = vcmp.eq.s32.totalorder %v5344_v18, %v6032_v6  ;;  %vm1294_vm6 = vcmp.eq.s32.totalorder %v5387_v24, %v6032_v6  ;;  %vm1296_vm7 = vcmp.eq.s32.totalorder %v5390_v25, %v6032_v6  ;;  %vm1290_vm14 = vcmp.eq.s32.totalorder %v5413_v26, %v6032_v6 }
 0x2d1   :  { %vm4595_vm3 = vmpackc.low %vm1300_vm1, %vm1298_vm12  ;;  %vm1292_vm12 = vcmp.eq.s32.totalorder %v5416_v27, %v6032_v6 }
 0x2d2   :  { %vm4597_vm9 = vmpackc.low %vm1299_vm8, %vm1297_vm4  ;;  %vm1291_vm4 = vcmp.eq.s32.totalorder %v5416_v27, %v6041_v20  ;;  %vm1286_vm8 = vcmp.eq.s32.totalorder %v5439_v28, %v6032_v6 }
 0x2d3   :  { %vm4599_vm10 = vmpackc.low %vm1296_vm7, %vm1294_vm6  ;;  %vm1288_vm6 = vcmp.eq.s32.totalorder %v5442_v29, %v6032_v6 }
 0x2f8   :  { %v1190_v12 = vpop.f32.mrf.mxu1 }
 0x2f9   :  { %v1205_v44 = vmul.f32 %v1200_v9, %v1190_v12 }
 0x2fa   :  { %v1192_v19 = vpop.f32.mrf.mxu1 }
 0x2fb   :  { %v1207_v52 = vpack.c.bf16 %v1205_v44, %v1205_v44  ;;  %v1206_v21 = vmul.f32 %v1204_v62, %v1192_v19  ;;  %v6189_v62 = vsub.s32 5, %v5307_v7 }
 0x2fc   :  { %v1194_v22 = vpop.f32.mrf.mxu1 }
 0x2fd   :  { %v1208_v50 = vpack.c.bf16 %v1206_v21, %v1206_v21  ;;  %v1213_v53 = vsel %vm453_vm0, %v1207_v52, 0  ;;  %v67_v52 = vld [vmem:[%s8342_s3 + $0x58] sm:$0xff] }
 0x2fe   :  { %v1195_v10 = vpop.f32.mrf.mxu1 }
 0x2ff   :  { %4589 = vmatprep.subr.msk.bf16.mxu0 %vm453_vm0, %v1208_v50 }
 0x300   :  { %1233 = vmatpush1.bf16.msra.mxu0 %v1213_v53 }
 0x301   :  { %4592 = vmatprep.subr.msk.bf16.mxu0 %vm4591_vm5, %v5242_v23  ;;  %vm1293_vm5 = vcmp.eq.s32.totalorder %v5387_v24, %v6041_v20 }
 0x302   :  { %vm4601_vm1 = vmpackc.low %vm1295_vm13, %vm1293_vm5  ;;  %vm1282_vm5 = vcmp.eq.s32.totalorder %v5465_v30, %v6032_v6  ;;  %vm1284_vm13 = vcmp.eq.s32.totalorder %v5468_v31, %v6032_v6 }
 0x303   :  { %4590 = vmatmul.mubr.msk.bf16.vlgmr.msra.gmra.mxu0 %vm449_vm2, %v78_v54 }
 0x304   :  { %4594 = vmatpush1.bf16.msk.msra.mxu0 %vm4593_vm15, %v5242_v23  ;;  %4639 = vmatprep.mubr.msk.bf16.mxu0 %vm8351_vm11, %v5297_v3  ;;  %vm4603_vm15 = vmpackc.low %vm1292_vm12, %vm1290_vm14 }
 0x305   :  { %4596 = vmatprep.subr.msk.bf16.mxu0 %vm4595_vm3, %v5242_v23  ;;  %vm1289_vm3 = vcmp.eq.s32.totalorder %v5413_v26, %v6041_v20  ;;  %vm4607_vm11 = vmpackc.low %vm1288_vm6, %vm1286_vm8 }
 0x306   :  { %vm4605_vm7 = vmpackc.low %vm1291_vm4, %vm1289_vm3  ;;  %vm1278_vm3 = vcmp.eq.s32.totalorder %v5491_v32, %v6032_v6  ;;  %vm1280_vm4 = vcmp.eq.s32.totalorder %v5494_v33, %v6032_v6 }
 0x307   :  { %vm4611_vm12 = vmpackc.low %vm1284_vm13, %vm1282_vm5 }
 0x308   :  { %4598 = vmatpush1.bf16.msk.msra.mxu0 %vm4597_vm9, %v5242_v23  ;;  %vm1285_vm9 = vcmp.eq.s32.totalorder %v5439_v28, %v6041_v20  ;;  %vm4615_vm6 = vmpackc.low %vm1280_vm4, %vm1278_vm3 }
 0x309   :  { %4600 = vmatprep.subr.msk.bf16.mxu0 %vm4599_vm10, %v5242_v23  ;;  %vm1287_vm10 = vcmp.eq.s32.totalorder %v5442_v29, %v6041_v20 }
 0x30a   :  { %vm4609_vm14 = vmpackc.low %vm1287_vm10, %vm1285_vm9  ;;  %vm1274_vm9 = vcmp.eq.s32.totalorder %v5307_v7, %v6032_v6  ;;  %vm1276_vm10 = vcmp.eq.s32.totalorder %v5517_v34, %v6032_v6 }
 0x30b   :  { %vm4619_vm13 = vmpackc.low %vm1276_vm10, %vm1274_vm9 }
 0x30c   :  { %4602 = vmatpush1.bf16.msk.msra.mxu0 %vm4601_vm1, %v5242_v23  ;;  %vm1281_vm1 = vcmp.eq.s32.totalorder %v5465_v30, %v6041_v20 }
 0x30d   :  { %4604 = vmatprep.subr.msk.bf16.mxu0 %vm4603_vm15, %v5242_v23  ;;  %vm1283_vm15 = vcmp.eq.s32.totalorder %v5468_v31, %v6041_v20 }
 0x30e   :  { %vm4613_vm8 = vmpackc.low %vm1283_vm15, %vm1281_vm1  ;;  %vm1318_vm1 = vcmp.eq.s32.totalorder %v5540_v35, %v6032_v6  ;;  %vm1320_vm15 = vcmp.eq.s32.totalorder %v5543_v36, %v6032_v6 }
 0x30f   :  { %vm4623_vm4 = vmpackc.low %vm1320_vm15, %vm1318_vm1 }
 0x310   :  { %4606 = vmatpush1.bf16.msk.msra.mxu0 %vm4605_vm7, %v5242_v23  ;;  %vm1277_vm7 = vcmp.eq.s32.totalorder %v5491_v32, %v6041_v20 }
 0x311   :  { %4608 = vmatprep.subr.msk.bf16.mxu0 %vm4607_vm11, %v5242_v23  ;;  %vm1279_vm11 = vcmp.eq.s32.totalorder %v5494_v33, %v6041_v20 }
 0x312   :  { %vm4617_vm5 = vmpackc.low %vm1279_vm11, %vm1277_vm7  ;;  %vm1314_vm7 = vcmp.eq.s32.totalorder %v5566_v37, %v6032_v6  ;;  %vm1316_vm11 = vcmp.eq.s32.totalorder %v5569_v38, %v6032_v6 }
 0x313   :  { %vm4627_vm10 = vmpackc.low %vm1316_vm11, %vm1314_vm7 }
 0x314   :  { %4610 = vmatpush1.bf16.msk.msra.mxu0 %vm4609_vm14, %v5242_v23  ;;  %vm1273_vm14 = vcmp.eq.s32.totalorder %v5307_v7, %v6041_v20 }
 0x315   :  { %4612 = vmatprep.subr.msk.bf16.mxu0 %vm4611_vm12, %v5242_v23  ;;  %vm1275_vm12 = vcmp.eq.s32.totalorder %v5517_v34, %v6041_v20 }
 0x316   :  { %vm4621_vm3 = vmpackc.low %vm1275_vm12, %vm1273_vm14  ;;  %vm1310_vm14 = vcmp.eq.s32.totalorder %v5592_v39, %v6032_v6  ;;  %vm1312_vm12 = vcmp.eq.s32.totalorder %v5595_v40, %v6032_v6 }
 0x317   :  { %vm4631_vm15 = vmpackc.low %vm1312_vm12, %vm1310_vm14 }
 0x318   :  { %4614 = vmatpush1.bf16.msk.msra.mxu0 %vm4613_vm8, %v5242_v23  ;;  %vm1317_vm8 = vcmp.eq.s32.totalorder %v5540_v35, %v6041_v20 }
 0x319   :  { %4616 = vmatprep.subr.msk.bf16.mxu0 %vm4615_vm6, %v5242_v23  ;;  %vm1319_vm6 = vcmp.eq.s32.totalorder %v5543_v36, %v6041_v20 }
 0x31a   :  { %vm4625_vm9 = vmpackc.low %vm1319_vm6, %vm1317_vm8  ;;  %vm1306_vm8 = vcmp.eq.s32.totalorder %v5618_v41, %v6032_v6  ;;  %vm1308_vm6 = vcmp.eq.s32.totalorder %v5621_v42, %v6032_v6  ;;  %v1437_v6 = vrot.slane %v5673_v45, %v6019_v5 }
 0x31b   :  { %vm4635_vm11 = vmpackc.low %vm1308_vm6, %vm1306_vm8 }
 0x31c   :  { %4618 = vmatpush1.bf16.msk.msra.mxu0 %vm4617_vm5, %v5242_v23  ;;  %vm1313_vm5 = vcmp.eq.s32.totalorder %v5566_v37, %v6041_v20 }
 0x31d   :  { %4620 = vmatprep.subr.msk.bf16.mxu0 %vm4619_vm13, %v5242_v23  ;;  %vm1315_vm13 = vcmp.eq.s32.totalorder %v5569_v38, %v6041_v20 }
 0x31e   :  { %vm4629_vm1 = vmpackc.low %vm1315_vm13, %vm1313_vm5 }
 0x320   :  { %4622 = vmatpush1.bf16.msk.msra.mxu0 %vm4621_vm3, %v5242_v23  ;;  %vm1309_vm3 = vcmp.eq.s32.totalorder %v5592_v39, %v6041_v20 }
 0x321   :  { %4624 = vmatprep.subr.msk.bf16.mxu0 %vm4623_vm4, %v5242_v23  ;;  %vm1311_vm4 = vcmp.eq.s32.totalorder %v5595_v40, %v6041_v20 }
 0x322   :  { %vm4633_vm7 = vmpackc.low %vm1311_vm4, %vm1309_vm3 }
 0x324   :  { %4626 = vmatpush2.bf16.msk.msra.mxu0 %vm4625_vm9, %v5242_v23  ;;  %vm1305_vm9 = vcmp.eq.s32.totalorder %v5618_v41, %v6041_v20 }
 0x325   :  { %4628 = vmatprep.subr.msk.bf16.mxu0 %vm4627_vm10, %v5242_v23  ;;  %vm1307_vm10 = vcmp.eq.s32.totalorder %v5621_v42, %v6041_v20 }
 0x326   :  { %vm4637_vm5 = vmpackc.low %vm1307_vm10, %vm1305_vm9 }
 0x328   :  { %4630 = vmatpush2.bf16.msk.msra.mxu0 %vm4629_vm1, %v5242_v23 }
 0x329   :  { %4632 = vmatprep.subr.msk.bf16.mxu0 %vm4631_vm15, %v5242_v23 }
 0x32c   :  { %4634 = vmatpush2.bf16.msk.msra.mxu0 %vm4633_vm7, %v5242_v23 }
 0x32d   :  { %4636 = vmatprep.subr.msk.bf16.mxu0 %vm4635_vm11, %v5242_v23 }
 0x330   :  { %4638 = vmatpush2.bf16.msk.msra.mxu0 %vm4637_vm5, %v5242_v23  ;;  %vm8352_vm5 = vcmask 523264  }
 0x333   :  { %1426 = vmatmul.mubr.bf16.vlgmr.msra.gmra.mxu0 %v5299_v4 }
 0x334   :  { %1724 = vmatprep.mubr.bf16.mxu0 %v5241_v8 }
 0x3c3   :  { %v1252_v11 = vpop.f32.mrf.mxu0 }
 0x3c4   :  { %v6177_v55 = vadd.f32 %v1252_v11, %v6007_v58  ;;  %v1441_v58 = vrot.slane %v5680_v47, %v6019_v5  ;;  %v66_v47 = vld [vmem:[%s8342_s3 + $0x50] sm:$0xff] }
 0x3c5   :  { %v1254_v56 = vpop.f32.mrf.mxu0  ;;  %v79_v49 = vpack.c.bf16 %v67_v52, %v66_v47  ;;  %v69_v47 = vld [vmem:[%s8342_s3 + $0x68] sm:$0xff] }
 0x3c6   :  { %v6180_v57 = vadd.f32 %v1254_v56, %v6010_v60  ;;  %v6197_v60 = vrot.slane %v6028_v1, %v6189_v62 }
 0x3c7   :  { %v1256_v59 = vpop.f32.mrf.mxu0 }
 0x3c8   :  { %v6183_v61 = vadd.f32 %v1256_v59, %v6013_v63  ;;  %vm1539_vm13 = vcmp.eq.s32.totalorder %v5328_v13, %v6197_v60  ;;  %vm1541_vm14 = vcmp.eq.s32.totalorder %v5331_v14, %v6197_v60  ;;  %vm1535_vm3 = vcmp.eq.s32.totalorder %v5341_v17, %v6197_v60 }
 0x3c9   :  { %v1258_v0 = vpop.f32.mrf.mxu0  ;;  %vm4642_vm12 = vmpackc.low %vm1541_vm14, %vm1539_vm13  ;;  %vm1537_vm4 = vcmp.eq.s32.totalorder %v5344_v18, %v6197_v60  ;;  %vm1531_vm9 = vcmp.eq.s32.totalorder %v5387_v24, %v6197_v60  ;;  %vm1533_vm10 = vcmp.eq.s32.totalorder %v5390_v25, %v6197_v60 }
 0x3ca   :  { %v6186_v9 = vadd.f32 %v1258_v0, %v6016_v2  ;;  %v6201_v2 = vrot.slane %v6037_v46, %v6189_v62  ;;  %vm4646_vm6 = vmpackc.low %vm1537_vm4, %vm1535_vm3  ;;  %vm1529_vm3 = vcmp.eq.s32.totalorder %v5416_v27, %v6197_v60 }
 0x3cb   :  { %vm4650_vm14 = vmpackc.low %vm1533_vm10, %vm1531_vm9  ;;  %vm1525_vm9 = vcmp.eq.s32.totalorder %v5442_v29, %v6197_v60 }
 0x3cc   :  { %vm1538_vm1 = vcmp.eq.s32.totalorder %v5328_v13, %v6201_v2  ;;  %vm1540_vm15 = vcmp.eq.s32.totalorder %v5331_v14, %v6201_v2  ;;  %vm1534_vm7 = vcmp.eq.s32.totalorder %v5341_v17, %v6201_v2  ;;  %vm1536_vm11 = vcmp.eq.s32.totalorder %v5344_v18, %v6201_v2 }
 0x3cd   :  { %vm4644_vm8 = vmpackc.low %vm1540_vm15, %vm1538_vm1  ;;  %vm1532_vm1 = vcmp.eq.s32.totalorder %v5390_v25, %v6201_v2  ;;  %vm1527_vm15 = vcmp.eq.s32.totalorder %v5413_v26, %v6197_v60 }
 0x3ce   :  { %vm4648_vm13 = vmpackc.low %vm1536_vm11, %vm1534_vm7  ;;  %vm1528_vm7 = vcmp.eq.s32.totalorder %v5416_v27, %v6201_v2  ;;  %vm1523_vm11 = vcmp.eq.s32.totalorder %v5439_v28, %v6197_v60 }
 0x3f3   :  { %v1427_v12 = vpop.f32.mrf.mxu0 }
 0x3f4   :  { %v1442_v63 = vmul.f32 %v1437_v6, %v1427_v12  ;;  %v6349_v6 = vsub.s32 6, %v5307_v7 }
 0x3f5   :  { %v1429_v44 = vpop.f32.mrf.mxu0 }
 0x3f6   :  { %v1444_v19 = vpack.c.bf16 %v1442_v63, %v1442_v63  ;;  %v1443_v20 = vmul.f32 %v1441_v58, %v1429_v44  ;;  %v6367_v58 = vrot.slane %v6028_v1, %v6349_v6  ;;  %v6371_v44 = vrot.slane %v6037_v46, %v6349_v6 }
 0x3f7   :  { %v1431_v45 = vpop.f32.mrf.mxu0 }
 0x3f8   :  { %v1445_v21 = vpack.c.bf16 %v1443_v20, %v1443_v20  ;;  %v1450_v48 = vsel %vm453_vm0, %v1444_v19, 0  ;;  %v68_v45 = vld [vmem:[%s8342_s3 + $0x60] sm:$0xff] }
 0x3f9   :  { %v1432_v22 = vpop.f32.mrf.mxu0 }
 0x3fa   :  { %4640 = vmatprep.subr.msk.bf16.mxu1 %vm453_vm0, %v1445_v21 }
 0x3fb   :  { %1470 = vmatpush1.bf16.msra.mxu1 %v1450_v48  ;;  %v80_v48 = vpack.c.bf16 %v69_v47, %v68_v45  ;;  %v71_v45 = vld [vmem:[%s8342_s3 + $0x78] sm:$0xff] }
 0x3fc   :  { %4643 = vmatprep.subr.msk.bf16.mxu1 %vm4642_vm12, %v5242_v23  ;;  %vm1530_vm12 = vcmp.eq.s32.totalorder %v5387_v24, %v6201_v2 }
 0x3fd   :  { %vm4652_vm4 = vmpackc.low %vm1532_vm1, %vm1530_vm12  ;;  %vm1519_vm12 = vcmp.eq.s32.totalorder %v5465_v30, %v6197_v60  ;;  %vm1521_vm1 = vcmp.eq.s32.totalorder %v5468_v31, %v6197_v60 }
 0x3fe   :  { %4641 = vmatmul.mubr.msk.bf16.vlgmr.msra.gmra.mxu1 %vm449_vm2, %v79_v49 }
 0x3ff   :  { %4645 = vmatpush1.bf16.msk.msra.mxu1 %vm4644_vm8, %v5242_v23  ;;  %4690 = vmatprep.mubr.msk.bf16.mxu1 %vm8352_vm5, %v5297_v3  ;;  %vm4654_vm8 = vmpackc.low %vm1529_vm3, %vm1527_vm15 }
 0x400   :  { %4647 = vmatprep.subr.msk.bf16.mxu1 %vm4646_vm6, %v5242_v23  ;;  %vm1526_vm6 = vcmp.eq.s32.totalorder %v5413_v26, %v6201_v2  ;;  %vm4658_vm5 = vmpackc.low %vm1525_vm9, %vm1523_vm11 }
 0x401   :  { %vm4656_vm10 = vmpackc.low %vm1528_vm7, %vm1526_vm6  ;;  %vm1515_vm6 = vcmp.eq.s32.totalorder %v5491_v32, %v6197_v60  ;;  %vm1517_vm7 = vcmp.eq.s32.totalorder %v5494_v33, %v6197_v60 }
 0x402   :  { %vm4662_vm3 = vmpackc.low %vm1521_vm1, %vm1519_vm12 }
 0x403   :  { %4649 = vmatpush1.bf16.msk.msra.mxu1 %vm4648_vm13, %v5242_v23  ;;  %vm1522_vm13 = vcmp.eq.s32.totalorder %v5439_v28, %v6201_v2  ;;  %vm4666_vm9 = vmpackc.low %vm1517_vm7, %vm1515_vm6 }
 0x404   :  { %4651 = vmatprep.subr.msk.bf16.mxu1 %vm4650_vm14, %v5242_v23  ;;  %vm1524_vm14 = vcmp.eq.s32.totalorder %v5442_v29, %v6201_v2 }
 0x405   :  { %vm4660_vm15 = vmpackc.low %vm1524_vm14, %vm1522_vm13  ;;  %vm1511_vm13 = vcmp.eq.s32.totalorder %v5307_v7, %v6197_v60  ;;  %vm1513_vm14 = vcmp.eq.s32.totalorder %v5517_v34, %v6197_v60 }
 0x406   :  { %vm4670_vm1 = vmpackc.low %vm1513_vm14, %vm1511_vm13 }
 0x407   :  { %4653 = vmatpush1.bf16.msk.msra.mxu1 %vm4652_vm4, %v5242_v23  ;;  %vm1518_vm4 = vcmp.eq.s32.totalorder %v5465_v30, %v6201_v2 }
 0x408   :  { %4655 = vmatprep.subr.msk.bf16.mxu1 %vm4654_vm8, %v5242_v23  ;;  %vm1520_vm8 = vcmp.eq.s32.totalorder %v5468_v31, %v6201_v2 }
 0x409   :  { %vm4664_vm11 = vmpackc.low %vm1520_vm8, %vm1518_vm4  ;;  %vm1555_vm4 = vcmp.eq.s32.totalorder %v5540_v35, %v6197_v60  ;;  %vm1557_vm8 = vcmp.eq.s32.totalorder %v5543_v36, %v6197_v60 }
 0x40a   :  { %vm4674_vm7 = vmpackc.low %vm1557_vm8, %vm1555_vm4 }
 0x40b   :  { %4657 = vmatpush1.bf16.msk.msra.mxu1 %vm4656_vm10, %v5242_v23  ;;  %vm1514_vm10 = vcmp.eq.s32.totalorder %v5491_v32, %v6201_v2 }
 0x40c   :  { %4659 = vmatprep.subr.msk.bf16.mxu1 %vm4658_vm5, %v5242_v23  ;;  %vm1516_vm5 = vcmp.eq.s32.totalorder %v5494_v33, %v6201_v2 }
 0x40d   :  { %vm4668_vm12 = vmpackc.low %vm1516_vm5, %vm1514_vm10  ;;  %vm1551_vm10 = vcmp.eq.s32.totalorder %v5566_v37, %v6197_v60  ;;  %vm1553_vm5 = vcmp.eq.s32.totalorder %v5569_v38, %v6197_v60 }
 0x40e   :  { %vm4678_vm14 = vmpackc.low %vm1553_vm5, %vm1551_vm10 }
 0x40f   :  { %4661 = vmatpush1.bf16.msk.msra.mxu1 %vm4660_vm15, %v5242_v23  ;;  %vm1510_vm15 = vcmp.eq.s32.totalorder %v5307_v7, %v6201_v2 }
 0x410   :  { %4663 = vmatprep.subr.msk.bf16.mxu1 %vm4662_vm3, %v5242_v23  ;;  %vm1512_vm3 = vcmp.eq.s32.totalorder %v5517_v34, %v6201_v2 }
 0x411   :  { %vm4672_vm6 = vmpackc.low %vm1512_vm3, %vm1510_vm15  ;;  %vm1547_vm15 = vcmp.eq.s32.totalorder %v5592_v39, %v6197_v60  ;;  %vm1549_vm3 = vcmp.eq.s32.totalorder %v5595_v40, %v6197_v60 }
 0x412   :  { %vm4682_vm8 = vmpackc.low %vm1549_vm3, %vm1547_vm15  ;;  %vm1778_vm15 = vcmp.eq.s32.totalorder %v5331_v14, %v6367_v58 }
 0x413   :  { %4665 = vmatpush1.bf16.msk.msra.mxu1 %vm4664_vm11, %v5242_v23  ;;  %vm1554_vm11 = vcmp.eq.s32.totalorder %v5540_v35, %v6201_v2 }
 0x414   :  { %4667 = vmatprep.subr.msk.bf16.mxu1 %vm4666_vm9, %v5242_v23  ;;  %vm1556_vm9 = vcmp.eq.s32.totalorder %v5543_v36, %v6201_v2 }
 0x415   :  { %vm4676_vm13 = vmpackc.low %vm1556_vm9, %vm1554_vm11  ;;  %vm1543_vm11 = vcmp.eq.s32.totalorder %v5618_v41, %v6197_v60  ;;  %vm1545_vm9 = vcmp.eq.s32.totalorder %v5621_v42, %v6197_v60 }
 0x416   :  { %vm4686_vm5 = vmpackc.low %vm1545_vm9, %vm1543_vm11 }
 0x417   :  { %4669 = vmatpush1.bf16.msk.msra.mxu1 %vm4668_vm12, %v5242_v23  ;;  %vm1550_vm12 = vcmp.eq.s32.totalorder %v5566_v37, %v6201_v2 }
 0x418   :  { %4671 = vmatprep.subr.msk.bf16.mxu1 %vm4670_vm1, %v5242_v23  ;;  %vm1552_vm1 = vcmp.eq.s32.totalorder %v5569_v38, %v6201_v2 }
 0x419   :  { %vm4680_vm4 = vmpackc.low %vm1552_vm1, %vm1550_vm12  ;;  %vm1776_vm1 = vcmp.eq.s32.totalorder %v5328_v13, %v6367_v58 }
 0x41a   :  { %vm4693_vm3 = vmpackc.low %vm1778_vm15, %vm1776_vm1 }
 0x41b   :  { %4673 = vmatpush1.bf16.msk.msra.mxu1 %vm4672_vm6, %v5242_v23  ;;  %vm1546_vm6 = vcmp.eq.s32.totalorder %v5592_v39, %v6201_v2 }
 0x41c   :  { %4675 = vmatprep.subr.msk.bf16.mxu1 %vm4674_vm7, %v5242_v23  ;;  %vm1548_vm7 = vcmp.eq.s32.totalorder %v5595_v40, %v6201_v2 }
 0x41d   :  { %vm4684_vm10 = vmpackc.low %vm1548_vm7, %vm1546_vm6  ;;  %vm1772_vm6 = vcmp.eq.s32.totalorder %v5341_v17, %v6367_v58  ;;  %vm1774_vm7 = vcmp.eq.s32.totalorder %v5344_v18, %v6367_v58 }
 0x41e   :  { %vm4697_vm9 = vmpackc.low %vm1774_vm7, %vm1772_vm6  ;;  %vm1766_vm6 = vcmp.eq.s32.totalorder %v5416_v27, %v6367_v58 }
 0x41f   :  { %4677 = vmatpush2.bf16.msk.msra.mxu1 %vm4676_vm13, %v5242_v23  ;;  %vm1542_vm13 = vcmp.eq.s32.totalorder %v5618_v41, %v6201_v2 }
 0x420   :  { %4679 = vmatprep.subr.msk.bf16.mxu1 %vm4678_vm14, %v5242_v23  ;;  %vm1544_vm14 = vcmp.eq.s32.totalorder %v5621_v42, %v6201_v2 }
 0x421   :  { %vm4688_vm12 = vmpackc.low %vm1544_vm14, %vm1542_vm13  ;;  %vm1768_vm13 = vcmp.eq.s32.totalorder %v5387_v24, %v6367_v58  ;;  %vm1770_vm14 = vcmp.eq.s32.totalorder %v5390_v25, %v6367_v58 }
 0x422   :  { %vm4701_vm15 = vmpackc.low %vm1770_vm14, %vm1768_vm13  ;;  %vm1762_vm13 = vcmp.eq.s32.totalorder %v5442_v29, %v6367_v58 }
 0x423   :  { %4681 = vmatpush2.bf16.msk.msra.mxu1 %vm4680_vm4, %v5242_v23  ;;  %vm1775_vm4 = vcmp.eq.s32.totalorder %v5328_v13, %v6371_v44 }
 0x424   :  { %4683 = vmatprep.subr.msk.bf16.mxu1 %vm4682_vm8, %v5242_v23  ;;  %vm1777_vm8 = vcmp.eq.s32.totalorder %v5331_v14, %v6371_v44 }
 0x425   :  { %vm4695_vm11 = vmpackc.low %vm1777_vm8, %vm1775_vm4  ;;  %vm1769_vm4 = vcmp.eq.s32.totalorder %v5390_v25, %v6371_v44  ;;  %vm1764_vm8 = vcmp.eq.s32.totalorder %v5413_v26, %v6367_v58 }
 0x427   :  { %4685 = vmatpush2.bf16.msk.msra.mxu1 %vm4684_vm10, %v5242_v23  ;;  %vm1771_vm10 = vcmp.eq.s32.totalorder %v5341_v17, %v6371_v44 }
 0x428   :  { %4687 = vmatprep.subr.msk.bf16.mxu1 %vm4686_vm5, %v5242_v23  ;;  %vm1773_vm5 = vcmp.eq.s32.totalorder %v5344_v18, %v6371_v44 }
 0x429   :  { %vm4699_vm1 = vmpackc.low %vm1773_vm5, %vm1771_vm10  ;;  %vm1765_vm10 = vcmp.eq.s32.totalorder %v5416_v27, %v6371_v44  ;;  %vm1760_vm5 = vcmp.eq.s32.totalorder %v5439_v28, %v6367_v58 }
 0x42b   :  { %4689 = vmatpush2.bf16.msk.msra.mxu1 %vm4688_vm12, %v5242_v23  ;;  %vm8353_vm12 = vcmask 523264  }
 0x42e   :  { %1663 = vmatmul.mubr.bf16.vlgmr.msra.gmra.mxu1 %v5299_v4 }
 0x42f   :  { %1961 = vmatprep.mubr.bf16.mxu1 %v5241_v8 }
 0x4be   :  { %v1489_v50 = vpop.f32.mrf.mxu1 }
 0x4bf   :  { %v6337_v10 = vadd.f32 %v1489_v50, %v6177_v55  ;;  %v6354_v55 = vld [vmem:[%s8341_s2] sm:$0xff] }
 0x4c0   :  { %v1491_v53 = vpop.f32.mrf.mxu1 }
 0x4c1   :  { %v6340_v54 = vadd.f32 %v1491_v53, %v6180_v57  ;;  %v1674_v57 = vrot.slane %v6354_v55, %v6189_v62 }
 0x4c2   :  { %v1493_v11 = vpop.f32.mrf.mxu1 }
 0x4c3   :  { %v6343_v56 = vadd.f32 %v1493_v11, %v6183_v61  ;;  %v6361_v61 = vld [vmem:[%s8341_s2 + $0x8] sm:$0xff] }
 0x4c4   :  { %v1495_v59 = vpop.f32.mrf.mxu1 }
 0x4c5   :  { %v6346_v0 = vadd.f32 %v1495_v59, %v6186_v9  ;;  %v1678_v9 = vrot.slane %v6361_v61, %v6189_v62 }
 0x4ee   :  { %v1664_v60 = vpop.f32.mrf.mxu1 }
 0x4ef   :  { %v1679_v12 = vmul.f32 %v1674_v57, %v1664_v60  ;;  %v6519_v60 = vsub.s32 7, %v5307_v7 }
 0x4f0   :  { %v1666_v63 = vpop.f32.mrf.mxu1 }
 0x4f1   :  { %v1681_v2 = vpack.c.bf16 %v1679_v12, %v1679_v12  ;;  %v1680_v19 = vmul.f32 %v1678_v9, %v1666_v63  ;;  %v1911_v12 = vrot.slane %v6354_v55, %v6349_v6 }
 0x4f2   :  { %v1668_v20 = vpop.f32.mrf.mxu1 }
 0x4f3   :  { %v1682_v52 = vpack.c.bf16 %v1680_v19, %v1680_v19  ;;  %v1687_v22 = vsel %vm453_vm0, %v1681_v2, 0 }
 0x4f4   :  { %v1669_v21 = vpop.f32.mrf.mxu1 }
 0x4f5   :  { %4691 = vmatprep.subr.msk.bf16.mxu0 %vm453_vm0, %v1682_v52 }
 0x4f6   :  { %1707 = vmatpush1.bf16.msra.mxu0 %v1687_v22  ;;  %v259_v22 = vld [vmem:[%s8344_s5 + $0x8] sm:$0xff] }
 0x4f7   :  { %4694 = vmatprep.subr.msk.bf16.mxu0 %vm4693_vm3, %v5242_v23  ;;  %vm1767_vm3 = vcmp.eq.s32.totalorder %v5387_v24, %v6371_v44 }
 0x4f8   :  { %vm4703_vm7 = vmpackc.low %vm1769_vm4, %vm1767_vm3  ;;  %vm1756_vm3 = vcmp.eq.s32.totalorder %v5465_v30, %v6367_v58  ;;  %vm1758_vm4 = vcmp.eq.s32.totalorder %v5468_v31, %v6367_v58 }
 0x4f9   :  { %4692 = vmatmul.mubr.msk.bf16.vlgmr.msra.gmra.mxu0 %vm449_vm2, %v80_v48 }
 0x4fa   :  { %4696 = vmatpush1.bf16.msk.msra.mxu0 %vm4695_vm11, %v5242_v23  ;;  %4741 = vmatprep.mubr.msk.bf16.mxu0 %vm8353_vm12, %v5297_v3  ;;  %vm4705_vm11 = vmpackc.low %vm1766_vm6, %vm1764_vm8 }
 0x4fb   :  { %4698 = vmatprep.subr.msk.bf16.mxu0 %vm4697_vm9, %v5242_v23  ;;  %vm1763_vm9 = vcmp.eq.s32.totalorder %v5413_v26, %v6371_v44  ;;  %vm4709_vm12 = vmpackc.low %vm1762_vm13, %vm1760_vm5 }
 0x4fc   :  { %vm4707_vm14 = vmpackc.low %vm1765_vm10, %vm1763_vm9  ;;  %vm1752_vm9 = vcmp.eq.s32.totalorder %v5491_v32, %v6367_v58  ;;  %vm1754_vm10 = vcmp.eq.s32.totalorder %v5494_v33, %v6367_v58 }
 0x4fd   :  { %vm4713_vm6 = vmpackc.low %vm1758_vm4, %vm1756_vm3 }
 0x4fe   :  { %4700 = vmatpush1.bf16.msk.msra.mxu0 %vm4699_vm1, %v5242_v23  ;;  %vm1759_vm1 = vcmp.eq.s32.totalorder %v5439_v28, %v6371_v44  ;;  %vm4717_vm13 = vmpackc.low %vm1754_vm10, %vm1752_vm9 }
 0x4ff   :  { %4702 = vmatprep.subr.msk.bf16.mxu0 %vm4701_vm15, %v5242_v23  ;;  %vm1761_vm15 = vcmp.eq.s32.totalorder %v5442_v29, %v6371_v44 }
 0x500   :  { %vm4711_vm8 = vmpackc.low %vm1761_vm15, %vm1759_vm1  ;;  %vm1748_vm1 = vcmp.eq.s32.totalorder %v5307_v7, %v6367_v58  ;;  %vm1750_vm15 = vcmp.eq.s32.totalorder %v5517_v34, %v6367_v58 }
 0x501   :  { %vm4721_vm4 = vmpackc.low %vm1750_vm15, %vm1748_vm1 }
 0x502   :  { %4704 = vmatpush1.bf16.msk.msra.mxu0 %vm4703_vm7, %v5242_v23  ;;  %vm1755_vm7 = vcmp.eq.s32.totalorder %v5465_v30, %v6371_v44 }
 0x503   :  { %4706 = vmatprep.subr.msk.bf16.mxu0 %vm4705_vm11, %v5242_v23  ;;  %vm1757_vm11 = vcmp.eq.s32.totalorder %v5468_v31, %v6371_v44 }
 0x504   :  { %vm4715_vm5 = vmpackc.low %vm1757_vm11, %vm1755_vm7  ;;  %vm1792_vm7 = vcmp.eq.s32.totalorder %v5540_v35, %v6367_v58  ;;  %vm1794_vm11 = vcmp.eq.s32.totalorder %v5543_v36, %v6367_v58 }
 0x505   :  { %vm4725_vm10 = vmpackc.low %vm1794_vm11, %vm1792_vm7 }
 0x506   :  { %4708 = vmatpush1.bf16.msk.msra.mxu0 %vm4707_vm14, %v5242_v23  ;;  %vm1751_vm14 = vcmp.eq.s32.totalorder %v5491_v32, %v6371_v44 }
 0x507   :  { %4710 = vmatprep.subr.msk.bf16.mxu0 %vm4709_vm12, %v5242_v23  ;;  %vm1753_vm12 = vcmp.eq.s32.totalorder %v5494_v33, %v6371_v44 }
 0x508   :  { %vm4719_vm3 = vmpackc.low %vm1753_vm12, %vm1751_vm14  ;;  %vm1788_vm14 = vcmp.eq.s32.totalorder %v5566_v37, %v6367_v58  ;;  %vm1790_vm12 = vcmp.eq.s32.totalorder %v5569_v38, %v6367_v58 }
 0x509   :  { %vm4729_vm15 = vmpackc.low %vm1790_vm12, %vm1788_vm14 }
 0x50a   :  { %4712 = vmatpush1.bf16.msk.msra.mxu0 %vm4711_vm8, %v5242_v23  ;;  %vm1747_vm8 = vcmp.eq.s32.totalorder %v5307_v7, %v6371_v44 }
 0x50b   :  { %4714 = vmatprep.subr.msk.bf16.mxu0 %vm4713_vm6, %v5242_v23  ;;  %vm1749_vm6 = vcmp.eq.s32.totalorder %v5517_v34, %v6371_v44 }
 0x50c   :  { %vm4723_vm9 = vmpackc.low %vm1749_vm6, %vm1747_vm8  ;;  %vm1784_vm8 = vcmp.eq.s32.totalorder %v5592_v39, %v6367_v58  ;;  %vm1786_vm6 = vcmp.eq.s32.totalorder %v5595_v40, %v6367_v58 }
 0x50d   :  { %vm4733_vm11 = vmpackc.low %vm1786_vm6, %vm1784_vm8 }
 0x50e   :  { %4716 = vmatpush1.bf16.msk.msra.mxu0 %vm4715_vm5, %v5242_v23  ;;  %vm1791_vm5 = vcmp.eq.s32.totalorder %v5540_v35, %v6371_v44 }
 0x50f   :  { %4718 = vmatprep.subr.msk.bf16.mxu0 %vm4717_vm13, %v5242_v23  ;;  %vm1793_vm13 = vcmp.eq.s32.totalorder %v5543_v36, %v6371_v44 }
 0x510   :  { %vm4727_vm1 = vmpackc.low %vm1793_vm13, %vm1791_vm5  ;;  %vm1780_vm5 = vcmp.eq.s32.totalorder %v5618_v41, %v6367_v58  ;;  %vm1782_vm13 = vcmp.eq.s32.totalorder %v5621_v42, %v6367_v58 }
 0x511   :  { %vm4737_vm12 = vmpackc.low %vm1782_vm13, %vm1780_vm5 }
 0x512   :  { %4720 = vmatpush1.bf16.msk.msra.mxu0 %vm4719_vm3, %v5242_v23  ;;  %vm1787_vm3 = vcmp.eq.s32.totalorder %v5566_v37, %v6371_v44 }
 0x513   :  { %4722 = vmatprep.subr.msk.bf16.mxu0 %vm4721_vm4, %v5242_v23  ;;  %vm1789_vm4 = vcmp.eq.s32.totalorder %v5569_v38, %v6371_v44 }
 0x514   :  { %vm4731_vm7 = vmpackc.low %vm1789_vm4, %vm1787_vm3 }
 0x516   :  { %4724 = vmatpush1.bf16.msk.msra.mxu0 %vm4723_vm9, %v5242_v23  ;;  %vm1783_vm9 = vcmp.eq.s32.totalorder %v5592_v39, %v6371_v44 }
 0x517   :  { %4726 = vmatprep.subr.msk.bf16.mxu0 %vm4725_vm10, %v5242_v23  ;;  %vm1785_vm10 = vcmp.eq.s32.totalorder %v5595_v40, %v6371_v44 }
 0x518   :  { %vm4735_vm14 = vmpackc.low %vm1785_vm10, %vm1783_vm9 }
 0x51a   :  { %4728 = vmatpush2.bf16.msk.msra.mxu0 %vm4727_vm1, %v5242_v23  ;;  %vm1779_vm1 = vcmp.eq.s32.totalorder %v5618_v41, %v6371_v44 }
 0x51b   :  { %4730 = vmatprep.subr.msk.bf16.mxu0 %vm4729_vm15, %v5242_v23  ;;  %vm1781_vm15 = vcmp.eq.s32.totalorder %v5621_v42, %v6371_v44 }
 0x51c   :  { %vm4739_vm3 = vmpackc.low %vm1781_vm15, %vm1779_vm1 }
 0x51e   :  { %4732 = vmatpush2.bf16.msk.msra.mxu0 %vm4731_vm7, %v5242_v23 }
 0x51f   :  { %4734 = vmatprep.subr.msk.bf16.mxu0 %vm4733_vm11, %v5242_v23 }
 0x522   :  { %4736 = vmatpush2.bf16.msk.msra.mxu0 %vm4735_vm14, %v5242_v23 }
 0x523   :  { %4738 = vmatprep.subr.msk.bf16.mxu0 %vm4737_vm12, %v5242_v23 }
 0x526   :  { %4740 = vmatpush2.bf16.msk.msra.mxu0 %vm4739_vm3, %v5242_v23  ;;  %vm8354_vm3 = vcmask 523264  }
 0x529   :  { %1900 = vmatmul.mubr.bf16.vlgmr.msra.gmra.mxu0 %v5299_v4 }
 0x52a   :  { %2198 = vmatprep.mubr.bf16.mxu0 %v5241_v8 }
 0x5b9   :  { %v1726_v49 = vpop.f32.mrf.mxu0 }
 0x5ba   :  { %v6507_v50 = vadd.f32 %v1726_v49, %v6337_v10  ;;  %v1915_v10 = vrot.slane %v6361_v61, %v6349_v6 }
 0x5bb   :  { %v1728_v53 = vpop.f32.mrf.mxu0 }
 0x5bc   :  { %v6510_v11 = vadd.f32 %v1728_v53, %v6340_v54  ;;  %v6527_v54 = vrot.slane %v6028_v1, %v6519_v60  ;;  %v70_v1 = vld [vmem:[%s8342_s3 + $0x70] sm:$0xff] }
 0x5bd   :  { %v1730_v59 = vpop.f32.mrf.mxu0  ;;  %v81_v21 = vpack.c.bf16 %v71_v45, %v70_v1 }
 0x5be   :  { %v6513_v57 = vadd.f32 %v1730_v59, %v6343_v56  ;;  %vm2013_vm4 = vcmp.eq.s32.totalorder %v5328_v13, %v6527_v54  ;;  %vm2015_vm8 = vcmp.eq.s32.totalorder %v5331_v14, %v6527_v54  ;;  %vm2009_vm9 = vcmp.eq.s32.totalorder %v5341_v17, %v6527_v54 }
 0x5bf   :  { %v1732_v9 = vpop.f32.mrf.mxu0  ;;  %vm4744_vm6 = vmpackc.low %vm2015_vm8, %vm2013_vm4  ;;  %vm2011_vm10 = vcmp.eq.s32.totalorder %v5344_v18, %v6527_v54  ;;  %vm2005_vm1 = vcmp.eq.s32.totalorder %v5387_v24, %v6527_v54  ;;  %vm2007_vm15 = vcmp.eq.s32.totalorder %v5390_v25, %v6527_v54 }
 0x5c0   :  { %v6516_v58 = vadd.f32 %v1732_v9, %v6346_v0  ;;  %v6531_v0 = vrot.slane %v6037_v46, %v6519_v60  ;;  %vm4748_vm13 = vmpackc.low %vm2011_vm10, %vm2009_vm9  ;;  %vm2003_vm9 = vcmp.eq.s32.totalorder %v5416_v27, %v6527_v54 }
 0x5c1   :  { %vm4752_vm8 = vmpackc.low %vm2007_vm15, %vm2005_vm1  ;;  %vm1999_vm1 = vcmp.eq.s32.totalorder %v5442_v29, %v6527_v54 }
 0x5c2   :  { %vm2012_vm7 = vcmp.eq.s32.totalorder %v5328_v13, %v6531_v0  ;;  %vm2014_vm11 = vcmp.eq.s32.totalorder %v5331_v14, %v6531_v0  ;;  %vm2008_vm14 = vcmp.eq.s32.totalorder %v5341_v17, %v6531_v0  ;;  %vm2010_vm12 = vcmp.eq.s32.totalorder %v5344_v18, %v6531_v0 }
 0x5c3   :  { %vm4746_vm5 = vmpackc.low %vm2014_vm11, %vm2012_vm7  ;;  %vm2006_vm7 = vcmp.eq.s32.totalorder %v5390_v25, %v6531_v0  ;;  %vm2001_vm11 = vcmp.eq.s32.totalorder %v5413_v26, %v6527_v54 }
 0x5c4   :  { %vm4750_vm4 = vmpackc.low %vm2010_vm12, %vm2008_vm14  ;;  %vm2002_vm14 = vcmp.eq.s32.totalorder %v5416_v27, %v6531_v0  ;;  %vm1997_vm12 = vcmp.eq.s32.totalorder %v5439_v28, %v6527_v54 }
 0x5e9   :  { %v1901_v63 = vpop.f32.mrf.mxu0 }
 0x5ea   :  { %v1916_v56 = vmul.f32 %v1911_v12, %v1901_v63 }
 0x5eb   :  { %v1903_v44 = vpop.f32.mrf.mxu0 }
 0x5ec   :  { %v1918_v2 = vpack.c.bf16 %v1916_v56, %v1916_v56  ;;  %v1917_v19 = vmul.f32 %v1915_v10, %v1903_v44 }
 0x5ed   :  { %v1905_v20 = vpop.f32.mrf.mxu0 }
 0x5ee   :  { %v1919_v47 = vpack.c.bf16 %v1917_v19, %v1917_v19  ;;  %v1924_v52 = vsel %vm453_vm0, %v1918_v2, 0  ;;  %v72_v19 = vld [vmem:[%s8342_s3 + $0x80] sm:$0xff]  ;;  %v73_v20 = vld [vmem:[%s8342_s3 + $0x88] sm:$0xff] }
 0x5ef   :  { %v1906_v46 = vpop.f32.mrf.mxu0 }
 0x5f0   :  { %4742 = vmatprep.subr.msk.bf16.mxu1 %vm453_vm0, %v1919_v47  ;;  %v82_v46 = vpack.c.bf16 %v73_v20, %v72_v19 }
 0x5f1   :  { %1944 = vmatpush1.bf16.msra.mxu1 %v1924_v52 }
 0x5f2   :  { %4745 = vmatprep.subr.msk.bf16.mxu1 %vm4744_vm6, %v5242_v23  ;;  %vm2004_vm6 = vcmp.eq.s32.totalorder %v5387_v24, %v6531_v0 }
 0x5f3   :  { %vm4754_vm10 = vmpackc.low %vm2006_vm7, %vm2004_vm6  ;;  %vm1993_vm6 = vcmp.eq.s32.totalorder %v5465_v30, %v6527_v54  ;;  %vm1995_vm7 = vcmp.eq.s32.totalorder %v5468_v31, %v6527_v54 }
 0x5f4   :  { %4743 = vmatmul.mubr.msk.bf16.vlgmr.msra.gmra.mxu1 %vm449_vm2, %v81_v21 }
 0x5f5   :  { %4747 = vmatpush1.bf16.msk.msra.mxu1 %vm4746_vm5, %v5242_v23  ;;  %4792 = vmatprep.mubr.msk.bf16.mxu1 %vm8354_vm3, %v5297_v3  ;;  %vm4756_vm5 = vmpackc.low %vm2003_vm9, %vm2001_vm11  ;;  %v258_v3 = vld [vmem:[%s8344_s5] sm:$0xff] }
 0x5f6   :  { %4749 = vmatprep.subr.msk.bf16.mxu1 %vm4748_vm13, %v5242_v23  ;;  %vm2000_vm13 = vcmp.eq.s32.totalorder %v5413_v26, %v6531_v0  ;;  %vm4760_vm3 = vmpackc.low %vm1999_vm1, %vm1997_vm12  ;;  %2215 = vperm.xlu0 %5205, %v258_v3  }
 0x5f7   :  { %vm4758_vm15 = vmpackc.low %vm2002_vm14, %vm2000_vm13  ;;  %vm1989_vm13 = vcmp.eq.s32.totalorder %v5491_v32, %v6527_v54  ;;  %vm1991_vm14 = vcmp.eq.s32.totalorder %v5494_v33, %v6527_v54 }
 0x5f8   :  { %vm4764_vm9 = vmpackc.low %vm1995_vm7, %vm1993_vm6 }
 0x5f9   :  { %4751 = vmatpush1.bf16.msk.msra.mxu1 %vm4750_vm4, %v5242_v23  ;;  %vm1996_vm4 = vcmp.eq.s32.totalorder %v5439_v28, %v6531_v0  ;;  %vm4768_vm1 = vmpackc.low %vm1991_vm14, %vm1989_vm13 }
 0x5fa   :  { %4753 = vmatprep.subr.msk.bf16.mxu1 %vm4752_vm8, %v5242_v23  ;;  %vm1998_vm8 = vcmp.eq.s32.totalorder %v5442_v29, %v6531_v0  ;;  %2220 = vperm.xlu0 %5205, %v259_v22  }
 0x5fb   :  { %vm4762_vm11 = vmpackc.low %vm1998_vm8, %vm1996_vm4  ;;  %vm1985_vm4 = vcmp.eq.s32.totalorder %v5307_v7, %v6527_v54  ;;  %vm1987_vm8 = vcmp.eq.s32.totalorder %v5517_v34, %v6527_v54 }
 0x5fc   :  { %vm4772_vm7 = vmpackc.low %vm1987_vm8, %vm1985_vm4 }
 0x5fd   :  { %4755 = vmatpush1.bf16.msk.msra.mxu1 %vm4754_vm10, %v5242_v23  ;;  %vm1992_vm10 = vcmp.eq.s32.totalorder %v5465_v30, %v6531_v0 }
 0x5fe   :  { %4757 = vmatprep.subr.msk.bf16.mxu1 %vm4756_vm5, %v5242_v23  ;;  %vm1994_vm5 = vcmp.eq.s32.totalorder %v5468_v31, %v6531_v0 }
 0x5ff   :  { %vm4766_vm12 = vmpackc.low %vm1994_vm5, %vm1992_vm10  ;;  %vm2029_vm10 = vcmp.eq.s32.totalorder %v5540_v35, %v6527_v54  ;;  %vm2031_vm5 = vcmp.eq.s32.totalorder %v5543_v36, %v6527_v54 }
 0x600   :  { %vm4776_vm14 = vmpackc.low %vm2031_vm5, %vm2029_vm10 }
 0x601   :  { %4759 = vmatpush1.bf16.msk.msra.mxu1 %vm4758_vm15, %v5242_v23  ;;  %vm1988_vm15 = vcmp.eq.s32.totalorder %v5491_v32, %v6531_v0 }
 0x602   :  { %4761 = vmatprep.subr.msk.bf16.mxu1 %vm4760_vm3, %v5242_v23  ;;  %vm1990_vm3 = vcmp.eq.s32.totalorder %v5494_v33, %v6531_v0 }
 0x603   :  { %vm4770_vm6 = vmpackc.low %vm1990_vm3, %vm1988_vm15  ;;  %vm2025_vm15 = vcmp.eq.s32.totalorder %v5566_v37, %v6527_v54  ;;  %vm2027_vm3 = vcmp.eq.s32.totalorder %v5569_v38, %v6527_v54 }
 0x604   :  { %vm4780_vm8 = vmpackc.low %vm2027_vm3, %vm2025_vm15 }
 0x605   :  { %4763 = vmatpush1.bf16.msk.msra.mxu1 %vm4762_vm11, %v5242_v23  ;;  %vm1984_vm11 = vcmp.eq.s32.totalorder %v5307_v7, %v6531_v0 }
 0x606   :  { %4765 = vmatprep.subr.msk.bf16.mxu1 %vm4764_vm9, %v5242_v23  ;;  %vm1986_vm9 = vcmp.eq.s32.totalorder %v5517_v34, %v6531_v0 }
 0x607   :  { %vm4774_vm13 = vmpackc.low %vm1986_vm9, %vm1984_vm11  ;;  %vm2021_vm11 = vcmp.eq.s32.totalorder %v5592_v39, %v6527_v54  ;;  %vm2023_vm9 = vcmp.eq.s32.totalorder %v5595_v40, %v6527_v54 }
 0x608   :  { %vm4784_vm5 = vmpackc.low %vm2023_vm9, %vm2021_vm11 }
 0x609   :  { %4767 = vmatpush1.bf16.msk.msra.mxu1 %vm4766_vm12, %v5242_v23  ;;  %vm2028_vm12 = vcmp.eq.s32.totalorder %v5540_v35, %v6531_v0 }
 0x60a   :  { %4769 = vmatprep.subr.msk.bf16.mxu1 %vm4768_vm1, %v5242_v23  ;;  %vm2030_vm1 = vcmp.eq.s32.totalorder %v5543_v36, %v6531_v0 }
 0x60b   :  { %vm4778_vm4 = vmpackc.low %vm2030_vm1, %vm2028_vm12  ;;  %vm2017_vm12 = vcmp.eq.s32.totalorder %v5618_v41, %v6527_v54  ;;  %vm2019_vm1 = vcmp.eq.s32.totalorder %v5621_v42, %v6527_v54  ;;  %v6687_v54 = vld [vmem:[%s8340_s1 + $0x8] sm:$0xff] }
 0x60c   :  { %vm4788_vm3 = vmpackc.low %vm2019_vm1, %vm2017_vm12  ;;  %v6695_v63 = vrot.slane %v6687_v54, %v5334_v15 }
 0x60d   :  { %4771 = vmatpush1.bf16.msk.msra.mxu1 %vm4770_vm6, %v5242_v23  ;;  %vm2024_vm6 = vcmp.eq.s32.totalorder %v5566_v37, %v6531_v0 }
 0x60e   :  { %4773 = vmatprep.subr.msk.bf16.mxu1 %vm4772_vm7, %v5242_v23  ;;  %vm2026_vm7 = vcmp.eq.s32.totalorder %v5569_v38, %v6531_v0  ;;  %vm2282_vm11 = vcmp.eq.s32.totalorder %v5331_v14, %v6695_v63 }
 0x60f   :  { %vm4782_vm10 = vmpackc.low %vm2026_vm7, %vm2024_vm6  ;;  %vm2280_vm7 = vcmp.eq.s32.totalorder %v5328_v13, %v6695_v63 }
 0x610   :  { %vm4795_vm9 = vmpackc.low %vm2282_vm11, %vm2280_vm7 }
 0x611   :  { %4775 = vmatpush1.bf16.msk.msra.mxu1 %vm4774_vm13, %v5242_v23  ;;  %vm2020_vm13 = vcmp.eq.s32.totalorder %v5592_v39, %v6531_v0 }
 0x612   :  { %4777 = vmatprep.subr.msk.bf16.mxu1 %vm4776_vm14, %v5242_v23  ;;  %vm2022_vm14 = vcmp.eq.s32.totalorder %v5595_v40, %v6531_v0 }
 0x613   :  { %vm4786_vm15 = vmpackc.low %vm2022_vm14, %vm2020_vm13  ;;  %vm2276_vm13 = vcmp.eq.s32.totalorder %v5341_v17, %v6695_v63  ;;  %vm2278_vm14 = vcmp.eq.s32.totalorder %v5344_v18, %v6695_v63 }
 0x614   :  { %vm4799_vm1 = vmpackc.low %vm2278_vm14, %vm2276_vm13 }
 0x615   :  { %4779 = vmatpush2.bf16.msk.msra.mxu1 %vm4778_vm4, %v5242_v23  ;;  %vm2016_vm4 = vcmp.eq.s32.totalorder %v5618_v41, %v6531_v0 }
 0x616   :  { %4781 = vmatprep.subr.msk.bf16.mxu1 %vm4780_vm8, %v5242_v23  ;;  %vm2018_vm8 = vcmp.eq.s32.totalorder %v5621_v42, %v6531_v0 }
 0x617   :  { %vm4790_vm6 = vmpackc.low %vm2018_vm8, %vm2016_vm4  ;;  %vm2274_vm4 = vcmp.eq.s32.totalorder %v5390_v25, %v6695_v63 }
 0x619   :  { %4783 = vmatpush2.bf16.msk.msra.mxu1 %vm4782_vm10, %v5242_v23 }
 0x61a   :  { %4785 = vmatprep.subr.msk.bf16.mxu1 %vm4784_vm5, %v5242_v23 }
 0x61d   :  { %4787 = vmatpush2.bf16.msk.msra.mxu1 %vm4786_vm15, %v5242_v23 }
 0x61e   :  { %4789 = vmatprep.subr.msk.bf16.mxu1 %vm4788_vm3, %v5242_v23 }
 0x621   :  { %4791 = vmatpush2.bf16.msk.msra.mxu1 %vm4790_vm6, %v5242_v23 }
 0x624   :  { %2137 = vmatmul.mubr.bf16.vlgmr.msra.gmra.mxu1 %v5299_v4 }
 0x625   :  { %2467 = vmatprep.mubr.bf16.mxu1 %v5241_v8 }
 0x671   :  { %v2216_v52 = vpop.permute.xlu0 %2215 }
 0x6b4   :  { %v1963_v48 = vpop.f32.mrf.mxu1 }
 0x6b5   :  { %v6673_v49 = vadd.f32 %v1963_v48, %v6507_v50  ;;  %v2148_v50 = vrot.slane %v6354_v55, %v6519_v60 }
 0x6b6   :  { %v1965_v53 = vpop.f32.mrf.mxu1 }
 0x6b7   :  { %v6676_v59 = vadd.f32 %v1965_v53, %v6510_v11  ;;  %v2152_v11 = vrot.slane %v6361_v61, %v6519_v60 }
 0x6b8   :  { %v1967_v4 = vpop.f32.mrf.mxu1 }
 0x6b9   :  { %v6679_v9 = vadd.f32 %v1967_v4, %v6513_v57  ;;  %v6700_v57 = vld [vmem:[%s8340_s1] sm:$0xff] }
 0x6ba   :  { %v1969_v12 = vpop.f32.mrf.mxu1  ;;  %v6704_v0 = vrot.slane %v6700_v57, %v5334_v15 }
 0x6bb   :  { %v6682_v10 = vadd.f32 %v1969_v12, %v6516_v58 }
 0x6bc   :  { %vm2279_vm10 = vcmp.eq.s32.totalorder %v5328_v13, %v6704_v0  ;;  %vm2281_vm5 = vcmp.eq.s32.totalorder %v5331_v14, %v6704_v0  ;;  %vm2275_vm15 = vcmp.eq.s32.totalorder %v5341_v17, %v6704_v0  ;;  %vm2277_vm3 = vcmp.eq.s32.totalorder %v5344_v18, %v6704_v0 }
 0x6bd   :  { %vm4797_vm12 = vmpackc.low %vm2281_vm5, %vm2279_vm10  ;;  %vm2271_vm7 = vcmp.eq.s32.totalorder %v5387_v24, %v6704_v0  ;;  %vm2273_vm11 = vcmp.eq.s32.totalorder %v5390_v25, %v6704_v0  ;;  %vm2267_vm13 = vcmp.eq.s32.totalorder %v5413_v26, %v6704_v0  ;;  %vm2269_vm14 = vcmp.eq.s32.totalorder %v5416_v27, %v6704_v0 }
 0x6be   :  { %vm4801_vm8 = vmpackc.low %vm2277_vm3, %vm2275_vm15 }
 0x6bf   :  { %vm4805_vm10 = vmpackc.low %vm2273_vm11, %vm2271_vm7 }
 0x6c0   :  { %vm4809_vm15 = vmpackc.low %vm2269_vm14, %vm2267_vm13 }
 0x6e4   :  { %v2138_v58 = vpop.f32.mrf.mxu1 }
 0x6e5   :  { %v2153_v56 = vmul.f32 %v2148_v50, %v2138_v58 }
 0x6e6   :  { %v2140_v44 = vpop.f32.mrf.mxu1 }
 0x6e7   :  { %v2155_v55 = vpack.c.bf16 %v2153_v56, %v2153_v56  ;;  %v2154_v2 = vmul.f32 %v2152_v11, %v2140_v44  ;;  %v2221_v11 = vpop.permute.xlu0 %2220 }
 0x6e8   :  { %v2142_v61 = vpop.f32.mrf.mxu1 }
 0x6e9   :  { %v2156_v1 = vpack.c.bf16 %v2154_v2, %v2154_v2  ;;  %v2161_v47 = vsel %vm453_vm0, %v2155_v55, 0  ;;  %v6857_v2 = vld [vmem:[%s8341_s2] sm:$0xff] }
 0x6ea   :  { %v2143_v45 = vpop.f32.mrf.mxu1  ;;  %v2420_v20 = vrot.slane %v6857_v2, %v5334_v15 }
 0x6eb   :  { %4793 = vmatprep.subr.msk.bf16.mxu0 %vm453_vm0, %v2156_v1  ;;  %vm2272_vm0 = vcmp.eq.s32.totalorder %v5387_v24, %v6695_v63 }
 0x6ec   :  { %2181 = vmatpush1.bf16.msra.mxu0 %v2161_v47  ;;  %vm4803_vm6 = vmpackc.low %vm2274_vm4, %vm2272_vm0  ;;  %vm2263_vm0 = vcmp.eq.s32.totalorder %v5439_v28, %v6704_v0  ;;  %vm2265_vm4 = vcmp.eq.s32.totalorder %v5442_v29, %v6704_v0 }
 0x6ed   :  { %4796 = vmatprep.subr.msk.bf16.mxu0 %vm4795_vm9, %v5242_v23  ;;  %vm2270_vm9 = vcmp.eq.s32.totalorder %v5416_v27, %v6695_v63  ;;  %vm4813_vm7 = vmpackc.low %vm2265_vm4, %vm2263_vm0  ;;  %vm2254_vm0 = vcmp.eq.s32.totalorder %v5517_v34, %v6695_v63 }
 0x6ef   :  { %4794 = vmatmul.mubr.msk.bf16.vlgmr.msra.gmra.mxu0 %vm449_vm2, %v82_v46  ;;  %vm2268_vm2 = vcmp.eq.s32.totalorder %v5413_v26, %v6695_v63 }
 0x6f0   :  { %4798 = vmatpush1.bf16.msk.msra.mxu0 %vm4797_vm12, %v5242_v23  ;;  %vm4807_vm5 = vmpackc.low %vm2270_vm9, %vm2268_vm2  ;;  %vm2264_vm12 = vcmp.eq.s32.totalorder %v5439_v28, %v6695_v63  ;;  %vm2259_vm2 = vcmp.eq.s32.totalorder %v5465_v30, %v6704_v0  ;;  %vm2261_vm9 = vcmp.eq.s32.totalorder %v5468_v31, %v6704_v0 }
 0x6f1   :  { %4800 = vmatprep.subr.msk.bf16.mxu0 %vm4799_vm1, %v5242_v23  ;;  %vm2266_vm1 = vcmp.eq.s32.totalorder %v5442_v29, %v6695_v63  ;;  %vm4817_vm13 = vmpackc.low %vm2261_vm9, %vm2259_vm2  ;;  %vm2298_vm2 = vcmp.eq.s32.totalorder %v5543_v36, %v6695_v63 }
 0x6f2   :  { %vm4811_vm3 = vmpackc.low %vm2266_vm1, %vm2264_vm12  ;;  %vm2255_vm12 = vcmp.eq.s32.totalorder %v5491_v32, %v6704_v0  ;;  %vm2257_vm1 = vcmp.eq.s32.totalorder %v5494_v33, %v6704_v0 }
 0x6f4   :  { %4802 = vmatpush1.bf16.msk.msra.mxu0 %vm4801_vm8, %v5242_v23  ;;  %vm2260_vm8 = vcmp.eq.s32.totalorder %v5465_v30, %v6695_v63 }
 0x6f5   :  { %4804 = vmatprep.subr.msk.bf16.mxu0 %vm4803_vm6, %v5242_v23  ;;  %vm2262_vm6 = vcmp.eq.s32.totalorder %v5468_v31, %v6695_v63 }
 0x6f6   :  { %vm4815_vm11 = vmpackc.low %vm2262_vm6, %vm2260_vm8  ;;  %vm2251_vm8 = vcmp.eq.s32.totalorder %v5307_v7, %v6704_v0  ;;  %vm2253_vm6 = vcmp.eq.s32.totalorder %v5517_v34, %v6704_v0 }
 0x6f8   :  { %4806 = vmatpush1.bf16.msk.msra.mxu0 %vm4805_vm10, %v5242_v23  ;;  %vm2256_vm10 = vcmp.eq.s32.totalorder %v5491_v32, %v6695_v63 }
 0x6f9   :  { %4808 = vmatprep.subr.msk.bf16.mxu0 %vm4807_vm5, %v5242_v23  ;;  %vm2258_vm5 = vcmp.eq.s32.totalorder %v5494_v33, %v6695_v63 }
 0x6fa   :  { %vm4819_vm14 = vmpackc.low %vm2258_vm5, %vm2256_vm10  ;;  %vm2295_vm10 = vcmp.eq.s32.totalorder %v5540_v35, %v6704_v0  ;;  %vm2297_vm5 = vcmp.eq.s32.totalorder %v5543_v36, %v6704_v0 }
 0x6fc   :  { %4810 = vmatpush1.bf16.msk.msra.mxu0 %vm4809_vm15, %v5242_v23  ;;  %vm4821_vm15 = vmpackc.low %vm2257_vm1, %vm2255_vm12  ;;  %vm2294_vm12 = vcmp.eq.s32.totalorder %v5569_v38, %v6695_v63 }
 0x6fd   :  { %4812 = vmatprep.subr.msk.bf16.mxu0 %vm4811_vm3, %v5242_v23  ;;  %vm2252_vm3 = vcmp.eq.s32.totalorder %v5307_v7, %v6695_v63 }
 0x6fe   :  { %vm4823_vm4 = vmpackc.low %vm2254_vm0, %vm2252_vm3  ;;  %vm2293_vm3 = vcmp.eq.s32.totalorder %v5569_v38, %v6704_v0 }
 0x700   :  { %4814 = vmatpush1.bf16.msk.msra.mxu0 %vm4813_vm7, %v5242_v23  ;;  %vm4825_vm7 = vmpackc.low %vm2253_vm6, %vm2251_vm8  ;;  %vm2290_vm8 = vcmp.eq.s32.totalorder %v5595_v40, %v6695_v63 }
 0x701   :  { %4816 = vmatprep.subr.msk.bf16.mxu0 %vm4815_vm11, %v5242_v23  ;;  %vm2296_vm11 = vcmp.eq.s32.totalorder %v5540_v35, %v6695_v63 }
 0x702   :  { %vm4827_vm9 = vmpackc.low %vm2298_vm2, %vm2296_vm11  ;;  %vm2289_vm11 = vcmp.eq.s32.totalorder %v5595_v40, %v6704_v0 }
 0x704   :  { %4818 = vmatpush1.bf16.msk.msra.mxu0 %vm4817_vm13, %v5242_v23  ;;  %vm4829_vm13 = vmpackc.low %vm2297_vm5, %vm2295_vm10  ;;  %vm2286_vm10 = vcmp.eq.s32.totalorder %v5621_v42, %v6695_v63 }
 0x705   :  { %4820 = vmatprep.subr.msk.bf16.mxu0 %vm4819_vm14, %v5242_v23  ;;  %vm2292_vm14 = vcmp.eq.s32.totalorder %v5566_v37, %v6695_v63 }
 0x706   :  { %vm4831_vm1 = vmpackc.low %vm2294_vm12, %vm2292_vm14  ;;  %vm2285_vm14 = vcmp.eq.s32.totalorder %v5621_v42, %v6704_v0 }
 0x708   :  { %4822 = vmatpush1.bf16.msk.msra.mxu0 %vm4821_vm15, %v5242_v23  ;;  %vm2291_vm15 = vcmp.eq.s32.totalorder %v5566_v37, %v6704_v0 }
 0x709   :  { %4824 = vmatprep.subr.msk.bf16.mxu0 %vm4823_vm4, %v5242_v23  ;;  %vm4833_vm0 = vmpackc.low %vm2293_vm3, %vm2291_vm15  ;;  %vm2288_vm4 = vcmp.eq.s32.totalorder %v5592_v39, %v6695_v63 }
 0x70a   :  { %vm4835_vm6 = vmpackc.low %vm2290_vm8, %vm2288_vm4  ;;  %vm2431_vm8 = vcmask 130048  }
 0x70c   :  { %4826 = vmatpush1.bf16.msk.msra.mxu0 %vm4825_vm7, %v5242_v23  ;;  %vm2287_vm7 = vcmp.eq.s32.totalorder %v5592_v39, %v6704_v0 }
 0x70d   :  { %4828 = vmatprep.subr.msk.bf16.mxu0 %vm4827_vm9, %v5242_v23  ;;  %vm4837_vm2 = vmpackc.low %vm2289_vm11, %vm2287_vm7  ;;  %vm2284_vm9 = vcmp.eq.s32.totalorder %v5618_v41, %v6695_v63 }
 0x70e   :  { %vm4839_vm5 = vmpackc.low %vm2286_vm10, %vm2284_vm9 }
 0x710   :  { %4830 = vmatpush2.bf16.msk.msra.mxu0 %vm4829_vm13, %v5242_v23  ;;  %vm2283_vm13 = vcmp.eq.s32.totalorder %v5618_v41, %v6704_v0 }
 0x711   :  { %4832 = vmatprep.subr.msk.bf16.mxu0 %vm4831_vm1, %v5242_v23  ;;  %vm4841_vm12 = vmpackc.low %vm2285_vm14, %vm2283_vm13  ;;  %vm8355_vm1 = vcmask 523264  }
 0x712   :  { %vm8356_vm15 = vmmov %vm8355_vm1 }
 0x713   :  { %vm8357_vm3 = vmmov %vm8355_vm1 }
 0x714   :  { %4834 = vmatpush2.bf16.msk.msra.mxu0 %vm4833_vm0, %v5242_v23 }
 0x715   :  { %4836 = vmatprep.subr.msk.bf16.mxu0 %vm4835_vm6, %v5242_v23 }
 0x718   :  { %4838 = vmatpush2.bf16.msk.msra.mxu0 %vm4837_vm2, %v5242_v23 }
 0x719   :  { %4840 = vmatprep.subr.msk.bf16.mxu0 %vm4839_vm5, %v5242_v23 }
 0x71c   :  { %4842 = vmatpush2.bf16.msk.msra.mxu0 %vm4841_vm12, %v5242_v23 }
 0x7af   :  { %v2200_v21 = vpop.f32.mrf.mxu0 }
 0x7b0   :  { %v2209_v3 = vadd.f32 %v2200_v21, %v6673_v49  ;;  %v6865_v21 = vrot.slane %v6687_v54, %v5337_v16 }
 0x7b1   :  { %v2202_v22 = vpop.f32.mrf.mxu0 }
 0x7b2   :  { %v2223_v48 = vadd.f32 %v2216_v52, %v2209_v3  ;;  %v2210_v53 = vadd.f32 %v2202_v22, %v6676_v59  ;;  %v85_v22 = vld [vmem:[%s8343_s4 + $0x10] sm:$0xff]  ;;  %vm2561_vm0 = vcmp.eq.s32.totalorder %v5328_v13, %v6865_v21  ;;  %vm2563_vm4 = vcmp.eq.s32.totalorder %v5331_v14, %v6865_v21 }
 0x7b3   :  { %v2204_v4 = vpop.f32.mrf.mxu0  ;;  %vm4846_vm6 = vmpackc.low %vm2563_vm4, %vm2561_vm0  ;;  %vm2557_vm2 = vcmp.eq.s32.totalorder %v5341_v17, %v6865_v21  ;;  %vm2559_vm9 = vcmp.eq.s32.totalorder %v5344_v18, %v6865_v21  ;;  %vm2553_vm12 = vcmp.eq.s32.totalorder %v5387_v24, %v6865_v21 }
 0x7b4   :  { %2227 = vst [vmem:[#allocation2] sm:$0xff] %v2223_v48  ;;  %v2224_v12 = vadd.f32 %v2216_v52, %v2210_v53  ;;  %v2211_v50 = vadd.f32 %v2204_v4, %v6679_v9  ;;  %vm4850_vm5 = vmpackc.low %vm2559_vm9, %vm2557_vm2 }
 0x7b5   :  { %v2206_v63 = vpop.f32.mrf.mxu0 }
 0x7b6   :  { %2228 = vst.msk [vmem:[#allocation2 + $0x8] sm:$0xff] %vm8355_vm1, %v2224_v12  ;;  %v2225_v58 = vadd.f32 %v2221_v11, %v2211_v50  ;;  %v2212_v56 = vadd.f32 %v2206_v63, %v6682_v10  ;;  %v6852_v10 = vld [vmem:[%s8341_s2 + $0x8] sm:$0xff]  ;;  %v6880_v12 = vrot.slane %v6700_v57, %v5337_v16  ;;  %v83_v50 = vld [vmem:[%s8343_s4] sm:$0xff]  ;;  %vm2555_vm1 = vcmp.eq.s32.totalorder %v5390_v25, %v6865_v21 }
 0x7b7   :  { %v2424_v19 = vrot.slane %v6852_v10, %v5334_v15  ;;  %vm4854_vm0 = vmpackc.low %vm2555_vm1, %vm2553_vm12 }
 0x7b8   :  { %2229 = vst [vmem:[#allocation2 + $0x10] sm:$0xff] %v2225_v58  ;;  %v2226_v44 = vadd.f32 %v2221_v11, %v2212_v56  ;;  %v6843_v59 = vpack.c.bf16 %v2225_v58, %v2223_v48  ;;  %v86_v48 = vld [vmem:[%s8343_s4 + $0x18] sm:$0xff]  ;;  %v84_v11 = vld [vmem:[%s8343_s4 + $0x8] sm:$0xff]  ;;  %vm2560_vm7 = vcmp.eq.s32.totalorder %v5328_v13, %v6880_v12  ;;  %vm2562_vm11 = vcmp.eq.s32.totalorder %v5331_v14, %v6880_v12 }
 0x7b9   :  { %v102_v4 = vpack.c.bf16 %v86_v48, %v85_v22  ;;  %v101_v63 = vpack.c.bf16 %v84_v11, %v83_v50  ;;  %vm4848_vm10 = vmpackc.low %vm2562_vm11, %vm2560_vm7  ;;  %vm2556_vm13 = vcmp.eq.s32.totalorder %v5341_v17, %v6880_v12  ;;  %vm2558_vm14 = vcmp.eq.s32.totalorder %v5344_v18, %v6880_v12 }
 0x7ba   :  { %2230 = vst.msk [vmem:[#allocation2 + $0x18] sm:$0xff] %vm8356_vm15, %v2226_v44  ;;  %vm8358_vm15 = vmmov %vm8357_vm3  ;;  %vm2552_vm4 = vcmp.eq.s32.totalorder %v5387_v24, %v6880_v12  ;;  %vm2549_vm7 = vcmp.eq.s32.totalorder %v5413_v26, %v6865_v21  ;;  %vm2551_vm11 = vcmp.eq.s32.totalorder %v5416_v27, %v6865_v21  ;;  %v2698_v22 = vrot.slane %v6857_v2, %v5337_v16 }
 0x7bb   :  { %vm4858_vm9 = vmpackc.low %vm2551_vm11, %vm2549_vm7  ;;  %vm2540_vm11 = vcmp.eq.s32.totalorder %v5465_v30, %v6880_v12 }
 0x7bd   :  { %v2232_v49 = vld [vmem:[#allocation2 + $0x8] sm:$0xff] }
 0x7c1   :  { %v2234_v0 = vld [vmem:[#allocation2 + $0x18] sm:$0xff] }
 0x7c2   :  { %v6841_v55 = vpack.c.bf16 %v2234_v0, %v2232_v49 }
 0x7c4   :  { %4843 = vmatprep.mubr.msk.bf16.mxu0 %vm8357_vm3, %v6841_v55  ;;  %vm4852_vm3 = vmpackc.low %vm2558_vm14, %vm2556_vm13  ;;  %vm2545_vm13 = vcmp.eq.s32.totalorder %v5439_v28, %v6865_v21  ;;  %vm2547_vm14 = vcmp.eq.s32.totalorder %v5442_v29, %v6865_v21 }
 0x7c5   :  { %2407 = vmatmul.mubr.bf16.vlgmr.msra.gmra.mxu0 %v6843_v59  ;;  %vm4862_vm1 = vmpackc.low %vm2547_vm14, %vm2545_vm13  ;;  %vm2536_vm14 = vcmp.eq.s32.totalorder %v5491_v32, %v6880_v12 }
 0x7c6   :  { %2744 = vmatprep.mubr.bf16.mxu0 %v5241_v8 }
 0x885   :  { %v2408_v9 = vpop.f32.mrf.mxu0 }
 0x886   :  { %v2425_v3 = vmul.f32 %v2420_v20, %v2408_v9 }
 0x887   :  { %v2410_v61 = vpop.f32.mrf.mxu0 }
 0x888   :  { %v2426_v46 = vmul.f32 %v2424_v19, %v2410_v61 }
 0x889   :  { %v2412_v1 = vpop.f32.mrf.mxu0 }
 0x88a   :  { %v2427_v45 = vmul.f32 %v2420_v20, %v2412_v1 }
 0x88b   :  { %v2414_v47 = vpop.f32.mrf.mxu0 }
 0x88c   :  { %v2428_v52 = vmul.f32 %v2424_v19, %v2414_v47  ;;  %v2429_v15 = vpack.c.bf16 %v2427_v45, %v2425_v3  ;;  %v7024_v3 = vrot.slane %v6687_v54, %v5689_v51 }
 0x88e   :  { %v2430_v53 = vpack.c.bf16 %v2428_v52, %v2426_v46 }
 0x890   :  { %2449 = vmatprep.subr.bf16.mxu1 %v2430_v53 }
 0x891   :  { %2450 = vmatpush1.bf16.msra.mxu1 %v2429_v15 }
 0x892   :  { %2495 = vmatprep.subr.bf16.mxu1 %v6841_v55 }
 0x894   :  { %4844 = vmatmul.mubr.msk.bf16.vlgmr.msra.gmra.mxu1 %vm2431_vm8, %v102_v4  ;;  %v7030_v4 = vrot.slane %v6700_v57, %v5689_v51 }
 0x895   :  { %2496 = vmatpush1.bf16.msra.mxu1 %v6843_v59  ;;  %2513 = vmatprep.mubr.bf16.mxu1 %v5241_v8 }
 0x896   :  { %4847 = vmatprep.subr.msk.bf16.mxu1 %vm4846_vm6, %v5242_v23  ;;  %vm2554_vm6 = vcmp.eq.s32.totalorder %v5390_v25, %v6880_v12 }
 0x897   :  { %vm4856_vm2 = vmpackc.low %vm2554_vm6, %vm2552_vm4  ;;  %vm2543_vm4 = vcmp.eq.s32.totalorder %v5468_v31, %v6865_v21 }
 0x89c   :  { %4845 = vmatmul.mubr.msk.bf16.vlgmr.msra.gmra.mxu1 %vm2431_vm8, %v101_v63  ;;  %v88_v63 = vld [vmem:[%s8343_s4 + $0x28] sm:$0xff] }
 0x89d   :  { %4849 = vmatpush1.bf16.msk.msra.mxu1 %vm4848_vm10, %v5242_v23  ;;  %4894 = vmatprep.mubr.msk.bf16.mxu1 %vm8358_vm15, %v6841_v55  ;;  %vm2548_vm10 = vcmp.eq.s32.totalorder %v5413_v26, %v6880_v12  ;;  %vm2544_vm15 = vcmp.eq.s32.totalorder %v5439_v28, %v6880_v12 }
 0x89e   :  { %4851 = vmatprep.subr.msk.bf16.mxu1 %vm4850_vm5, %v5242_v23  ;;  %vm2550_vm5 = vcmp.eq.s32.totalorder %v5416_v27, %v6880_v12 }
 0x89f   :  { %vm4860_vm12 = vmpackc.low %vm2550_vm5, %vm2548_vm10  ;;  %vm2539_vm10 = vcmp.eq.s32.totalorder %v5494_v33, %v6865_v21 }
 0x8a1   :  { %4853 = vmatpush1.bf16.msk.msra.mxu1 %vm4852_vm3, %v5242_v23  ;;  %vm2546_vm3 = vcmp.eq.s32.totalorder %v5442_v29, %v6880_v12 }
 0x8a2   :  { %4855 = vmatprep.subr.msk.bf16.mxu1 %vm4854_vm0, %v5242_v23  ;;  %vm2541_vm0 = vcmp.eq.s32.totalorder %v5465_v30, %v6865_v21  ;;  %vm4864_vm6 = vmpackc.low %vm2546_vm3, %vm2544_vm15  ;;  %vm2535_vm15 = vcmp.eq.s32.totalorder %v5517_v34, %v6865_v21 }
 0x8a3   :  { %vm4866_vm7 = vmpackc.low %vm2543_vm4, %vm2541_vm0  ;;  %vm2532_vm4 = vcmp.eq.s32.totalorder %v5307_v7, %v6880_v12 }
 0x8a5   :  { %4857 = vmatpush1.bf16.msk.msra.mxu1 %vm4856_vm2, %v5242_v23  ;;  %vm2542_vm2 = vcmp.eq.s32.totalorder %v5468_v31, %v6880_v12 }
 0x8a6   :  { %4859 = vmatprep.subr.msk.bf16.mxu1 %vm4858_vm9, %v5242_v23  ;;  %vm2537_vm9 = vcmp.eq.s32.totalorder %v5491_v32, %v6865_v21  ;;  %vm4868_vm5 = vmpackc.low %vm2542_vm2, %vm2540_vm11  ;;  %vm2579_vm11 = vcmp.eq.s32.totalorder %v5543_v36, %v6865_v21 }
 0x8a7   :  { %vm4870_vm13 = vmpackc.low %vm2539_vm10, %vm2537_vm9  ;;  %vm2576_vm10 = vcmp.eq.s32.totalorder %v5540_v35, %v6880_v12 }
 0x8a9   :  { %4861 = vmatpush1.bf16.msk.msra.mxu1 %vm4860_vm12, %v5242_v23  ;;  %vm2538_vm12 = vcmp.eq.s32.totalorder %v5494_v33, %v6880_v12 }
 0x8aa   :  { %4863 = vmatprep.subr.msk.bf16.mxu1 %vm4862_vm1, %v5242_v23  ;;  %vm2533_vm1 = vcmp.eq.s32.totalorder %v5307_v7, %v6865_v21  ;;  %vm4872_vm3 = vmpackc.low %vm2538_vm12, %vm2536_vm14  ;;  %vm2575_vm14 = vcmp.eq.s32.totalorder %v5569_v38, %v6865_v21 }
 0x8ab   :  { %vm4874_vm0 = vmpackc.low %vm2535_vm15, %vm2533_vm1  ;;  %vm2572_vm15 = vcmp.eq.s32.totalorder %v5566_v37, %v6880_v12 }
 0x8ad   :  { %4865 = vmatpush1.bf16.msk.msra.mxu1 %vm4864_vm6, %v5242_v23  ;;  %vm2534_vm6 = vcmp.eq.s32.totalorder %v5517_v34, %v6880_v12 }
 0x8ae   :  { %4867 = vmatprep.subr.msk.bf16.mxu1 %vm4866_vm7, %v5242_v23  ;;  %vm2577_vm7 = vcmp.eq.s32.totalorder %v5540_v35, %v6865_v21  ;;  %vm4876_vm2 = vmpackc.low %vm2534_vm6, %vm2532_vm4  ;;  %vm2571_vm4 = vcmp.eq.s32.totalorder %v5595_v40, %v6865_v21 }
 0x8af   :  { %vm4878_vm9 = vmpackc.low %vm2579_vm11, %vm2577_vm7  ;;  %vm2568_vm11 = vcmp.eq.s32.totalorder %v5592_v39, %v6880_v12 }
 0x8b1   :  { %4869 = vmatpush1.bf16.msk.msra.mxu1 %vm4868_vm5, %v5242_v23  ;;  %vm2578_vm5 = vcmp.eq.s32.totalorder %v5543_v36, %v6880_v12 }
 0x8b2   :  { %4871 = vmatprep.subr.msk.bf16.mxu1 %vm4870_vm13, %v5242_v23  ;;  %vm2573_vm13 = vcmp.eq.s32.totalorder %v5566_v37, %v6865_v21  ;;  %vm4880_vm12 = vmpackc.low %vm2578_vm5, %vm2576_vm10  ;;  %vm2567_vm10 = vcmp.eq.s32.totalorder %v5621_v42, %v6865_v21 }
 0x8b3   :  { %vm4882_vm1 = vmpackc.low %vm2575_vm14, %vm2573_vm13  ;;  %vm2564_vm14 = vcmp.eq.s32.totalorder %v5618_v41, %v6880_v12 }
 0x8b5   :  { %4873 = vmatpush1.bf16.msk.msra.mxu1 %vm4872_vm3, %v5242_v23  ;;  %vm2574_vm3 = vcmp.eq.s32.totalorder %v5569_v38, %v6880_v12 }
 0x8b6   :  { %4875 = vmatprep.subr.msk.bf16.mxu1 %vm4874_vm0, %v5242_v23  ;;  %vm2569_vm0 = vcmp.eq.s32.totalorder %v5592_v39, %v6865_v21  ;;  %vm4884_vm6 = vmpackc.low %vm2574_vm3, %vm2572_vm15  ;;  %vm2796_vm15 = vcmp.eq.s32.totalorder %v5328_v13, %v7024_v3  ;;  %vm2798_vm3 = vcmp.eq.s32.totalorder %v5331_v14, %v7024_v3 }
 0x8b7   :  { %vm4886_vm7 = vmpackc.low %vm2571_vm4, %vm2569_vm0  ;;  %vm2795_vm4 = vcmp.eq.s32.totalorder %v5328_v13, %v7030_v4 }
 0x8b8   :  { %vm4896_vm0 = vmpackc.low %vm2798_vm3, %vm2796_vm15  ;;  %vm2787_vm3 = vcmp.eq.s32.totalorder %v5387_v24, %v7030_v4 }
 0x8b9   :  { %4877 = vmatpush1.bf16.msk.msra.mxu1 %vm4876_vm2, %v5242_v23  ;;  %vm2570_vm2 = vcmp.eq.s32.totalorder %v5595_v40, %v6880_v12 }
 0x8ba   :  { %4879 = vmatprep.subr.msk.bf16.mxu1 %vm4878_vm9, %v5242_v23  ;;  %vm2565_vm9 = vcmp.eq.s32.totalorder %v5618_v41, %v6865_v21  ;;  %vm4888_vm5 = vmpackc.low %vm2570_vm2, %vm2568_vm11  ;;  %v2702_v21 = vrot.slane %v6852_v10, %v5337_v16  ;;  %v87_v16 = vld [vmem:[%s8343_s4 + $0x20] sm:$0xff]  ;;  %vm2794_vm11 = vcmp.eq.s32.totalorder %v5344_v18, %v7024_v3 }
 0x8bb   :  { %vm4890_vm13 = vmpackc.low %vm2567_vm10, %vm2565_vm9  ;;  %vm2791_vm10 = vcmp.eq.s32.totalorder %v5341_v17, %v7030_v4 }
 0x8bd   :  { %4881 = vmatpush2.bf16.msk.msra.mxu1 %vm4880_vm12, %v5242_v23  ;;  %vm2566_vm12 = vcmp.eq.s32.totalorder %v5621_v42, %v6880_v12 }
 0x8be   :  { %4883 = vmatprep.subr.msk.bf16.mxu1 %vm4882_vm1, %v5242_v23  ;;  %vm4892_vm1 = vmpackc.low %vm2566_vm12, %vm2564_vm14  ;;  %vm2790_vm14 = vcmp.eq.s32.totalorder %v5390_v25, %v7024_v3  ;;  %vm8359_vm12 = vcmask 523264  }
 0x8c1   :  { %4885 = vmatpush2.bf16.msk.msra.mxu1 %vm4884_vm6, %v5242_v23  ;;  %vm2797_vm6 = vcmp.eq.s32.totalorder %v5331_v14, %v7030_v4 }
 0x8c2   :  { %4887 = vmatprep.subr.msk.bf16.mxu1 %vm4886_vm7, %v5242_v23  ;;  %vm2792_vm7 = vcmp.eq.s32.totalorder %v5341_v17, %v7024_v3  ;;  %vm4898_vm2 = vmpackc.low %vm2797_vm6, %vm2795_vm4  ;;  %vm2784_vm4 = vcmp.eq.s32.totalorder %v5413_v26, %v7024_v3  ;;  %vm2786_vm6 = vcmp.eq.s32.totalorder %v5416_v27, %v7024_v3 }
 0x8c3   :  { %vm4900_vm9 = vmpackc.low %vm2794_vm11, %vm2792_vm7 }
 0x8c4   :  { %vm4908_vm11 = vmpackc.low %vm2786_vm6, %vm2784_vm4  ;;  %vm2775_vm6 = vcmp.eq.s32.totalorder %v5465_v30, %v7030_v4 }
 0x8c5   :  { %4889 = vmatpush2.bf16.msk.msra.mxu1 %vm4888_vm5, %v5242_v23  ;;  %vm2793_vm5 = vcmp.eq.s32.totalorder %v5344_v18, %v7030_v4 }
 0x8c6   :  { %4891 = vmatprep.subr.msk.bf16.mxu1 %vm4890_vm13, %v5242_v23  ;;  %vm2788_vm13 = vcmp.eq.s32.totalorder %v5387_v24, %v7024_v3 }
 0x8c7   :  { %vm4904_vm15 = vmpackc.low %vm2790_vm14, %vm2788_vm13 }
 0x8c9   :  { %4893 = vmatpush2.bf16.msk.msra.mxu1 %vm4892_vm1, %v5242_v23  ;;  %vm4902_vm1 = vmpackc.low %vm2793_vm5, %vm2791_vm10  ;;  %vm2780_vm10 = vcmp.eq.s32.totalorder %v5439_v28, %v7024_v3  ;;  %vm2782_vm5 = vcmp.eq.s32.totalorder %v5442_v29, %v7024_v3 }
 0x8ca   :  { %vm4912_vm14 = vmpackc.low %vm2782_vm5, %vm2780_vm10  ;;  %vm2771_vm5 = vcmp.eq.s32.totalorder %v5491_v32, %v7030_v4 }
 0x8cc   :  { %2685 = vmatmul.mubr.bf16.vlgmr.msra.gmra.mxu1 %v6843_v59 }
 0x8cd   :  { %2979 = vmatprep.mubr.bf16.mxu1 %v5241_v8 }
 0x954   :  { %v2469_v58 = vpop.f32.mrf.mxu1 }
 0x956   :  { %v2471_v56 = vpop.f32.mrf.mxu1 }
 0x958   :  { %v2473_v44 = vpop.f32.mrf.mxu1 }
 0x95a   :  { %v2475_v49 = vpop.f32.mrf.mxu1 }
 0x95c   :  { %v2515_v0 = vpop.f32.mrf.mxu1 }
 0x95d   :  { %v7012_v9 = vadd.f32 %v2515_v0, %v2469_v58 }
 0x95e   :  { %v2517_v61 = vpop.f32.mrf.mxu1 }
 0x95f   :  { %v7014_v19 = vadd.f32 %v2517_v61, %v2471_v56 }
 0x960   :  { %v2519_v20 = vpop.f32.mrf.mxu1 }
 0x961   :  { %v7016_v1 = vadd.f32 %v2519_v20, %v2473_v44  ;;  %v103_v44 = vpack.c.bf16 %v88_v63, %v87_v16 }
 0x962   :  { %v2521_v45 = vpop.f32.mrf.mxu1 }
 0x963   :  { %v7018_v47 = vadd.f32 %v2521_v45, %v2475_v49 }
 0x98c   :  { %v2686_v46 = vpop.f32.mrf.mxu1 }
 0x98d   :  { %v2703_v11 = vmul.f32 %v2698_v22, %v2686_v46 }
 0x98e   :  { %v2688_v52 = vpop.f32.mrf.mxu1 }
 0x98f   :  { %v2704_v12 = vmul.f32 %v2702_v21, %v2688_v52 }
 0x990   :  { %v2690_v48 = vpop.f32.mrf.mxu1 }
 0x991   :  { %v2705_v53 = vmul.f32 %v2698_v22, %v2690_v48  ;;  %v2937_v48 = vrot.slane %v6852_v10, %v5689_v51 }
 0x992   :  { %v2692_v15 = vpop.f32.mrf.mxu1 }
 0x993   :  { %v2706_v50 = vmul.f32 %v2702_v21, %v2692_v15  ;;  %v2707_v56 = vpack.c.bf16 %v2705_v53, %v2703_v11 }
 0x995   :  { %v2708_v58 = vpack.c.bf16 %v2706_v50, %v2704_v12  ;;  %v90_v50 = vld [vmem:[%s8343_s4 + $0x38] sm:$0xff] }
 0x997   :  { %2726 = vmatprep.subr.bf16.mxu0 %v2708_v58 }
 0x998   :  { %2727 = vmatpush1.bf16.msra.mxu0 %v2707_v56 }
 0x999   :  { %4897 = vmatprep.subr.msk.bf16.mxu0 %vm4896_vm0, %v5242_v23  ;;  %vm2789_vm0 = vcmp.eq.s32.totalorder %v5390_v25, %v7030_v4 }
 0x99a   :  { %vm4906_vm7 = vmpackc.low %vm2789_vm0, %vm2787_vm3  ;;  %vm2778_vm3 = vcmp.eq.s32.totalorder %v5468_v31, %v7024_v3 }
 0x99b   :  { %4895 = vmatmul.mubr.msk.bf16.vlgmr.msra.gmra.mxu0 %vm2431_vm8, %v103_v44 }
 0x99c   :  { %4899 = vmatpush1.bf16.msk.msra.mxu0 %vm4898_vm2, %v5242_v23  ;;  %4944 = vmatprep.mubr.msk.bf16.mxu0 %vm8359_vm12, %v6841_v55  ;;  %vm2783_vm2 = vcmp.eq.s32.totalorder %v5413_v26, %v7030_v4  ;;  %vm2779_vm12 = vcmp.eq.s32.totalorder %v5439_v28, %v7030_v4 }
 0x99d   :  { %4901 = vmatprep.subr.msk.bf16.mxu0 %vm4900_vm9, %v5242_v23  ;;  %vm2785_vm9 = vcmp.eq.s32.totalorder %v5416_v27, %v7030_v4 }
 0x99e   :  { %vm4910_vm13 = vmpackc.low %vm2785_vm9, %vm2783_vm2  ;;  %vm2774_vm2 = vcmp.eq.s32.totalorder %v5494_v33, %v7024_v3 }
 0x9a0   :  { %4903 = vmatpush1.bf16.msk.msra.mxu0 %vm4902_vm1, %v5242_v23  ;;  %vm2781_vm1 = vcmp.eq.s32.totalorder %v5442_v29, %v7030_v4 }
 0x9a1   :  { %4905 = vmatprep.subr.msk.bf16.mxu0 %vm4904_vm15, %v5242_v23  ;;  %vm2776_vm15 = vcmp.eq.s32.totalorder %v5465_v30, %v7024_v3  ;;  %vm4914_vm0 = vmpackc.low %vm2781_vm1, %vm2779_vm12  ;;  %vm2770_vm12 = vcmp.eq.s32.totalorder %v5517_v34, %v7024_v3 }
 0x9a2   :  { %vm4916_vm4 = vmpackc.low %vm2778_vm3, %vm2776_vm15  ;;  %vm2767_vm3 = vcmp.eq.s32.totalorder %v5307_v7, %v7030_v4 }
 0x9a4   :  { %4907 = vmatpush1.bf16.msk.msra.mxu0 %vm4906_vm7, %v5242_v23  ;;  %vm2777_vm7 = vcmp.eq.s32.totalorder %v5468_v31, %v7030_v4 }
 0x9a5   :  { %4909 = vmatprep.subr.msk.bf16.mxu0 %vm4908_vm11, %v5242_v23  ;;  %vm2772_vm11 = vcmp.eq.s32.totalorder %v5491_v32, %v7024_v3  ;;  %vm4918_vm9 = vmpackc.low %vm2777_vm7, %vm2775_vm6  ;;  %vm2814_vm6 = vcmp.eq.s32.totalorder %v5543_v36, %v7024_v3 }
 0x9a6   :  { %vm4920_vm10 = vmpackc.low %vm2774_vm2, %vm2772_vm11  ;;  %vm2811_vm2 = vcmp.eq.s32.totalorder %v5540_v35, %v7030_v4 }
 0x9a8   :  { %4911 = vmatpush1.bf16.msk.msra.mxu0 %vm4910_vm13, %v5242_v23  ;;  %vm2773_vm13 = vcmp.eq.s32.totalorder %v5494_v33, %v7030_v4 }
 0x9a9   :  { %4913 = vmatprep.subr.msk.bf16.mxu0 %vm4912_vm14, %v5242_v23  ;;  %vm2768_vm14 = vcmp.eq.s32.totalorder %v5307_v7, %v7024_v3  ;;  %vm4922_vm1 = vmpackc.low %vm2773_vm13, %vm2771_vm5  ;;  %vm2810_vm5 = vcmp.eq.s32.totalorder %v5569_v38, %v7024_v3 }
 0x9aa   :  { %vm4924_vm15 = vmpackc.low %vm2770_vm12, %vm2768_vm14  ;;  %vm2807_vm12 = vcmp.eq.s32.totalorder %v5566_v37, %v7030_v4 }
 0x9ac   :  { %4915 = vmatpush1.bf16.msk.msra.mxu0 %vm4914_vm0, %v5242_v23  ;;  %vm2769_vm0 = vcmp.eq.s32.totalorder %v5517_v34, %v7030_v4 }
 0x9ad   :  { %4917 = vmatprep.subr.msk.bf16.mxu0 %vm4916_vm4, %v5242_v23  ;;  %vm2812_vm4 = vcmp.eq.s32.totalorder %v5540_v35, %v7024_v3  ;;  %vm4926_vm7 = vmpackc.low %vm2769_vm0, %vm2767_vm3  ;;  %vm2806_vm3 = vcmp.eq.s32.totalorder %v5595_v40, %v7024_v3 }
 0x9ae   :  { %vm4928_vm11 = vmpackc.low %vm2814_vm6, %vm2812_vm4  ;;  %vm2803_vm6 = vcmp.eq.s32.totalorder %v5592_v39, %v7030_v4 }
 0x9b0   :  { %4919 = vmatpush1.bf16.msk.msra.mxu0 %vm4918_vm9, %v5242_v23  ;;  %vm2813_vm9 = vcmp.eq.s32.totalorder %v5543_v36, %v7030_v4 }
 0x9b1   :  { %4921 = vmatprep.subr.msk.bf16.mxu0 %vm4920_vm10, %v5242_v23  ;;  %vm2808_vm10 = vcmp.eq.s32.totalorder %v5566_v37, %v7024_v3  ;;  %vm4930_vm13 = vmpackc.low %vm2813_vm9, %vm2811_vm2  ;;  %vm2802_vm2 = vcmp.eq.s32.totalorder %v5621_v42, %v7024_v3 }
 0x9b2   :  { %vm4932_vm14 = vmpackc.low %vm2810_vm5, %vm2808_vm10  ;;  %vm2799_vm5 = vcmp.eq.s32.totalorder %v5618_v41, %v7030_v4 }
 0x9b4   :  { %4923 = vmatpush1.bf16.msk.msra.mxu0 %vm4922_vm1, %v5242_v23  ;;  %vm2809_vm1 = vcmp.eq.s32.totalorder %v5569_v38, %v7030_v4 }
 0x9b5   :  { %4925 = vmatprep.subr.msk.bf16.mxu0 %vm4924_vm15, %v5242_v23  ;;  %vm2804_vm15 = vcmp.eq.s32.totalorder %v5592_v39, %v7024_v3  ;;  %vm4934_vm0 = vmpackc.low %vm2809_vm1, %vm2807_vm12 }
 0x9b6   :  { %vm4936_vm4 = vmpackc.low %vm2806_vm3, %vm2804_vm15 }
 0x9b8   :  { %4927 = vmatpush1.bf16.msk.msra.mxu0 %vm4926_vm7, %v5242_v23  ;;  %vm2805_vm7 = vcmp.eq.s32.totalorder %v5595_v40, %v7030_v4 }
 0x9b9   :  { %4929 = vmatprep.subr.msk.bf16.mxu0 %vm4928_vm11, %v5242_v23  ;;  %vm2800_vm11 = vcmp.eq.s32.totalorder %v5618_v41, %v7024_v3  ;;  %vm4938_vm9 = vmpackc.low %vm2805_vm7, %vm2803_vm6 }
 0x9ba   :  { %vm4940_vm10 = vmpackc.low %vm2802_vm2, %vm2800_vm11 }
 0x9bc   :  { %4931 = vmatpush2.bf16.msk.msra.mxu0 %vm4930_vm13, %v5242_v23  ;;  %vm2801_vm13 = vcmp.eq.s32.totalorder %v5621_v42, %v7030_v4  ;;  %v7185_v4 = vrot.slane %v6700_v57, %v5859_v43 }
 0x9bd   :  { %4933 = vmatprep.subr.msk.bf16.mxu0 %vm4932_vm14, %v5242_v23  ;;  %vm4942_vm14 = vmpackc.low %vm2801_vm13, %vm2799_vm5  ;;  %vm8360_vm13 = vcmask 523264  }
 0x9be   :  { %vm3030_vm3 = vcmp.eq.s32.totalorder %v5328_v13, %v7185_v4  ;;  %vm3026_vm2 = vcmp.eq.s32.totalorder %v5341_v17, %v7185_v4 }
 0x9c0   :  { %4935 = vmatpush2.bf16.msk.msra.mxu0 %vm4934_vm0, %v5242_v23  ;;  %vm3032_vm0 = vcmp.eq.s32.totalorder %v5331_v14, %v7185_v4 }
 0x9c1   :  { %4937 = vmatprep.subr.msk.bf16.mxu0 %vm4936_vm4, %v5242_v23  ;;  %vm4948_vm7 = vmpackc.low %vm3032_vm0, %vm3030_vm3 }
 0x9c4   :  { %4939 = vmatpush2.bf16.msk.msra.mxu0 %vm4938_vm9, %v5242_v23  ;;  %vm3028_vm9 = vcmp.eq.s32.totalorder %v5344_v18, %v7185_v4 }
 0x9c5   :  { %4941 = vmatprep.subr.msk.bf16.mxu0 %vm4940_vm10, %v5242_v23 }
 0x9c8   :  { %4943 = vmatpush2.bf16.msk.msra.mxu0 %vm4942_vm14, %v5242_v23  ;;  %vm4952_vm14 = vmpackc.low %vm3028_vm9, %vm3026_vm2 }
 0x9cb   :  { %2920 = vmatmul.mubr.bf16.vlgmr.msra.gmra.mxu0 %v6843_v59 }
 0x9cc   :  { %3214 = vmatprep.mubr.bf16.mxu0 %v5241_v8 }
 0xa5b   :  { %v2746_v49 = vpop.f32.mrf.mxu0 }
 0xa5c   :  { %v7164_v0 = vadd.f32 %v2746_v49, %v7012_v9  ;;  %v7179_v9 = vrot.slane %v6687_v54, %v5859_v43 }
 0xa5d   :  { %v2748_v61 = vpop.f32.mrf.mxu0 }
 0xa5e   :  { %v7167_v20 = vadd.f32 %v2748_v61, %v7014_v19  ;;  %v2933_v19 = vrot.slane %v6857_v2, %v5689_v51  ;;  %vm3031_vm12 = vcmp.eq.s32.totalorder %v5328_v13, %v7179_v9  ;;  %vm3033_vm1 = vcmp.eq.s32.totalorder %v5331_v14, %v7179_v9  ;;  %v89_v51 = vld [vmem:[%s8343_s4 + $0x30] sm:$0xff] }
 0xa5f   :  { %v2750_v45 = vpop.f32.mrf.mxu0  ;;  %vm4946_vm15 = vmpackc.low %vm3033_vm1, %vm3031_vm12  ;;  %v104_v16 = vpack.c.bf16 %v90_v50, %v89_v51  ;;  %vm3027_vm4 = vcmp.eq.s32.totalorder %v5341_v17, %v7179_v9  ;;  %vm3029_vm6 = vcmp.eq.s32.totalorder %v5344_v18, %v7179_v9  ;;  %vm3023_vm10 = vcmp.eq.s32.totalorder %v5387_v24, %v7179_v9 }
 0xa60   :  { %v7170_v46 = vadd.f32 %v2750_v45, %v7016_v1  ;;  %vm4950_vm11 = vmpackc.low %vm3029_vm6, %vm3027_vm4  ;;  %vm3025_vm5 = vcmp.eq.s32.totalorder %v5390_v25, %v7179_v9  ;;  %vm3022_vm1 = vcmp.eq.s32.totalorder %v5387_v24, %v7185_v4  ;;  %vm3019_vm3 = vcmp.eq.s32.totalorder %v5413_v26, %v7179_v9 }
 0xa61   :  { %v2752_v52 = vpop.f32.mrf.mxu0  ;;  %vm4954_vm12 = vmpackc.low %vm3025_vm5, %vm3023_vm10  ;;  %vm3021_vm0 = vcmp.eq.s32.totalorder %v5416_v27, %v7179_v9  ;;  %vm3015_vm2 = vcmp.eq.s32.totalorder %v5439_v28, %v7179_v9  ;;  %vm3017_vm9 = vcmp.eq.s32.totalorder %v5442_v29, %v7179_v9 }
 0xa62   :  { %v7173_v21 = vadd.f32 %v2752_v52, %v7018_v47  ;;  %vm4958_vm6 = vmpackc.low %vm3021_vm0, %vm3019_vm3  ;;  %vm3010_vm0 = vcmp.eq.s32.totalorder %v5465_v30, %v7185_v4 }
 0xa63   :  { %vm4962_vm5 = vmpackc.low %vm3017_vm9, %vm3015_vm2  ;;  %vm3006_vm9 = vcmp.eq.s32.totalorder %v5491_v32, %v7185_v4 }
 0xa8b   :  { %v2921_v3 = vpop.f32.mrf.mxu0 }
 0xa8c   :  { %v2938_v54 = vmul.f32 %v2933_v19, %v2921_v3 }
 0xa8d   :  { %v2923_v22 = vpop.f32.mrf.mxu0 }
 0xa8e   :  { %v2939_v47 = vmul.f32 %v2937_v48, %v2923_v22 }
 0xa8f   :  { %v2925_v53 = vpop.f32.mrf.mxu0 }
 0xa90   :  { %v2940_v15 = vmul.f32 %v2933_v19, %v2925_v53  ;;  %v7346_v53 = vld [vmem:[%s8340_s1] sm:$0xff] }
 0xa91   :  { %v2927_v1 = vpop.f32.mrf.mxu0 }
 0xa92   :  { %v2941_v12 = vmul.f32 %v2937_v48, %v2927_v1  ;;  %v2942_v57 = vpack.c.bf16 %v2940_v15, %v2938_v54  ;;  %v3172_v48 = vrot.slane %v6852_v10, %v5859_v43  ;;  %v7350_v10 = vrot.slane %v7346_v53, %v6019_v5 }
 0xa94   :  { %v2943_v11 = vpack.c.bf16 %v2941_v12, %v2939_v47 }
 0xa96   :  { %2961 = vmatprep.subr.bf16.mxu1 %v2943_v11 }
 0xa97   :  { %2962 = vmatpush1.bf16.msra.mxu1 %v2942_v57 }
 0xa98   :  { %4947 = vmatprep.subr.msk.bf16.mxu1 %vm4946_vm15, %v5242_v23  ;;  %vm3024_vm15 = vcmp.eq.s32.totalorder %v5390_v25, %v7185_v4 }
 0xa99   :  { %vm4956_vm4 = vmpackc.low %vm3024_vm15, %vm3022_vm1  ;;  %vm3013_vm1 = vcmp.eq.s32.totalorder %v5468_v31, %v7179_v9 }
 0xa9a   :  { %4945 = vmatmul.mubr.msk.bf16.vlgmr.msra.gmra.mxu1 %vm2431_vm8, %v104_v16 }
 0xa9b   :  { %4949 = vmatpush1.bf16.msk.msra.mxu1 %vm4948_vm7, %v5242_v23  ;;  %4994 = vmatprep.mubr.msk.bf16.mxu1 %vm8360_vm13, %v6841_v55  ;;  %vm3018_vm7 = vcmp.eq.s32.totalorder %v5413_v26, %v7185_v4  ;;  %vm3014_vm13 = vcmp.eq.s32.totalorder %v5439_v28, %v7185_v4 }
 0xa9c   :  { %4951 = vmatprep.subr.msk.bf16.mxu1 %vm4950_vm11, %v5242_v23  ;;  %vm3020_vm11 = vcmp.eq.s32.totalorder %v5416_v27, %v7185_v4 }
 0xa9d   :  { %vm4960_vm10 = vmpackc.low %vm3020_vm11, %vm3018_vm7  ;;  %vm3009_vm7 = vcmp.eq.s32.totalorder %v5494_v33, %v7179_v9 }
 0xa9f   :  { %4953 = vmatpush1.bf16.msk.msra.mxu1 %vm4952_vm14, %v5242_v23  ;;  %vm3016_vm14 = vcmp.eq.s32.totalorder %v5442_v29, %v7185_v4 }
 0xaa0   :  { %4955 = vmatprep.subr.msk.bf16.mxu1 %vm4954_vm12, %v5242_v23  ;;  %vm3011_vm12 = vcmp.eq.s32.totalorder %v5465_v30, %v7179_v9  ;;  %vm4964_vm15 = vmpackc.low %vm3016_vm14, %vm3014_vm13  ;;  %vm3005_vm13 = vcmp.eq.s32.totalorder %v5517_v34, %v7179_v9 }
 0xaa1   :  { %vm4966_vm3 = vmpackc.low %vm3013_vm1, %vm3011_vm12  ;;  %vm3002_vm1 = vcmp.eq.s32.totalorder %v5307_v7, %v7185_v4 }
 0xaa3   :  { %4957 = vmatpush1.bf16.msk.msra.mxu1 %vm4956_vm4, %v5242_v23  ;;  %vm3012_vm4 = vcmp.eq.s32.totalorder %v5468_v31, %v7185_v4 }
 0xaa4   :  { %4959 = vmatprep.subr.msk.bf16.mxu1 %vm4958_vm6, %v5242_v23  ;;  %vm3007_vm6 = vcmp.eq.s32.totalorder %v5491_v32, %v7179_v9  ;;  %vm4968_vm11 = vmpackc.low %vm3012_vm4, %vm3010_vm0  ;;  %vm3049_vm0 = vcmp.eq.s32.totalorder %v5543_v36, %v7179_v9 }
 0xaa5   :  { %vm4970_vm2 = vmpackc.low %vm3009_vm7, %vm3007_vm6  ;;  %vm3046_vm7 = vcmp.eq.s32.totalorder %v5540_v35, %v7185_v4 }
 0xaa7   :  { %4961 = vmatpush1.bf16.msk.msra.mxu1 %vm4960_vm10, %v5242_v23  ;;  %vm3008_vm10 = vcmp.eq.s32.totalorder %v5494_v33, %v7185_v4 }
 0xaa8   :  { %4963 = vmatprep.subr.msk.bf16.mxu1 %vm4962_vm5, %v5242_v23  ;;  %vm3003_vm5 = vcmp.eq.s32.totalorder %v5307_v7, %v7179_v9  ;;  %vm4972_vm14 = vmpackc.low %vm3008_vm10, %vm3006_vm9  ;;  %vm3045_vm9 = vcmp.eq.s32.totalorder %v5569_v38, %v7179_v9 }
 0xaa9   :  { %vm4974_vm12 = vmpackc.low %vm3005_vm13, %vm3003_vm5  ;;  %vm3042_vm13 = vcmp.eq.s32.totalorder %v5566_v37, %v7185_v4 }
 0xaab   :  { %4965 = vmatpush1.bf16.msk.msra.mxu1 %vm4964_vm15, %v5242_v23  ;;  %vm3004_vm15 = vcmp.eq.s32.totalorder %v5517_v34, %v7185_v4 }
 0xaac   :  { %4967 = vmatprep.subr.msk.bf16.mxu1 %vm4966_vm3, %v5242_v23  ;;  %vm3047_vm3 = vcmp.eq.s32.totalorder %v5540_v35, %v7179_v9  ;;  %vm4976_vm4 = vmpackc.low %vm3004_vm15, %vm3002_vm1  ;;  %vm3041_vm1 = vcmp.eq.s32.totalorder %v5595_v40, %v7179_v9 }
 0xaad   :  { %vm4978_vm6 = vmpackc.low %vm3049_vm0, %vm3047_vm3  ;;  %vm3038_vm0 = vcmp.eq.s32.totalorder %v5592_v39, %v7185_v4 }
 0xaaf   :  { %4969 = vmatpush1.bf16.msk.msra.mxu1 %vm4968_vm11, %v5242_v23  ;;  %vm3048_vm11 = vcmp.eq.s32.totalorder %v5543_v36, %v7185_v4 }
 0xab0   :  { %4971 = vmatprep.subr.msk.bf16.mxu1 %vm4970_vm2, %v5242_v23  ;;  %vm3043_vm2 = vcmp.eq.s32.totalorder %v5566_v37, %v7179_v9  ;;  %vm4980_vm10 = vmpackc.low %vm3048_vm11, %vm3046_vm7  ;;  %vm3037_vm7 = vcmp.eq.s32.totalorder %v5621_v42, %v7179_v9 }
 0xab1   :  { %vm4982_vm5 = vmpackc.low %vm3045_vm9, %vm3043_vm2  ;;  %vm3034_vm9 = vcmp.eq.s32.totalorder %v5618_v41, %v7185_v4 }
 0xab3   :  { %4973 = vmatpush1.bf16.msk.msra.mxu1 %vm4972_vm14, %v5242_v23  ;;  %vm3044_vm14 = vcmp.eq.s32.totalorder %v5569_v38, %v7185_v4 }
 0xab4   :  { %4975 = vmatprep.subr.msk.bf16.mxu1 %vm4974_vm12, %v5242_v23  ;;  %vm3039_vm12 = vcmp.eq.s32.totalorder %v5592_v39, %v7179_v9  ;;  %vm4984_vm15 = vmpackc.low %vm3044_vm14, %vm3042_vm13 }
 0xab5   :  { %vm4986_vm3 = vmpackc.low %vm3041_vm1, %vm3039_vm12  ;;  %vm3265_vm1 = vcmp.eq.s32.totalorder %v5328_v13, %v7350_v10 }
 0xab7   :  { %4977 = vmatpush1.bf16.msk.msra.mxu1 %vm4976_vm4, %v5242_v23  ;;  %vm3040_vm4 = vcmp.eq.s32.totalorder %v5595_v40, %v7185_v4 }
 0xab8   :  { %4979 = vmatprep.subr.msk.bf16.mxu1 %vm4978_vm6, %v5242_v23  ;;  %vm3035_vm6 = vcmp.eq.s32.totalorder %v5618_v41, %v7179_v9  ;;  %vm4988_vm11 = vmpackc.low %vm3040_vm4, %vm3038_vm0 }
 0xab9   :  { %vm4990_vm2 = vmpackc.low %vm3037_vm7, %vm3035_vm6  ;;  %vm3261_vm7 = vcmp.eq.s32.totalorder %v5341_v17, %v7350_v10 }
 0xabb   :  { %4981 = vmatpush2.bf16.msk.msra.mxu1 %vm4980_vm10, %v5242_v23  ;;  %vm3036_vm10 = vcmp.eq.s32.totalorder %v5621_v42, %v7185_v4  ;;  %v92_v4 = vld [vmem:[%s8343_s4 + $0x48] sm:$0xff] }
 0xabc   :  { %4983 = vmatprep.subr.msk.bf16.mxu1 %vm4982_vm5, %v5242_v23  ;;  %vm4992_vm5 = vmpackc.low %vm3036_vm10, %vm3034_vm9  ;;  %vm8361_vm10 = vcmask 523264  }
 0xabf   :  { %4985 = vmatpush2.bf16.msk.msra.mxu1 %vm4984_vm15, %v5242_v23  ;;  %vm3267_vm15 = vcmp.eq.s32.totalorder %v5331_v14, %v7350_v10 }
 0xac0   :  { %4987 = vmatprep.subr.msk.bf16.mxu1 %vm4986_vm3, %v5242_v23  ;;  %vm4998_vm4 = vmpackc.low %vm3267_vm15, %vm3265_vm1 }
 0xac3   :  { %4989 = vmatpush2.bf16.msk.msra.mxu1 %vm4988_vm11, %v5242_v23  ;;  %vm3263_vm11 = vcmp.eq.s32.totalorder %v5344_v18, %v7350_v10 }
 0xac4   :  { %4991 = vmatprep.subr.msk.bf16.mxu1 %vm4990_vm2, %v5242_v23 }
 0xac7   :  { %4993 = vmatpush2.bf16.msk.msra.mxu1 %vm4992_vm5, %v5242_v23  ;;  %vm5002_vm5 = vmpackc.low %vm3263_vm11, %vm3261_vm7 }
 0xaca   :  { %3155 = vmatmul.mubr.bf16.vlgmr.msra.gmra.mxu1 %v6843_v59 }
 0xacb   :  { %3449 = vmatprep.mubr.bf16.mxu1 %v5241_v8 }
 0xb5a   :  { %v2981_v63 = vpop.f32.mrf.mxu1 }
 0xb5b   :  { %v7319_v58 = vadd.f32 %v2981_v63, %v7164_v0  ;;  %v7335_v0 = vld [vmem:[%s8340_s1 + $0x8] sm:$0xff] }
 0xb5c   :  { %v2983_v56 = vpop.f32.mrf.mxu1 }
 0xb5d   :  { %v7322_v44 = vadd.f32 %v2983_v56, %v7167_v20  ;;  %v7339_v20 = vrot.slane %v7335_v0, %v6019_v5 }
 0xb5e   :  { %v2985_v49 = vpop.f32.mrf.mxu1 }
 0xb5f   :  { %v7325_v61 = vadd.f32 %v2985_v49, %v7170_v46  ;;  %v3168_v46 = vrot.slane %v6857_v2, %v5859_v43  ;;  %vm3266_vm13 = vcmp.eq.s32.totalorder %v5328_v13, %v7339_v20  ;;  %vm3268_vm14 = vcmp.eq.s32.totalorder %v5331_v14, %v7339_v20  ;;  %v91_v2 = vld [vmem:[%s8343_s4 + $0x40] sm:$0xff] }
 0xb60   :  { %v2987_v45 = vpop.f32.mrf.mxu1  ;;  %vm4996_vm12 = vmpackc.low %vm3268_vm14, %vm3266_vm13  ;;  %v105_v54 = vpack.c.bf16 %v92_v4, %v91_v2  ;;  %vm3262_vm3 = vcmp.eq.s32.totalorder %v5341_v17, %v7339_v20  ;;  %vm3264_vm0 = vcmp.eq.s32.totalorder %v5344_v18, %v7339_v20  ;;  %vm3258_vm2 = vcmp.eq.s32.totalorder %v5387_v24, %v7339_v20 }
 0xb61   :  { %v7328_v52 = vadd.f32 %v2987_v45, %v7173_v21  ;;  %vm5000_vm6 = vmpackc.low %vm3264_vm0, %vm3262_vm3  ;;  %vm3260_vm9 = vcmp.eq.s32.totalorder %v5390_v25, %v7339_v20  ;;  %vm3257_vm14 = vcmp.eq.s32.totalorder %v5387_v24, %v7350_v10  ;;  %vm3254_vm1 = vcmp.eq.s32.totalorder %v5413_v26, %v7339_v20 }
 0xb62   :  { %vm5004_vm13 = vmpackc.low %vm3260_vm9, %vm3258_vm2  ;;  %vm3256_vm15 = vcmp.eq.s32.totalorder %v5416_v27, %v7339_v20  ;;  %vm3250_vm7 = vcmp.eq.s32.totalorder %v5439_v28, %v7339_v20  ;;  %vm3252_vm11 = vcmp.eq.s32.totalorder %v5442_v29, %v7339_v20 }
 0xb63   :  { %vm5008_vm0 = vmpackc.low %vm3256_vm15, %vm3254_vm1  ;;  %vm3245_vm15 = vcmp.eq.s32.totalorder %v5465_v30, %v7350_v10 }
 0xb64   :  { %vm5012_vm9 = vmpackc.low %vm3252_vm11, %vm3250_vm7  ;;  %vm3241_vm11 = vcmp.eq.s32.totalorder %v5491_v32, %v7350_v10 }
 0xb8a   :  { %v3156_v3 = vpop.f32.mrf.mxu1 }
 0xb8b   :  { %v3173_v43 = vmul.f32 %v3168_v46, %v3156_v3 }
 0xb8c   :  { %v3158_v22 = vpop.f32.mrf.mxu1 }
 0xb8d   :  { %v3174_v15 = vmul.f32 %v3172_v48, %v3158_v22  ;;  %v7498_v22 = vld [vmem:[%s8341_s2 + $0x8] sm:$0xff] }
 0xb8e   :  { %v3160_v9 = vpop.f32.mrf.mxu1 }
 0xb8f   :  { %v3175_v21 = vmul.f32 %v3168_v46, %v3160_v9  ;;  %v7515_v9 = vrot.slane %v7346_v53, %v6189_v62 }
 0xb90   :  { %v3162_v19 = vpop.f32.mrf.mxu1 }
 0xb91   :  { %v3176_v1 = vmul.f32 %v3172_v48, %v3162_v19  ;;  %v3177_v12 = vpack.c.bf16 %v3175_v21, %v3173_v43 }
 0xb93   :  { %v3178_v47 = vpack.c.bf16 %v3176_v1, %v3174_v15  ;;  %v94_v15 = vld [vmem:[%s8343_s4 + $0x58] sm:$0xff] }
 0xb95   :  { %3196 = vmatprep.subr.bf16.mxu0 %v3178_v47 }
 0xb96   :  { %3197 = vmatpush1.bf16.msra.mxu0 %v3177_v12 }
 0xb97   :  { %4997 = vmatprep.subr.msk.bf16.mxu0 %vm4996_vm12, %v5242_v23  ;;  %vm3259_vm12 = vcmp.eq.s32.totalorder %v5390_v25, %v7350_v10 }
 0xb98   :  { %vm5006_vm3 = vmpackc.low %vm3259_vm12, %vm3257_vm14  ;;  %vm3248_vm14 = vcmp.eq.s32.totalorder %v5468_v31, %v7339_v20 }
 0xb99   :  { %4995 = vmatmul.mubr.msk.bf16.vlgmr.msra.gmra.mxu0 %vm2431_vm8, %v105_v54 }
 0xb9a   :  { %4999 = vmatpush1.bf16.msk.msra.mxu0 %vm4998_vm4, %v5242_v23  ;;  %5044 = vmatprep.mubr.msk.bf16.mxu0 %vm8361_vm10, %v6841_v55  ;;  %vm3253_vm4 = vcmp.eq.s32.totalorder %v5413_v26, %v7350_v10  ;;  %vm3249_vm10 = vcmp.eq.s32.totalorder %v5439_v28, %v7350_v10 }
 0xb9b   :  { %5001 = vmatprep.subr.msk.bf16.mxu0 %vm5000_vm6, %v5242_v23  ;;  %vm3255_vm6 = vcmp.eq.s32.totalorder %v5416_v27, %v7350_v10 }
 0xb9c   :  { %vm5010_vm2 = vmpackc.low %vm3255_vm6, %vm3253_vm4  ;;  %vm3244_vm4 = vcmp.eq.s32.totalorder %v5494_v33, %v7339_v20 }
 0xb9e   :  { %5003 = vmatpush1.bf16.msk.msra.mxu0 %vm5002_vm5, %v5242_v23  ;;  %vm3251_vm5 = vcmp.eq.s32.totalorder %v5442_v29, %v7350_v10 }
 0xb9f   :  { %5005 = vmatprep.subr.msk.bf16.mxu0 %vm5004_vm13, %v5242_v23  ;;  %vm3246_vm13 = vcmp.eq.s32.totalorder %v5465_v30, %v7339_v20  ;;  %vm5014_vm12 = vmpackc.low %vm3251_vm5, %vm3249_vm10  ;;  %vm3240_vm10 = vcmp.eq.s32.totalorder %v5517_v34, %v7339_v20 }
 0xba0   :  { %vm5016_vm1 = vmpackc.low %vm3248_vm14, %vm3246_vm13  ;;  %vm3237_vm14 = vcmp.eq.s32.totalorder %v5307_v7, %v7350_v10 }
 0xba2   :  { %5007 = vmatpush1.bf16.msk.msra.mxu0 %vm5006_vm3, %v5242_v23  ;;  %vm3247_vm3 = vcmp.eq.s32.totalorder %v5468_v31, %v7350_v10 }
 0xba3   :  { %5009 = vmatprep.subr.msk.bf16.mxu0 %vm5008_vm0, %v5242_v23  ;;  %vm3242_vm0 = vcmp.eq.s32.totalorder %v5491_v32, %v7339_v20  ;;  %vm5018_vm6 = vmpackc.low %vm3247_vm3, %vm3245_vm15  ;;  %vm3284_vm15 = vcmp.eq.s32.totalorder %v5543_v36, %v7339_v20 }
 0xba4   :  { %vm5020_vm7 = vmpackc.low %vm3244_vm4, %vm3242_vm0  ;;  %vm3281_vm4 = vcmp.eq.s32.totalorder %v5540_v35, %v7350_v10 }
 0xba6   :  { %5011 = vmatpush1.bf16.msk.msra.mxu0 %vm5010_vm2, %v5242_v23  ;;  %vm3243_vm2 = vcmp.eq.s32.totalorder %v5494_v33, %v7350_v10 }
 0xba7   :  { %5013 = vmatprep.subr.msk.bf16.mxu0 %vm5012_vm9, %v5242_v23  ;;  %vm3238_vm9 = vcmp.eq.s32.totalorder %v5307_v7, %v7339_v20  ;;  %vm5022_vm5 = vmpackc.low %vm3243_vm2, %vm3241_vm11  ;;  %vm3280_vm11 = vcmp.eq.s32.totalorder %v5569_v38, %v7339_v20 }
 0xba8   :  { %vm5024_vm13 = vmpackc.low %vm3240_vm10, %vm3238_vm9  ;;  %vm3277_vm10 = vcmp.eq.s32.totalorder %v5566_v37, %v7350_v10 }
 0xbaa   :  { %5015 = vmatpush1.bf16.msk.msra.mxu0 %vm5014_vm12, %v5242_v23  ;;  %vm3239_vm12 = vcmp.eq.s32.totalorder %v5517_v34, %v7350_v10 }
 0xbab   :  { %5017 = vmatprep.subr.msk.bf16.mxu0 %vm5016_vm1, %v5242_v23  ;;  %vm3282_vm1 = vcmp.eq.s32.totalorder %v5540_v35, %v7339_v20  ;;  %vm5026_vm3 = vmpackc.low %vm3239_vm12, %vm3237_vm14  ;;  %vm3276_vm14 = vcmp.eq.s32.totalorder %v5595_v40, %v7339_v20 }
 0xbac   :  { %vm5028_vm0 = vmpackc.low %vm3284_vm15, %vm3282_vm1  ;;  %vm3273_vm15 = vcmp.eq.s32.totalorder %v5592_v39, %v7350_v10 }
 0xbae   :  { %5019 = vmatpush1.bf16.msk.msra.mxu0 %vm5018_vm6, %v5242_v23  ;;  %vm3283_vm6 = vcmp.eq.s32.totalorder %v5543_v36, %v7350_v10 }
 0xbaf   :  { %5021 = vmatprep.subr.msk.bf16.mxu0 %vm5020_vm7, %v5242_v23  ;;  %vm3278_vm7 = vcmp.eq.s32.totalorder %v5566_v37, %v7339_v20  ;;  %vm5030_vm2 = vmpackc.low %vm3283_vm6, %vm3281_vm4  ;;  %vm3272_vm4 = vcmp.eq.s32.totalorder %v5621_v42, %v7339_v20 }
 0xbb0   :  { %vm5032_vm9 = vmpackc.low %vm3280_vm11, %vm3278_vm7  ;;  %vm3269_vm11 = vcmp.eq.s32.totalorder %v5618_v41, %v7350_v10 }
 0xbb2   :  { %5023 = vmatpush1.bf16.msk.msra.mxu0 %vm5022_vm5, %v5242_v23  ;;  %vm3279_vm5 = vcmp.eq.s32.totalorder %v5569_v38, %v7350_v10 }
 0xbb3   :  { %5025 = vmatprep.subr.msk.bf16.mxu0 %vm5024_vm13, %v5242_v23  ;;  %vm3274_vm13 = vcmp.eq.s32.totalorder %v5592_v39, %v7339_v20  ;;  %vm5034_vm12 = vmpackc.low %vm3279_vm5, %vm3277_vm10 }
 0xbb4   :  { %vm5036_vm1 = vmpackc.low %vm3276_vm14, %vm3274_vm13  ;;  %vm3500_vm14 = vcmp.eq.s32.totalorder %v5328_v13, %v7515_v9 }
 0xbb6   :  { %5027 = vmatpush1.bf16.msk.msra.mxu0 %vm5026_vm3, %v5242_v23  ;;  %vm3275_vm3 = vcmp.eq.s32.totalorder %v5595_v40, %v7350_v10 }
 0xbb7   :  { %5029 = vmatprep.subr.msk.bf16.mxu0 %vm5028_vm0, %v5242_v23  ;;  %vm3270_vm0 = vcmp.eq.s32.totalorder %v5618_v41, %v7339_v20  ;;  %vm5038_vm6 = vmpackc.low %vm3275_vm3, %vm3273_vm15 }
 0xbb8   :  { %vm5040_vm7 = vmpackc.low %vm3272_vm4, %vm3270_vm0  ;;  %vm3496_vm4 = vcmp.eq.s32.totalorder %v5341_v17, %v7515_v9 }
 0xbba   :  { %5031 = vmatpush2.bf16.msk.msra.mxu0 %vm5030_vm2, %v5242_v23  ;;  %vm3271_vm2 = vcmp.eq.s32.totalorder %v5621_v42, %v7350_v10 }
 0xbbb   :  { %5033 = vmatprep.subr.msk.bf16.mxu0 %vm5032_vm9, %v5242_v23  ;;  %vm5042_vm9 = vmpackc.low %vm3271_vm2, %vm3269_vm11  ;;  %vm8362_vm2 = vcmask 523264  }
 0xbbe   :  { %5035 = vmatpush2.bf16.msk.msra.mxu0 %vm5034_vm12, %v5242_v23  ;;  %vm3502_vm12 = vcmp.eq.s32.totalorder %v5331_v14, %v7515_v9 }
 0xbbf   :  { %5037 = vmatprep.subr.msk.bf16.mxu0 %vm5036_vm1, %v5242_v23  ;;  %vm5048_vm3 = vmpackc.low %vm3502_vm12, %vm3500_vm14 }
 0xbc2   :  { %5039 = vmatpush2.bf16.msk.msra.mxu0 %vm5038_vm6, %v5242_v23  ;;  %vm3498_vm6 = vcmp.eq.s32.totalorder %v5344_v18, %v7515_v9 }
 0xbc3   :  { %5041 = vmatprep.subr.msk.bf16.mxu0 %vm5040_vm7, %v5242_v23 }
 0xbc6   :  { %5043 = vmatpush2.bf16.msk.msra.mxu0 %vm5042_vm9, %v5242_v23  ;;  %vm5052_vm9 = vmpackc.low %vm3498_vm6, %vm3496_vm4 }
 0xbc9   :  { %3390 = vmatmul.mubr.bf16.vlgmr.msra.gmra.mxu0 %v6843_v59 }
 0xbca   :  { %3684 = vmatprep.mubr.bf16.mxu0 %v5241_v8 }
 0xc59   :  { %v3216_v51 = vpop.f32.mrf.mxu0 }
 0xc5a   :  { %v7484_v50 = vadd.f32 %v3216_v51, %v7319_v58  ;;  %v3407_v58 = vrot.slane %v7498_v22, %v6019_v5 }
 0xc5b   :  { %v3218_v11 = vpop.f32.mrf.mxu0 }
 0xc5c   :  { %v7487_v57 = vadd.f32 %v3218_v11, %v7322_v44  ;;  %v7504_v44 = vrot.slane %v7335_v0, %v6189_v62 }
 0xc5d   :  { %v3220_v16 = vpop.f32.mrf.mxu0 }
 0xc5e   :  { %v7490_v63 = vadd.f32 %v3220_v16, %v7325_v61  ;;  %v7509_v61 = vld [vmem:[%s8341_s2] sm:$0xff]  ;;  %vm3501_vm10 = vcmp.eq.s32.totalorder %v5328_v13, %v7504_v44  ;;  %vm3503_vm5 = vcmp.eq.s32.totalorder %v5331_v14, %v7504_v44  ;;  %vm3497_vm1 = vcmp.eq.s32.totalorder %v5341_v17, %v7504_v44 }
 0xc5f   :  { %v3222_v56 = vpop.f32.mrf.mxu0  ;;  %vm5046_vm13 = vmpackc.low %vm3503_vm5, %vm3501_vm10  ;;  %vm3499_vm15 = vcmp.eq.s32.totalorder %v5344_v18, %v7504_v44  ;;  %vm3493_vm7 = vcmp.eq.s32.totalorder %v5387_v24, %v7504_v44  ;;  %vm3495_vm11 = vcmp.eq.s32.totalorder %v5390_v25, %v7504_v44  ;;  %vm3492_vm5 = vcmp.eq.s32.totalorder %v5387_v24, %v7515_v9 }
 0xc60   :  { %v7493_v49 = vadd.f32 %v3222_v56, %v7328_v52  ;;  %v3403_v52 = vrot.slane %v7509_v61, %v6019_v5  ;;  %v93_v5 = vld [vmem:[%s8343_s4 + $0x50] sm:$0xff]  ;;  %vm5050_vm0 = vmpackc.low %vm3499_vm15, %vm3497_vm1  ;;  %vm3489_vm14 = vcmp.eq.s32.totalorder %v5413_v26, %v7504_v44  ;;  %vm3491_vm12 = vcmp.eq.s32.totalorder %v5416_v27, %v7504_v44 }
 0xc61   :  { %v106_v2 = vpack.c.bf16 %v94_v15, %v93_v5  ;;  %vm5054_vm10 = vmpackc.low %vm3495_vm11, %vm3493_vm7  ;;  %vm3485_vm4 = vcmp.eq.s32.totalorder %v5439_v28, %v7504_v44  ;;  %vm3487_vm6 = vcmp.eq.s32.totalorder %v5442_v29, %v7504_v44 }
 0xc62   :  { %vm5058_vm15 = vmpackc.low %vm3491_vm12, %vm3489_vm14  ;;  %vm3480_vm12 = vcmp.eq.s32.totalorder %v5465_v30, %v7515_v9 }
 0xc63   :  { %vm5062_vm11 = vmpackc.low %vm3487_vm6, %vm3485_vm4  ;;  %vm3476_vm6 = vcmp.eq.s32.totalorder %v5491_v32, %v7515_v9 }
 0xc89   :  { %v3391_v45 = vpop.f32.mrf.mxu0 }
 0xc8a   :  { %v3408_v10 = vmul.f32 %v3403_v52, %v3391_v45 }
 0xc8b   :  { %v3393_v3 = vpop.f32.mrf.mxu0 }
 0xc8c   :  { %v3409_v21 = vmul.f32 %v3407_v58, %v3393_v3 }
 0xc8d   :  { %v3395_v48 = vpop.f32.mrf.mxu0 }
 0xc8e   :  { %v3410_v20 = vmul.f32 %v3403_v52, %v3395_v48  ;;  %v7670_v48 = vrot.slane %v7346_v53, %v6349_v6 }
 0xc8f   :  { %v3397_v46 = vpop.f32.mrf.mxu0 }
 0xc90   :  { %v3411_v19 = vmul.f32 %v3407_v58, %v3397_v46  ;;  %v3412_v43 = vpack.c.bf16 %v3410_v20, %v3408_v10  ;;  %v3642_v58 = vrot.slane %v7498_v22, %v6189_v62 }
 0xc92   :  { %v3413_v1 = vpack.c.bf16 %v3411_v19, %v3409_v21 }
 0xc94   :  { %3431 = vmatprep.subr.bf16.mxu1 %v3413_v1 }
 0xc95   :  { %3432 = vmatpush1.bf16.msra.mxu1 %v3412_v43 }
 0xc96   :  { %5047 = vmatprep.subr.msk.bf16.mxu1 %vm5046_vm13, %v5242_v23  ;;  %vm3494_vm13 = vcmp.eq.s32.totalorder %v5390_v25, %v7515_v9 }
 0xc97   :  { %vm5056_vm1 = vmpackc.low %vm3494_vm13, %vm3492_vm5  ;;  %vm3483_vm5 = vcmp.eq.s32.totalorder %v5468_v31, %v7504_v44 }
 0xc98   :  { %5045 = vmatmul.mubr.msk.bf16.vlgmr.msra.gmra.mxu1 %vm2431_vm8, %v106_v2 }
 0xc99   :  { %5049 = vmatpush1.bf16.msk.msra.mxu1 %vm5048_vm3, %v5242_v23  ;;  %5094 = vmatprep.mubr.msk.bf16.mxu1 %vm8362_vm2, %v6841_v55  ;;  %vm3488_vm3 = vcmp.eq.s32.totalorder %v5413_v26, %v7515_v9  ;;  %vm3484_vm2 = vcmp.eq.s32.totalorder %v5439_v28, %v7515_v9 }
 0xc9a   :  { %5051 = vmatprep.subr.msk.bf16.mxu1 %vm5050_vm0, %v5242_v23  ;;  %vm3490_vm0 = vcmp.eq.s32.totalorder %v5416_v27, %v7515_v9 }
 0xc9b   :  { %vm5060_vm7 = vmpackc.low %vm3490_vm0, %vm3488_vm3  ;;  %vm3479_vm3 = vcmp.eq.s32.totalorder %v5494_v33, %v7504_v44 }
 0xc9d   :  { %5053 = vmatpush1.bf16.msk.msra.mxu1 %vm5052_vm9, %v5242_v23  ;;  %vm3486_vm9 = vcmp.eq.s32.totalorder %v5442_v29, %v7515_v9 }
 0xc9e   :  { %5055 = vmatprep.subr.msk.bf16.mxu1 %vm5054_vm10, %v5242_v23  ;;  %vm3481_vm10 = vcmp.eq.s32.totalorder %v5465_v30, %v7504_v44  ;;  %vm5064_vm13 = vmpackc.low %vm3486_vm9, %vm3484_vm2  ;;  %vm3475_vm2 = vcmp.eq.s32.totalorder %v5517_v34, %v7504_v44 }
 0xc9f   :  { %vm5066_vm14 = vmpackc.low %vm3483_vm5, %vm3481_vm10  ;;  %vm3472_vm5 = vcmp.eq.s32.totalorder %v5307_v7, %v7515_v9 }
 0xca1   :  { %5057 = vmatpush1.bf16.msk.msra.mxu1 %vm5056_vm1, %v5242_v23  ;;  %vm3482_vm1 = vcmp.eq.s32.totalorder %v5468_v31, %v7515_v9 }
 0xca2   :  { %5059 = vmatprep.subr.msk.bf16.mxu1 %vm5058_vm15, %v5242_v23  ;;  %vm3477_vm15 = vcmp.eq.s32.totalorder %v5491_v32, %v7504_v44  ;;  %vm5068_vm0 = vmpackc.low %vm3482_vm1, %vm3480_vm12  ;;  %vm3519_vm12 = vcmp.eq.s32.totalorder %v5543_v36, %v7504_v44 }
 0xca3   :  { %vm5070_vm4 = vmpackc.low %vm3479_vm3, %vm3477_vm15  ;;  %vm3516_vm3 = vcmp.eq.s32.totalorder %v5540_v35, %v7515_v9 }
 0xca5   :  { %5061 = vmatpush1.bf16.msk.msra.mxu1 %vm5060_vm7, %v5242_v23  ;;  %vm3478_vm7 = vcmp.eq.s32.totalorder %v5494_v33, %v7515_v9 }
 0xca6   :  { %5063 = vmatprep.subr.msk.bf16.mxu1 %vm5062_vm11, %v5242_v23  ;;  %vm3473_vm11 = vcmp.eq.s32.totalorder %v5307_v7, %v7504_v44  ;;  %vm5072_vm9 = vmpackc.low %vm3478_vm7, %vm3476_vm6  ;;  %vm3515_vm6 = vcmp.eq.s32.totalorder %v5569_v38, %v7504_v44 }
 0xca7   :  { %vm5074_vm10 = vmpackc.low %vm3475_vm2, %vm3473_vm11  ;;  %vm3512_vm2 = vcmp.eq.s32.totalorder %v5566_v37, %v7515_v9 }
 0xca9   :  { %5065 = vmatpush1.bf16.msk.msra.mxu1 %vm5064_vm13, %v5242_v23  ;;  %vm3474_vm13 = vcmp.eq.s32.totalorder %v5517_v34, %v7515_v9 }
 0xcaa   :  { %5067 = vmatprep.subr.msk.bf16.mxu1 %vm5066_vm14, %v5242_v23  ;;  %vm3517_vm14 = vcmp.eq.s32.totalorder %v5540_v35, %v7504_v44  ;;  %vm5076_vm1 = vmpackc.low %vm3474_vm13, %vm3472_vm5  ;;  %vm3511_vm5 = vcmp.eq.s32.totalorder %v5595_v40, %v7504_v44 }
 0xcab   :  { %vm5078_vm15 = vmpackc.low %vm3519_vm12, %vm3517_vm14  ;;  %vm3508_vm12 = vcmp.eq.s32.totalorder %v5592_v39, %v7515_v9 }
 0xcad   :  { %5069 = vmatpush1.bf16.msk.msra.mxu1 %vm5068_vm0, %v5242_v23  ;;  %vm3518_vm0 = vcmp.eq.s32.totalorder %v5543_v36, %v7515_v9 }
 0xcae   :  { %5071 = vmatprep.subr.msk.bf16.mxu1 %vm5070_vm4, %v5242_v23  ;;  %vm3513_vm4 = vcmp.eq.s32.totalorder %v5566_v37, %v7504_v44  ;;  %vm5080_vm7 = vmpackc.low %vm3518_vm0, %vm3516_vm3  ;;  %vm3507_vm3 = vcmp.eq.s32.totalorder %v5621_v42, %v7504_v44 }
 0xcaf   :  { %vm5082_vm11 = vmpackc.low %vm3515_vm6, %vm3513_vm4  ;;  %vm3504_vm6 = vcmp.eq.s32.totalorder %v5618_v41, %v7515_v9 }
 0xcb1   :  { %5073 = vmatpush1.bf16.msk.msra.mxu1 %vm5072_vm9, %v5242_v23  ;;  %vm3514_vm9 = vcmp.eq.s32.totalorder %v5569_v38, %v7515_v9 }
 0xcb2   :  { %5075 = vmatprep.subr.msk.bf16.mxu1 %vm5074_vm10, %v5242_v23  ;;  %vm3509_vm10 = vcmp.eq.s32.totalorder %v5592_v39, %v7504_v44  ;;  %vm5084_vm13 = vmpackc.low %vm3514_vm9, %vm3512_vm2 }
 0xcb3   :  { %vm5086_vm14 = vmpackc.low %vm3511_vm5, %vm3509_vm10  ;;  %vm3735_vm5 = vcmp.eq.s32.totalorder %v5328_v13, %v7670_v48 }
 0xcb5   :  { %5077 = vmatpush1.bf16.msk.msra.mxu1 %vm5076_vm1, %v5242_v23  ;;  %vm3510_vm1 = vcmp.eq.s32.totalorder %v5595_v40, %v7515_v9 }
 0xcb6   :  { %5079 = vmatprep.subr.msk.bf16.mxu1 %vm5078_vm15, %v5242_v23  ;;  %vm3505_vm15 = vcmp.eq.s32.totalorder %v5618_v41, %v7504_v44  ;;  %vm5088_vm0 = vmpackc.low %vm3510_vm1, %vm3508_vm12 }
 0xcb7   :  { %vm5090_vm4 = vmpackc.low %vm3507_vm3, %vm3505_vm15  ;;  %vm3731_vm3 = vcmp.eq.s32.totalorder %v5341_v17, %v7670_v48 }
 0xcb9   :  { %5081 = vmatpush2.bf16.msk.msra.mxu1 %vm5080_vm7, %v5242_v23  ;;  %vm3506_vm7 = vcmp.eq.s32.totalorder %v5621_v42, %v7515_v9  ;;  %v96_v9 = vld [vmem:[%s8343_s4 + $0x68] sm:$0xff] }
 0xcba   :  { %5083 = vmatprep.subr.msk.bf16.mxu1 %vm5082_vm11, %v5242_v23  ;;  %vm5092_vm11 = vmpackc.low %vm3506_vm7, %vm3504_vm6  ;;  %vm8363_vm7 = vcmask 523264  }
 0xcbd   :  { %5085 = vmatpush2.bf16.msk.msra.mxu1 %vm5084_vm13, %v5242_v23  ;;  %vm3737_vm13 = vcmp.eq.s32.totalorder %v5331_v14, %v7670_v48 }
 0xcbe   :  { %5087 = vmatprep.subr.msk.bf16.mxu1 %vm5086_vm14, %v5242_v23  ;;  %vm5098_vm1 = vmpackc.low %vm3737_vm13, %vm3735_vm5 }
 0xcc1   :  { %5089 = vmatpush2.bf16.msk.msra.mxu1 %vm5088_vm0, %v5242_v23  ;;  %vm3733_vm0 = vcmp.eq.s32.totalorder %v5344_v18, %v7670_v48 }
 0xcc2   :  { %5091 = vmatprep.subr.msk.bf16.mxu1 %vm5090_vm4, %v5242_v23 }
 0xcc5   :  { %5093 = vmatpush2.bf16.msk.msra.mxu1 %vm5092_vm11, %v5242_v23  ;;  %vm5102_vm11 = vmpackc.low %vm3733_vm0, %vm3731_vm3 }
 0xcc8   :  { %3625 = vmatmul.mubr.bf16.vlgmr.msra.gmra.mxu1 %v6843_v59 }
 0xcc9   :  { %3919 = vmatprep.mubr.bf16.mxu1 %v5241_v8 }
 0xd58   :  { %v3451_v4 = vpop.f32.mrf.mxu1 }
 0xd59   :  { %v7649_v47 = vadd.f32 %v3451_v4, %v7484_v50  ;;  %v7664_v50 = vrot.slane %v7335_v0, %v6349_v6 }
 0xd5a   :  { %v3453_v12 = vpop.f32.mrf.mxu1 }
 0xd5b   :  { %v7652_v54 = vadd.f32 %v3453_v12, %v7487_v57  ;;  %v3638_v57 = vrot.slane %v7509_v61, %v6189_v62  ;;  %vm3736_vm2 = vcmp.eq.s32.totalorder %v5328_v13, %v7664_v50  ;;  %vm3738_vm9 = vcmp.eq.s32.totalorder %v5331_v14, %v7664_v50  ;;  %v95_v62 = vld [vmem:[%s8343_s4 + $0x60] sm:$0xff] }
 0xd5c   :  { %v3455_v51 = vpop.f32.mrf.mxu1  ;;  %vm5096_vm10 = vmpackc.low %vm3738_vm9, %vm3736_vm2  ;;  %v107_v10 = vpack.c.bf16 %v96_v9, %v95_v62  ;;  %vm3732_vm14 = vcmp.eq.s32.totalorder %v5341_v17, %v7664_v50  ;;  %vm3734_vm12 = vcmp.eq.s32.totalorder %v5344_v18, %v7664_v50  ;;  %vm3728_vm4 = vcmp.eq.s32.totalorder %v5387_v24, %v7664_v50 }
 0xd5d   :  { %v7655_v11 = vadd.f32 %v3455_v51, %v7490_v63  ;;  %vm5100_vm15 = vmpackc.low %vm3734_vm12, %vm3732_vm14  ;;  %vm3730_vm6 = vcmp.eq.s32.totalorder %v5390_v25, %v7664_v50  ;;  %vm3727_vm9 = vcmp.eq.s32.totalorder %v5387_v24, %v7670_v48  ;;  %vm3724_vm5 = vcmp.eq.s32.totalorder %v5413_v26, %v7664_v50 }
 0xd5e   :  { %v3457_v16 = vpop.f32.mrf.mxu1  ;;  %vm5104_vm2 = vmpackc.low %vm3730_vm6, %vm3728_vm4  ;;  %vm3726_vm13 = vcmp.eq.s32.totalorder %v5416_v27, %v7664_v50  ;;  %vm3720_vm3 = vcmp.eq.s32.totalorder %v5439_v28, %v7664_v50  ;;  %vm3722_vm0 = vcmp.eq.s32.totalorder %v5442_v29, %v7664_v50 }
 0xd5f   :  { %v7658_v56 = vadd.f32 %v3457_v16, %v7493_v49  ;;  %vm5108_vm12 = vmpackc.low %vm3726_vm13, %vm3724_vm5  ;;  %vm3715_vm13 = vcmp.eq.s32.totalorder %v5465_v30, %v7670_v48 }
 0xd60   :  { %vm5112_vm6 = vmpackc.low %vm3722_vm0, %vm3720_vm3  ;;  %vm3711_vm0 = vcmp.eq.s32.totalorder %v5491_v32, %v7670_v48 }
 0xd88   :  { %v3626_v45 = vpop.f32.mrf.mxu1 }
 0xd89   :  { %v3643_v46 = vmul.f32 %v3638_v57, %v3626_v45 }
 0xd8a   :  { %v3628_v3 = vpop.f32.mrf.mxu1 }
 0xd8b   :  { %v3644_v49 = vmul.f32 %v3642_v58, %v3628_v3  ;;  %v3877_v3 = vrot.slane %v7498_v22, %v6349_v6 }
 0xd8c   :  { %v3630_v44 = vpop.f32.mrf.mxu1 }
 0xd8d   :  { %v3645_v52 = vmul.f32 %v3638_v57, %v3630_v44  ;;  %v7825_v57 = vrot.slane %v7346_v53, %v6519_v60 }
 0xd8e   :  { %v3632_v63 = vpop.f32.mrf.mxu1 }
 0xd8f   :  { %v3646_v20 = vmul.f32 %v3642_v58, %v3632_v63  ;;  %v3647_v19 = vpack.c.bf16 %v3645_v52, %v3643_v46  ;;  %v98_v52 = vld [vmem:[%s8343_s4 + $0x78] sm:$0xff] }
 0xd91   :  { %v3648_v21 = vpack.c.bf16 %v3646_v20, %v3644_v49 }
 0xd93   :  { %3666 = vmatprep.subr.bf16.mxu0 %v3648_v21 }
 0xd94   :  { %3667 = vmatpush1.bf16.msra.mxu0 %v3647_v19 }
 0xd95   :  { %5097 = vmatprep.subr.msk.bf16.mxu0 %vm5096_vm10, %v5242_v23  ;;  %vm3729_vm10 = vcmp.eq.s32.totalorder %v5390_v25, %v7670_v48 }
 0xd96   :  { %vm5106_vm14 = vmpackc.low %vm3729_vm10, %vm3727_vm9  ;;  %vm3718_vm9 = vcmp.eq.s32.totalorder %v5468_v31, %v7664_v50 }
 0xd97   :  { %5095 = vmatmul.mubr.msk.bf16.vlgmr.msra.gmra.mxu0 %vm2431_vm8, %v107_v10 }
 0xd98   :  { %5099 = vmatpush1.bf16.msk.msra.mxu0 %vm5098_vm1, %v5242_v23  ;;  %5144 = vmatprep.mubr.msk.bf16.mxu0 %vm8363_vm7, %v6841_v55  ;;  %vm3723_vm1 = vcmp.eq.s32.totalorder %v5413_v26, %v7670_v48  ;;  %vm3719_vm7 = vcmp.eq.s32.totalorder %v5439_v28, %v7670_v48 }
 0xd99   :  { %5101 = vmatprep.subr.msk.bf16.mxu0 %vm5100_vm15, %v5242_v23  ;;  %vm3725_vm15 = vcmp.eq.s32.totalorder %v5416_v27, %v7670_v48 }
 0xd9a   :  { %vm5110_vm4 = vmpackc.low %vm3725_vm15, %vm3723_vm1  ;;  %vm3714_vm1 = vcmp.eq.s32.totalorder %v5494_v33, %v7664_v50 }
 0xd9c   :  { %5103 = vmatpush1.bf16.msk.msra.mxu0 %vm5102_vm11, %v5242_v23  ;;  %vm3721_vm11 = vcmp.eq.s32.totalorder %v5442_v29, %v7670_v48 }
 0xd9d   :  { %5105 = vmatprep.subr.msk.bf16.mxu0 %vm5104_vm2, %v5242_v23  ;;  %vm3716_vm2 = vcmp.eq.s32.totalorder %v5465_v30, %v7664_v50  ;;  %vm5114_vm10 = vmpackc.low %vm3721_vm11, %vm3719_vm7  ;;  %vm3710_vm7 = vcmp.eq.s32.totalorder %v5517_v34, %v7664_v50 }
 0xd9e   :  { %vm5116_vm5 = vmpackc.low %vm3718_vm9, %vm3716_vm2  ;;  %vm3707_vm9 = vcmp.eq.s32.totalorder %v5307_v7, %v7670_v48 }
 0xda0   :  { %5107 = vmatpush1.bf16.msk.msra.mxu0 %vm5106_vm14, %v5242_v23  ;;  %vm3717_vm14 = vcmp.eq.s32.totalorder %v5468_v31, %v7670_v48 }
 0xda1   :  { %5109 = vmatprep.subr.msk.bf16.mxu0 %vm5108_vm12, %v5242_v23  ;;  %vm3712_vm12 = vcmp.eq.s32.totalorder %v5491_v32, %v7664_v50  ;;  %vm5118_vm15 = vmpackc.low %vm3717_vm14, %vm3715_vm13  ;;  %vm3754_vm13 = vcmp.eq.s32.totalorder %v5543_v36, %v7664_v50 }
 0xda2   :  { %vm5120_vm3 = vmpackc.low %vm3714_vm1, %vm3712_vm12  ;;  %vm3751_vm1 = vcmp.eq.s32.totalorder %v5540_v35, %v7670_v48 }
 0xda4   :  { %5111 = vmatpush1.bf16.msk.msra.mxu0 %vm5110_vm4, %v5242_v23  ;;  %vm3713_vm4 = vcmp.eq.s32.totalorder %v5494_v33, %v7670_v48 }
 0xda5   :  { %5113 = vmatprep.subr.msk.bf16.mxu0 %vm5112_vm6, %v5242_v23  ;;  %vm3708_vm6 = vcmp.eq.s32.totalorder %v5307_v7, %v7664_v50  ;;  %vm5122_vm11 = vmpackc.low %vm3713_vm4, %vm3711_vm0  ;;  %vm3750_vm0 = vcmp.eq.s32.totalorder %v5569_v38, %v7664_v50 }
 0xda6   :  { %vm5124_vm2 = vmpackc.low %vm3710_vm7, %vm3708_vm6  ;;  %vm3747_vm7 = vcmp.eq.s32.totalorder %v5566_v37, %v7670_v48 }
 0xda8   :  { %5115 = vmatpush1.bf16.msk.msra.mxu0 %vm5114_vm10, %v5242_v23  ;;  %vm3709_vm10 = vcmp.eq.s32.totalorder %v5517_v34, %v7670_v48 }
 0xda9   :  { %5117 = vmatprep.subr.msk.bf16.mxu0 %vm5116_vm5, %v5242_v23  ;;  %vm3752_vm5 = vcmp.eq.s32.totalorder %v5540_v35, %v7664_v50  ;;  %vm5126_vm14 = vmpackc.low %vm3709_vm10, %vm3707_vm9  ;;  %vm3746_vm9 = vcmp.eq.s32.totalorder %v5595_v40, %v7664_v50 }
 0xdaa   :  { %vm5128_vm12 = vmpackc.low %vm3754_vm13, %vm3752_vm5  ;;  %vm3743_vm13 = vcmp.eq.s32.totalorder %v5592_v39, %v7670_v48 }
 0xdac   :  { %5119 = vmatpush1.bf16.msk.msra.mxu0 %vm5118_vm15, %v5242_v23  ;;  %vm3753_vm15 = vcmp.eq.s32.totalorder %v5543_v36, %v7670_v48 }
 0xdad   :  { %5121 = vmatprep.subr.msk.bf16.mxu0 %vm5120_vm3, %v5242_v23  ;;  %vm3748_vm3 = vcmp.eq.s32.totalorder %v5566_v37, %v7664_v50  ;;  %vm5130_vm4 = vmpackc.low %vm3753_vm15, %vm3751_vm1  ;;  %vm3742_vm1 = vcmp.eq.s32.totalorder %v5621_v42, %v7664_v50 }
 0xdae   :  { %vm5132_vm6 = vmpackc.low %vm3750_vm0, %vm3748_vm3  ;;  %vm3739_vm0 = vcmp.eq.s32.totalorder %v5618_v41, %v7670_v48 }
 0xdb0   :  { %5123 = vmatpush1.bf16.msk.msra.mxu0 %vm5122_vm11, %v5242_v23  ;;  %vm3749_vm11 = vcmp.eq.s32.totalorder %v5569_v38, %v7670_v48 }
 0xdb1   :  { %5125 = vmatprep.subr.msk.bf16.mxu0 %vm5124_vm2, %v5242_v23  ;;  %vm3744_vm2 = vcmp.eq.s32.totalorder %v5592_v39, %v7664_v50  ;;  %vm5134_vm10 = vmpackc.low %vm3749_vm11, %vm3747_vm7 }
 0xdb2   :  { %vm5136_vm5 = vmpackc.low %vm3746_vm9, %vm3744_vm2  ;;  %vm3970_vm9 = vcmp.eq.s32.totalorder %v5328_v13, %v7825_v57 }
 0xdb4   :  { %5127 = vmatpush1.bf16.msk.msra.mxu0 %vm5126_vm14, %v5242_v23  ;;  %vm3745_vm14 = vcmp.eq.s32.totalorder %v5595_v40, %v7670_v48 }
 0xdb5   :  { %5129 = vmatprep.subr.msk.bf16.mxu0 %vm5128_vm12, %v5242_v23  ;;  %vm3740_vm12 = vcmp.eq.s32.totalorder %v5618_v41, %v7664_v50  ;;  %vm5138_vm15 = vmpackc.low %vm3745_vm14, %vm3743_vm13 }
 0xdb6   :  { %vm5140_vm3 = vmpackc.low %vm3742_vm1, %vm3740_vm12  ;;  %vm3966_vm1 = vcmp.eq.s32.totalorder %v5341_v17, %v7825_v57 }
 0xdb8   :  { %5131 = vmatpush2.bf16.msk.msra.mxu0 %vm5130_vm4, %v5242_v23  ;;  %vm3741_vm4 = vcmp.eq.s32.totalorder %v5621_v42, %v7670_v48 }
 0xdb9   :  { %5133 = vmatprep.subr.msk.bf16.mxu0 %vm5132_vm6, %v5242_v23  ;;  %vm5142_vm6 = vmpackc.low %vm3741_vm4, %vm3739_vm0  ;;  %vm8364_vm4 = vcmask 523264  }
 0xdbc   :  { %5135 = vmatpush2.bf16.msk.msra.mxu0 %vm5134_vm10, %v5242_v23  ;;  %vm3972_vm10 = vcmp.eq.s32.totalorder %v5331_v14, %v7825_v57 }
 0xdbd   :  { %5137 = vmatprep.subr.msk.bf16.mxu0 %vm5136_vm5, %v5242_v23  ;;  %vm5148_vm14 = vmpackc.low %vm3972_vm10, %vm3970_vm9 }
 0xdc0   :  { %5139 = vmatpush2.bf16.msk.msra.mxu0 %vm5138_vm15, %v5242_v23  ;;  %vm3968_vm15 = vcmp.eq.s32.totalorder %v5344_v18, %v7825_v57 }
 0xdc1   :  { %5141 = vmatprep.subr.msk.bf16.mxu0 %vm5140_vm3, %v5242_v23 }
 0xdc4   :  { %5143 = vmatpush2.bf16.msk.msra.mxu0 %vm5142_vm6, %v5242_v23  ;;  %vm5152_vm6 = vmpackc.low %vm3968_vm15, %vm3966_vm1 }
 0xdc7   :  { %3860 = vmatmul.mubr.bf16.vlgmr.msra.gmra.mxu0 %v6843_v59 }
 0xdc8   :  { %4154 = vmatprep.mubr.bf16.mxu0 %v5241_v8 }
 0xe57   :  { %v3686_v5 = vpop.f32.mrf.mxu0 }
 0xe58   :  { %v7804_v15 = vadd.f32 %v3686_v5, %v7649_v47  ;;  %v7819_v47 = vrot.slane %v7335_v0, %v6519_v60 }
 0xe59   :  { %v3688_v1 = vpop.f32.mrf.mxu0 }
 0xe5a   :  { %v7807_v43 = vadd.f32 %v3688_v1, %v7652_v54  ;;  %v3873_v54 = vrot.slane %v7509_v61, %v6349_v6  ;;  %vm3971_vm7 = vcmp.eq.s32.totalorder %v5328_v13, %v7819_v47  ;;  %vm3973_vm11 = vcmp.eq.s32.totalorder %v5331_v14, %v7819_v47  ;;  %v97_v6 = vld [vmem:[%s8343_s4 + $0x70] sm:$0xff]  ;;  %v149_v14 = vld [vmem:[%s8346_s7 + $0x138] sm:$0xff] }
 0xe5b   :  { %v3690_v2 = vpop.f32.mrf.mxu0  ;;  %vm5146_vm2 = vmpackc.low %vm3973_vm11, %vm3971_vm7  ;;  %v108_v48 = vpack.c.bf16 %v98_v52, %v97_v6  ;;  %vm3967_vm5 = vcmp.eq.s32.totalorder %v5341_v17, %v7819_v47  ;;  %vm3969_vm13 = vcmp.eq.s32.totalorder %v5344_v18, %v7819_v47  ;;  %vm3963_vm3 = vcmp.eq.s32.totalorder %v5387_v24, %v7819_v47  ;;  %v148_v13 = vld [vmem:[%s8346_s7 + $0x130] sm:$0xff]  ;;  %v2238_v17 = vld [vmem:[%s8345_s6 + $0x8] sm:$0xff] }
 0xe5c   :  { %v7810_v4 = vadd.f32 %v3690_v2, %v7655_v11  ;;  %vm5150_vm12 = vmpackc.low %vm3969_vm13, %vm3967_vm5  ;;  %vm3965_vm0 = vcmp.eq.s32.totalorder %v5390_v25, %v7819_v47  ;;  %vm3962_vm11 = vcmp.eq.s32.totalorder %v5387_v24, %v7825_v57  ;;  %vm3959_vm9 = vcmp.eq.s32.totalorder %v5413_v26, %v7819_v47  ;;  %v147_v24 = vld [vmem:[%s8346_s7 + $0x128] sm:$0xff]  ;;  %v118_v6 = vld [vmem:[%s8346_s7 + $0x40] sm:$0xff] }
 0xe5d   :  { %v3692_v12 = vpop.f32.mrf.mxu0  ;;  %vm5154_vm7 = vmpackc.low %vm3965_vm0, %vm3963_vm3  ;;  %vm3961_vm10 = vcmp.eq.s32.totalorder %v5416_v27, %v7819_v47  ;;  %vm3955_vm1 = vcmp.eq.s32.totalorder %v5439_v28, %v7819_v47  ;;  %vm3957_vm15 = vcmp.eq.s32.totalorder %v5442_v29, %v7819_v47  ;;  %v225_v18 = vpack.c.bf16 %v149_v14, %v148_v13  ;;  %v119_v52 = vld [vmem:[%s8346_s7 + $0x48] sm:$0xff]  ;;  %v114_v13 = vld [vmem:[%s8346_s7 + $0x20] sm:$0xff] }
 0xe5e   :  { %v7813_v51 = vadd.f32 %v3692_v12, %v7658_v56  ;;  %vm5158_vm13 = vmpackc.low %vm3961_vm10, %vm3959_vm9  ;;  %vm3950_vm10 = vcmp.eq.s32.totalorder %v5465_v30, %v7825_v57  ;;  %v4112_v1 = vrot.slane %v7498_v22, %v6519_v60  ;;  %v124_v22 = vld [vmem:[%s8346_s7 + $0x70] sm:$0xff]  ;;  %v115_v14 = vld [vmem:[%s8346_s7 + $0x28] sm:$0xff] }
 0xe5f   :  { %vm5162_vm0 = vmpackc.low %vm3957_vm15, %vm3955_vm1  ;;  %vm3946_vm15 = vcmp.eq.s32.totalorder %v5491_v32, %v7825_v57 }
 0xe87   :  { %v3861_v16 = vpop.f32.mrf.mxu0 }
 0xe88   :  { %v3878_v0 = vmul.f32 %v3873_v54, %v3861_v16 }
 0xe89   :  { %v3863_v45 = vpop.f32.mrf.mxu0 }
 0xe8a   :  { %v3879_v56 = vmul.f32 %v3877_v3, %v3863_v45 }
 0xe8b   :  { %v3865_v58 = vpop.f32.mrf.mxu0 }
 0xe8c   :  { %v3880_v50 = vmul.f32 %v3873_v54, %v3865_v58 }
 0xe8d   :  { %v3867_v11 = vpop.f32.mrf.mxu0 }
 0xe8e   :  { %v3881_v44 = vmul.f32 %v3877_v3, %v3867_v11  ;;  %v3882_v53 = vpack.c.bf16 %v3880_v50, %v3878_v0  ;;  %v122_v50 = vld [vmem:[%s8346_s7 + $0x60] sm:$0xff]  ;;  %v123_v11 = vld [vmem:[%s8346_s7 + $0x68] sm:$0xff] }
 0xe90   :  { %v3883_v63 = vpack.c.bf16 %v3881_v44, %v3879_v56  ;;  %v120_v56 = vld [vmem:[%s8346_s7 + $0x50] sm:$0xff]  ;;  %v121_v44 = vld [vmem:[%s8346_s7 + $0x58] sm:$0xff] }
 0xe91   :  { %v211_v0 = vpack.c.bf16 %v121_v44, %v120_v56  ;;  %v5217_v56 = vld [vmem:[#allocation2 + $0x10] sm:$0xff] }
 0xe92   :  { %3901 = vmatprep.subr.bf16.mxu1 %v3883_v63  ;;  %v210_v63 = vpack.c.bf16 %v119_v52, %v118_v6  ;;  %v5218_v52 = vld [vmem:[#allocation2 + $0x18] sm:$0xff] }
 0xe93   :  { %3902 = vmatpush1.bf16.msra.mxu1 %v3882_v53  ;;  %v116_v53 = vld [vmem:[%s8346_s7 + $0x30] sm:$0xff] }
 0xe94   :  { %5147 = vmatprep.subr.msk.bf16.mxu1 %vm5146_vm2, %v5242_v23  ;;  %vm3964_vm2 = vcmp.eq.s32.totalorder %v5390_v25, %v7825_v57 }
 0xe95   :  { %vm5156_vm5 = vmpackc.low %vm3964_vm2, %vm3962_vm11  ;;  %vm3953_vm11 = vcmp.eq.s32.totalorder %v5468_v31, %v7819_v47 }
 0xe96   :  { %5145 = vmatmul.mubr.msk.bf16.vlgmr.msra.gmra.mxu1 %vm2431_vm8, %v108_v48  ;;  %v117_v48 = vld [vmem:[%s8346_s7 + $0x38] sm:$0xff] }
 0xe97   :  { %5149 = vmatpush1.bf16.msk.msra.mxu1 %vm5148_vm14, %v5242_v23  ;;  %5194 = vmatprep.mubr.msk.bf16.mxu1 %vm8364_vm4, %v6841_v55  ;;  %vm3958_vm14 = vcmp.eq.s32.totalorder %v5413_v26, %v7825_v57  ;;  %vm3954_vm4 = vcmp.eq.s32.totalorder %v5439_v28, %v7825_v57  ;;  %v144_v26 = vld [vmem:[%s8346_s7 + $0x110] sm:$0xff] }
 0xe98   :  { %5151 = vmatprep.subr.msk.bf16.mxu1 %vm5150_vm12, %v5242_v23  ;;  %vm3960_vm12 = vcmp.eq.s32.totalorder %v5416_v27, %v7825_v57  ;;  %v145_v27 = vld [vmem:[%s8346_s7 + $0x118] sm:$0xff] }
 0xe99   :  { %vm5160_vm3 = vmpackc.low %vm3960_vm12, %vm3958_vm14  ;;  %vm3949_vm14 = vcmp.eq.s32.totalorder %v5494_v33, %v7819_v47  ;;  %v223_v28 = vpack.c.bf16 %v145_v27, %v144_v26  ;;  %v111_v26 = vld [vmem:[%s8346_s7 + $0x8] sm:$0xff] }
 0xe9b   :  { %5153 = vmatpush1.bf16.msk.msra.mxu1 %vm5152_vm6, %v5242_v23  ;;  %vm3956_vm6 = vcmp.eq.s32.totalorder %v5442_v29, %v7825_v57  ;;  %v142_v29 = vld [vmem:[%s8346_s7 + $0x100] sm:$0xff] }
 0xe9c   :  { %5155 = vmatprep.subr.msk.bf16.mxu1 %vm5154_vm7, %v5242_v23  ;;  %vm3951_vm7 = vcmp.eq.s32.totalorder %v5465_v30, %v7819_v47  ;;  %vm5164_vm2 = vmpackc.low %vm3956_vm6, %vm3954_vm4  ;;  %vm3945_vm4 = vcmp.eq.s32.totalorder %v5517_v34, %v7819_v47  ;;  %v143_v30 = vld [vmem:[%s8346_s7 + $0x108] sm:$0xff] }
 0xe9d   :  { %vm5166_vm9 = vmpackc.low %vm3953_vm11, %vm3951_vm7  ;;  %vm3942_vm11 = vcmp.eq.s32.totalorder %v5307_v7, %v7825_v57 }
 0xe9f   :  { %5157 = vmatpush1.bf16.msk.msra.mxu1 %vm5156_vm5, %v5242_v23  ;;  %vm3952_vm5 = vcmp.eq.s32.totalorder %v5468_v31, %v7825_v57  ;;  %v222_v31 = vpack.c.bf16 %v143_v30, %v142_v29  ;;  %v133_v29 = vld [vmem:[%s8346_s7 + $0xb8] sm:$0xff]  ;;  %v156_v30 = vld [vmem:[%s8346_s7 + $0x170] sm:$0xff] }
 0xea0   :  { %5159 = vmatprep.subr.msk.bf16.mxu1 %vm5158_vm13, %v5242_v23  ;;  %vm3947_vm13 = vcmp.eq.s32.totalorder %v5491_v32, %v7819_v47  ;;  %vm5168_vm12 = vmpackc.low %vm3952_vm5, %vm3950_vm10  ;;  %vm3989_vm10 = vcmp.eq.s32.totalorder %v5543_v36, %v7819_v47  ;;  %v140_v32 = vld [vmem:[%s8346_s7 + $0xf0] sm:$0xff] }
 0xea1   :  { %vm5170_vm1 = vmpackc.low %vm3949_vm14, %vm3947_vm13  ;;  %vm3986_vm14 = vcmp.eq.s32.totalorder %v5540_v35, %v7825_v57 }
 0xea3   :  { %5161 = vmatpush1.bf16.msk.msra.mxu1 %vm5160_vm3, %v5242_v23  ;;  %vm3948_vm3 = vcmp.eq.s32.totalorder %v5494_v33, %v7825_v57  ;;  %v141_v33 = vld [vmem:[%s8346_s7 + $0xf8] sm:$0xff] }
 0xea4   :  { %5163 = vmatprep.subr.msk.bf16.mxu1 %vm5162_vm0, %v5242_v23  ;;  %vm3943_vm0 = vcmp.eq.s32.totalorder %v5307_v7, %v7819_v47  ;;  %vm5172_vm6 = vmpackc.low %vm3948_vm3, %vm3946_vm15  ;;  %vm3985_vm15 = vcmp.eq.s32.totalorder %v5569_v38, %v7819_v47  ;;  %v2237_v7 = vld [vmem:[%s8345_s6] sm:$0xff] }
 0xea5   :  { %vm5174_vm7 = vmpackc.low %vm3945_vm4, %vm3943_vm0  ;;  %vm3982_vm4 = vcmp.eq.s32.totalorder %v5566_v37, %v7825_v57  ;;  %4171 = vperm.xlu1 %5206, %v2237_v7   ;;  %v209_v7 = vpack.c.bf16 %v117_v48, %v116_v53  ;;  %v197_v53 = vld [vmem:[%s8346_s7 + $0x2b8] sm:$0xff] }
 0xea7   :  { %5165 = vmatpush1.bf16.msk.msra.mxu1 %vm5164_vm2, %v5242_v23  ;;  %vm3944_vm2 = vcmp.eq.s32.totalorder %v5517_v34, %v7825_v57  ;;  %v221_v34 = vpack.c.bf16 %v141_v33, %v140_v32  ;;  %v157_v32 = vld [vmem:[%s8346_s7 + $0x178] sm:$0xff] }
 0xea8   :  { %5167 = vmatprep.subr.msk.bf16.mxu1 %vm5166_vm9, %v5242_v23  ;;  %vm3987_vm9 = vcmp.eq.s32.totalorder %v5540_v35, %v7819_v47  ;;  %vm5176_vm5 = vmpackc.low %vm3944_vm2, %vm3942_vm11  ;;  %vm3981_vm11 = vcmp.eq.s32.totalorder %v5595_v40, %v7819_v47  ;;  %v138_v35 = vld [vmem:[%s8346_s7 + $0xe0] sm:$0xff]  ;;  %v229_v33 = vpack.c.bf16 %v157_v32, %v156_v30  ;;  %v169_v30 = vld [vmem:[%s8346_s7 + $0x1d8] sm:$0xff] }
 0xea9   :  { %vm5178_vm13 = vmpackc.low %vm3989_vm10, %vm3987_vm9  ;;  %vm3978_vm10 = vcmp.eq.s32.totalorder %v5592_v39, %v7825_v57  ;;  %4176 = vperm.xlu1 %5206, %v2238_v17   ;;  %v208_v17 = vpack.c.bf16 %v115_v14, %v114_v13  ;;  %v193_v32 = vld [vmem:[%s8346_s7 + $0x298] sm:$0xff] }
 0xeab   :  { %5169 = vmatpush1.bf16.msk.msra.mxu1 %vm5168_vm12, %v5242_v23  ;;  %vm3988_vm12 = vcmp.eq.s32.totalorder %v5543_v36, %v7825_v57  ;;  %v139_v36 = vld [vmem:[%s8346_s7 + $0xe8] sm:$0xff] }
 0xeac   :  { %5171 = vmatprep.subr.msk.bf16.mxu1 %vm5170_vm1, %v5242_v23  ;;  %vm3983_vm1 = vcmp.eq.s32.totalorder %v5566_v37, %v7819_v47  ;;  %vm5180_vm3 = vmpackc.low %vm3988_vm12, %vm3986_vm14  ;;  %vm3977_vm14 = vcmp.eq.s32.totalorder %v5621_v42, %v7819_v47  ;;  %v220_v37 = vpack.c.bf16 %v139_v36, %v138_v35  ;;  %v131_v35 = vld [vmem:[%s8346_s7 + $0xa8] sm:$0xff]  ;;  %v154_v36 = vld [vmem:[%s8346_s7 + $0x160] sm:$0xff] }
 0xead   :  { %vm5182_vm0 = vmpackc.low %vm3985_vm15, %vm3983_vm1  ;;  %vm3974_vm15 = vcmp.eq.s32.totalorder %v5618_v41, %v7825_v57 }
 0xeaf   :  { %5173 = vmatpush1.bf16.msk.msra.mxu1 %vm5172_vm6, %v5242_v23  ;;  %vm3984_vm6 = vcmp.eq.s32.totalorder %v5569_v38, %v7825_v57  ;;  %v136_v38 = vld [vmem:[%s8346_s7 + $0xd0] sm:$0xff] }
 0xeb0   :  { %5175 = vmatprep.subr.msk.bf16.mxu1 %vm5174_vm7, %v5242_v23  ;;  %vm3979_vm7 = vcmp.eq.s32.totalorder %v5592_v39, %v7819_v47  ;;  %vm5184_vm2 = vmpackc.low %vm3984_vm6, %vm3982_vm4  ;;  %v137_v39 = vld [vmem:[%s8346_s7 + $0xd8] sm:$0xff] }
 0xeb1   :  { %vm5186_vm9 = vmpackc.low %vm3981_vm11, %vm3979_vm7  ;;  %vm4366_vm11 = vcmask 392192  }
 0xeb3   :  { %5177 = vmatpush1.bf16.msk.msra.mxu1 %vm5176_vm5, %v5242_v23  ;;  %vm3980_vm5 = vcmp.eq.s32.totalorder %v5595_v40, %v7825_v57  ;;  %v219_v40 = vpack.c.bf16 %v137_v39, %v136_v38  ;;  %v155_v38 = vld [vmem:[%s8346_s7 + $0x168] sm:$0xff] }
 0xeb4   :  { %5179 = vmatprep.subr.msk.bf16.mxu1 %vm5178_vm13, %v5242_v23  ;;  %vm3975_vm13 = vcmp.eq.s32.totalorder %v5618_v41, %v7819_v47  ;;  %vm5188_vm12 = vmpackc.low %vm3980_vm5, %vm3978_vm10  ;;  %v134_v41 = vld [vmem:[%s8346_s7 + $0xc0] sm:$0xff]  ;;  %v228_v39 = vpack.c.bf16 %v155_v38, %v154_v36  ;;  %v167_v36 = vld [vmem:[%s8346_s7 + $0x1c8] sm:$0xff] }
 0xeb5   :  { %vm5190_vm1 = vmpackc.low %vm3977_vm14, %vm3975_vm13  ;;  %v191_v38 = vld [vmem:[%s8346_s7 + $0x288] sm:$0xff] }
 0xeb7   :  { %5181 = vmatpush2.bf16.msk.msra.mxu1 %vm5180_vm3, %v5242_v23  ;;  %vm3976_vm3 = vcmp.eq.s32.totalorder %v5621_v42, %v7825_v57  ;;  %v135_v42 = vld [vmem:[%s8346_s7 + $0xc8] sm:$0xff]  ;;  %v212_v57 = vpack.c.bf16 %v123_v11, %v122_v50 }
 0xeb8   :  { %5183 = vmatprep.subr.msk.bf16.mxu1 %vm5182_vm0, %v5242_v23  ;;  %vm5192_vm0 = vmpackc.low %vm3976_vm3, %vm3974_vm15  ;;  %v218_v55 = vpack.c.bf16 %v135_v42, %v134_v41  ;;  %v129_v41 = vld [vmem:[%s8346_s7 + $0x98] sm:$0xff]  ;;  %v152_v42 = vld [vmem:[%s8346_s7 + $0x150] sm:$0xff] }
 0xeb9   :  { %v5216_v11 = vld [vmem:[#allocation2 + $0x8] sm:$0xff] }
 0xebb   :  { %5185 = vmatpush2.bf16.msk.msra.mxu1 %vm5184_vm2, %v5242_v23 }
 0xebc   :  { %5187 = vmatprep.subr.msk.bf16.mxu1 %vm5186_vm9, %v5242_v23 }
 0xebf   :  { %5189 = vmatpush2.bf16.msk.msra.mxu1 %vm5188_vm12, %v5242_v23 }
 0xec0   :  { %5191 = vmatprep.subr.msk.bf16.mxu1 %vm5190_vm1, %v5242_v23 }
 0xec3   :  { %5193 = vmatpush2.bf16.msk.msra.mxu1 %vm5192_vm0, %v5242_v23  ;;  %v146_v23 = vld [vmem:[%s8346_s7 + $0x120] sm:$0xff] }
 0xec4   :  { %4237 = vmatprep.subr.bf16.mxu1 %v5241_v8  ;;  %v224_v25 = vpack.c.bf16 %v147_v24, %v146_v23  ;;  %v113_v23 = vld [vmem:[%s8346_s7 + $0x18] sm:$0xff] }
 0xec6   :  { %4095 = vmatmul.mubr.bf16.vlgmr.msra.gmra.mxu1 %v6843_v59 }
 0xec7   :  { %4238 = vmatpush1.bf16.msra.mxu1 %v225_v18  ;;  %v112_v18 = vld [vmem:[%s8346_s7 + $0x10] sm:$0xff] }
 0xec8   :  { %4239 = vmatprep.subr.bf16.mxu1 %v5241_v8  ;;  %v207_v24 = vpack.c.bf16 %v113_v23, %v112_v18  ;;  %v170_v23 = vld [vmem:[%s8346_s7 + $0x1e0] sm:$0xff] }
 0xecb   :  { %4240 = vmatpush1.bf16.msra.mxu1 %v224_v25  ;;  %v110_v25 = vld [vmem:[%s8346_s7] sm:$0xff] }
 0xecc   :  { %4241 = vmatprep.subr.bf16.mxu1 %v5241_v8  ;;  %v206_v27 = vpack.c.bf16 %v111_v26, %v110_v25  ;;  %v194_v25 = vld [vmem:[%s8346_s7 + $0x2a0] sm:$0xff]  ;;  %v195_v26 = vld [vmem:[%s8346_s7 + $0x2a8] sm:$0xff] }
 0xecf   :  { %4242 = vmatpush1.bf16.msra.mxu1 %v223_v28  ;;  %v132_v28 = vld [vmem:[%s8346_s7 + $0xb0] sm:$0xff] }
 0xed0   :  { %4243 = vmatprep.subr.bf16.mxu1 %v5241_v8 }
 0xed3   :  { %4244 = vmatpush1.bf16.msra.mxu1 %v222_v31  ;;  %v217_v31 = vpack.c.bf16 %v133_v29, %v132_v28  ;;  %v248_v28 = vpack.c.bf16 %v195_v26, %v194_v25  ;;  %v168_v29 = vld [vmem:[%s8346_s7 + $0x1d0] sm:$0xff] }
 0xed4   :  { %4245 = vmatprep.subr.bf16.mxu1 %v5241_v8 }
 0xed7   :  { %4246 = vmatpush1.bf16.msra.mxu1 %v221_v34  ;;  %v130_v34 = vld [vmem:[%s8346_s7 + $0xa0] sm:$0xff] }
 0xed8   :  { %4247 = vmatprep.subr.bf16.mxu1 %v5241_v8 }
 0xedb   :  { %4248 = vmatpush1.bf16.msra.mxu1 %v220_v37  ;;  %v216_v37 = vpack.c.bf16 %v131_v35, %v130_v34  ;;  %v166_v35 = vld [vmem:[%s8346_s7 + $0x1c0] sm:$0xff] }
 0xedc   :  { %4249 = vmatprep.subr.bf16.mxu1 %v5241_v8 }
 0xedf   :  { %4250 = vmatpush1.bf16.msra.mxu1 %v219_v40  ;;  %v128_v40 = vld [vmem:[%s8346_s7 + $0x90] sm:$0xff] }
 0xee0   :  { %4251 = vmatprep.subr.bf16.mxu1 %v5241_v8 }
 0xee3   :  { %4252 = vmatpush1.bf16.msra.mxu1 %v218_v55  ;;  %v215_v55 = vpack.c.bf16 %v129_v41, %v128_v40  ;;  %v164_v41 = vld [vmem:[%s8346_s7 + $0x1b0] sm:$0xff] }
 0xee4   :  { %4261 = vmatprep.subr.bf16.mxu1 %v5241_v8 }
 0xee7   :  { %4262 = vmatpush2.bf16.msra.mxu1 %v229_v33  ;;  %v235_v33 = vpack.c.bf16 %v169_v30, %v168_v29 }
 0xee8   :  { %4263 = vmatprep.subr.bf16.mxu1 %v5241_v8 }
 0xeeb   :  { %4264 = vmatpush2.bf16.msra.mxu1 %v228_v39  ;;  %v234_v39 = vpack.c.bf16 %v167_v36, %v166_v35 }
 0xeec   :  { %4265 = vmatprep.subr.bf16.mxu1 %v5241_v8 }
 0xf56   :  { %v3921_v59 = vpop.f32.mrf.mxu1 }
 0xf57   :  { %v8021_v49 = vadd.f32 %v3921_v59, %v7804_v15  ;;  %v4108_v15 = vrot.slane %v7509_v61, %v6519_v60  ;;  %v125_v60 = vld [vmem:[%s8346_s7 + $0x78] sm:$0xff] }
 0xf58   :  { %v3923_v20 = vpop.f32.mrf.mxu1  ;;  %v213_v58 = vpack.c.bf16 %v125_v60, %v124_v22  ;;  %v153_v59 = vld [vmem:[%s8346_s7 + $0x158] sm:$0xff] }
 0xf59   :  { %v8024_v46 = vadd.f32 %v3923_v20, %v7807_v43  ;;  %v227_v20 = vpack.c.bf16 %v153_v59, %v152_v42  ;;  %v165_v42 = vld [vmem:[%s8346_s7 + $0x1b8] sm:$0xff] }
 0xf5a   :  { %v3925_v62 = vpop.f32.mrf.mxu1  ;;  %v189_v59 = vld [vmem:[%s8346_s7 + $0x278] sm:$0xff] }
 0xf5b   :  { %v8027_v9 = vadd.f32 %v3925_v62, %v7810_v4  ;;  %v99_v4 = vld [vmem:[%s8343_s4 + $0x80] sm:$0xff]  ;;  %4266 = vmatpush2.bf16.msra.mxu1 %v227_v20  ;;  %v233_v20 = vpack.c.bf16 %v165_v42, %v164_v41 }
 0xf5c   :  { %v3927_v21 = vpop.f32.mrf.mxu1  ;;  %v126_v62 = vld [vmem:[%s8346_s7 + $0x80] sm:$0xff]  ;;  %4267 = vmatprep.subr.bf16.mxu1 %v5241_v8 }
 0xf5d   :  { %v8030_v19 = vadd.f32 %v3927_v21, %v7813_v51  ;;  %v100_v51 = vld [vmem:[%s8343_s4 + $0x88] sm:$0xff] }
 0xf5e   :  { %v109_v54 = vpack.c.bf16 %v100_v51, %v99_v4  ;;  %v127_v21 = vld [vmem:[%s8346_s7 + $0x88] sm:$0xff] }
 0xf86   :  { %v4096_v10 = vpop.f32.mrf.mxu1 }
 0xf87   :  { %v4113_v3 = vmul.f32 %v4108_v15, %v4096_v10  ;;  %v150_v10 = vld [vmem:[%s8346_s7 + $0x140] sm:$0xff] }
 0xf88   :  { %v4098_v5 = vpop.f32.mrf.mxu1 }
 0xf89   :  { %v4114_v16 = vmul.f32 %v4112_v1, %v4098_v5  ;;  %v214_v5 = vpack.c.bf16 %v127_v21, %v126_v62  ;;  %v162_v21 = vld [vmem:[%s8346_s7 + $0x1a0] sm:$0xff] }
 0xf8a   :  { %v4100_v2 = vpop.f32.mrf.mxu1 }
 0xf8b   :  { %v4115_v12 = vmul.f32 %v4108_v15, %v4100_v2 }
 0xf8c   :  { %v4102_v43 = vpop.f32.mrf.mxu1 }
 0xf8d   :  { %v4116_v45 = vmul.f32 %v4112_v1, %v4102_v43  ;;  %v4117_v61 = vpack.c.bf16 %v4115_v12, %v4113_v3  ;;  %v151_v1 = vld [vmem:[%s8346_s7 + $0x148] sm:$0xff]  ;;  %v4172_v12 = vpop.permute.xlu1 %4171 }
 0xf8e   :  { %v226_v15 = vpack.c.bf16 %v151_v1, %v150_v10  ;;  %v163_v10 = vld [vmem:[%s8346_s7 + $0x1a8] sm:$0xff] }
 0xf8f   :  { %v4118_v47 = vpack.c.bf16 %v4116_v45, %v4114_v16  ;;  %v187_v1 = vld [vmem:[%s8346_s7 + $0x268] sm:$0xff] }
 0xf90   :  { %4268 = vmatpush2.bf16.msra.mxu1 %v226_v15  ;;  %v232_v15 = vpack.c.bf16 %v163_v10, %v162_v21 }
 0xf91   :  { %4136 = vmatprep.subr.bf16.mxu0 %v4118_v47  ;;  %4323 = vmatprep.subr.bf16.mxu1 %v5241_v8  ;;  %v4177_v22 = vpop.permute.xlu1 %4176 }
 0xf92   :  { %4137 = vmatpush1.bf16.msra.mxu0 %v4117_v61  ;;  %v5215_v61 = vld [vmem:[#allocation2] sm:$0xff] }
 0xf93   :  { %4196 = vmatprep.subr.bf16.mxu0 %v5241_v8 }
 0xf95   :  { %5195 = vmatmul.mubr.msk.bf16.vlgmr.msra.gmra.mxu0 %vm2431_vm8, %v109_v54  ;;  %vm8365_vm8 = vcmask 523264  }
 0xf96   :  { %4197 = vmatpush1.bf16.msra.mxu0 %v213_v58  ;;  %vm8366_vm4 = vmmov %vm8365_vm8 }
 0xf97   :  { %4198 = vmatprep.subr.bf16.mxu0 %v5241_v8  ;;  %vm8367_vm6 = vmmov %vm8366_vm4 }
 0xf98   :  { %vm8368_vm7 = vmmov %vm8366_vm4 }
 0xf9a   :  { %4199 = vmatpush1.bf16.msra.mxu0 %v212_v57 }
 0xf9b   :  { %4200 = vmatprep.subr.bf16.mxu0 %v5241_v8 }
 0xf9e   :  { %4201 = vmatpush1.bf16.msra.mxu0 %v211_v0 }
 0xf9f   :  { %4202 = vmatprep.subr.bf16.mxu0 %v5241_v8 }
 0xfa2   :  { %4203 = vmatpush1.bf16.msra.mxu0 %v210_v63  ;;  %v173_v63 = vld [vmem:[%s8346_s7 + $0x1f8] sm:$0xff] }
 0xfa3   :  { %4204 = vmatprep.subr.bf16.mxu0 %v5241_v8 }
 0xfa6   :  { %4205 = vmatpush1.bf16.msra.mxu0 %v209_v7 }
 0xfa7   :  { %4206 = vmatprep.subr.bf16.mxu0 %v5241_v8 }
 0xfaa   :  { %4207 = vmatpush1.bf16.msra.mxu0 %v208_v17 }
 0xfab   :  { %4208 = vmatprep.subr.bf16.mxu0 %v5241_v8 }
 0xfae   :  { %4209 = vmatpush1.bf16.msra.mxu0 %v207_v24  ;;  %v171_v24 = vld [vmem:[%s8346_s7 + $0x1e8] sm:$0xff] }
 0xfaf   :  { %4210 = vmatprep.subr.bf16.mxu0 %v5241_v8 }
 0xfb2   :  { %4211 = vmatpush1.bf16.msra.mxu0 %v206_v27  ;;  %v236_v27 = vpack.c.bf16 %v171_v24, %v170_v23  ;;  %v198_v23 = vld [vmem:[%s8346_s7 + $0x2c0] sm:$0xff]  ;;  %v199_v24 = vld [vmem:[%s8346_s7 + $0x2c8] sm:$0xff] }
 0xfb3   :  { %4220 = vmatprep.subr.bf16.mxu0 %v5241_v8  ;;  %v250_v26 = vpack.c.bf16 %v199_v24, %v198_v23 }
 0xfb6   :  { %4221 = vmatpush2.bf16.msra.mxu0 %v217_v31  ;;  %v192_v31 = vld [vmem:[%s8346_s7 + $0x290] sm:$0xff] }
 0xfb7   :  { %4222 = vmatprep.subr.bf16.mxu0 %v5241_v8  ;;  %v247_v34 = vpack.c.bf16 %v193_v32, %v192_v31 }
 0xfba   :  { %4223 = vmatpush2.bf16.msra.mxu0 %v216_v37  ;;  %v190_v37 = vld [vmem:[%s8346_s7 + $0x280] sm:$0xff] }
 0xfbb   :  { %4224 = vmatprep.subr.bf16.mxu0 %v5241_v8  ;;  %v246_v40 = vpack.c.bf16 %v191_v38, %v190_v37 }
 0xfbe   :  { %4225 = vmatpush2.bf16.msra.mxu0 %v215_v55  ;;  %v188_v55 = vld [vmem:[%s8346_s7 + $0x270] sm:$0xff] }
 0xfbf   :  { %4226 = vmatprep.subr.bf16.mxu0 %v5241_v8  ;;  %v245_v62 = vpack.c.bf16 %v189_v59, %v188_v55 }
 0xfc2   :  { %4227 = vmatpush2.bf16.msra.mxu0 %v214_v5  ;;  %v186_v5 = vld [vmem:[%s8346_s7 + $0x260] sm:$0xff] }
 0xfc3   :  { %4280 = vmatprep.subr.bf16.mxu0 %v5241_v8 }
0x1055   :  { %v4156_v2 = vpop.f32.mrf.mxu0 }
0x1056   :  { %v4165_v43 = vadd.f32 %v4156_v2, %v8021_v49  ;;  %v244_v2 = vpack.c.bf16 %v187_v1, %v186_v5 }
0x1057   :  { %v4158_v16 = vpop.f32.mrf.mxu0 }
0x1058   :  { %v4179_v45 = vadd.f32 %v4172_v12, %v4165_v43  ;;  %v4166_v3 = vadd.f32 %v4158_v16, %v8024_v46  ;;  %v161_v43 = vld [vmem:[%s8346_s7 + $0x198] sm:$0xff]  ;;  %v184_v16 = vld [vmem:[%s8346_s7 + $0x250] sm:$0xff] }
0x1059   :  { %v4160_v4 = vpop.f32.mrf.mxu0 }
0x105a   :  { %v4180_v51 = vadd.f32 %v4172_v12, %v4166_v3  ;;  %v4167_v47 = vadd.f32 %v4160_v4, %v8027_v9  ;;  %v4183_v54 = vadd.f32 %v5215_v61, %v4179_v45  ;;  %v172_v9 = vld [vmem:[%s8346_s7 + $0x1f0] sm:$0xff]  ;;  %v185_v45 = vld [vmem:[%s8346_s7 + $0x258] sm:$0xff] }
0x105b   :  { %v4162_v60 = vpop.f32.mrf.mxu0  ;;  %v237_v17 = vpack.c.bf16 %v173_v63, %v172_v9  ;;  %v160_v12 = vld [vmem:[%s8346_s7 + $0x190] sm:$0xff]  ;;  %v243_v4 = vpack.c.bf16 %v185_v45, %v184_v16 }
0x105c   :  { %v4181_v58 = vadd.f32 %v4177_v22, %v4167_v47  ;;  %v4168_v50 = vadd.f32 %v4162_v60, %v8030_v19  ;;  %v4184_v57 = vadd.f32 %v5216_v11, %v4180_v51  ;;  %v4187_v0 = vmax.f32 %v4183_v54, 0.0  ;;  %v196_v19 = vld [vmem:[%s8346_s7 + $0x2b0] sm:$0xff]  ;;  %v158_v51 = vld [vmem:[%s8346_s7 + $0x180] sm:$0xff]  ;;  %v159_v47 = vld [vmem:[%s8346_s7 + $0x188] sm:$0xff] }
0x105d   :  { %v249_v18 = vpack.c.bf16 %v197_v53, %v196_v19  ;;  %v231_v3 = vpack.c.bf16 %v161_v43, %v160_v12  ;;  %v183_v60 = vld [vmem:[%s8346_s7 + $0x248] sm:$0xff]  ;;  %v230_v61 = vpack.c.bf16 %v159_v47, %v158_v51  ;;  %v204_v11 = vld [vmem:[%s8346_s7 + $0x2f0] sm:$0xff]  ;;  %v177_v19 = vld [vmem:[%s8346_s7 + $0x218] sm:$0xff] }
0x105e   :  { %v4185_v44 = vadd.f32 %v5217_v56, %v4181_v58  ;;  %v4182_v49 = vadd.f32 %v4177_v22, %v4168_v50  ;;  %v4188_v48 = vmax.f32 %v4184_v57, 0.0  ;;  %v182_v22 = vld [vmem:[%s8346_s7 + $0x240] sm:$0xff]  ;;  %v180_v58 = vld [vmem:[%s8346_s7 + $0x230] sm:$0xff]  ;;  %v181_v50 = vld [vmem:[%s8346_s7 + $0x238] sm:$0xff] }
0x105f   :  { %v242_v54 = vpack.c.bf16 %v183_v60, %v182_v22  ;;  %v205_v57 = vld [vmem:[%s8346_s7 + $0x2f8] sm:$0xff]  ;;  %v241_v56 = vpack.c.bf16 %v181_v50, %v180_v58  ;;  %v176_v63 = vld [vmem:[%s8346_s7 + $0x210] sm:$0xff] }
0x1060   :  { %v4189_v6 = vmax.f32 %v4185_v44, 0.0  ;;  %v4186_v46 = vadd.f32 %v5218_v52, %v4182_v49  ;;  %v253_v44 = vpack.c.bf16 %v205_v57, %v204_v11  ;;  %v178_v49 = vld [vmem:[%s8346_s7 + $0x220] sm:$0xff]  ;;  %v203_v52 = vld [vmem:[%s8346_s7 + $0x2e8] sm:$0xff]  ;;  %v200_v53 = vld [vmem:[%s8346_s7 + $0x2d0] sm:$0xff] }
0x1062   :  { %v8172_v7 = vpack.c.bf16 %v4189_v6, %v4187_v0  ;;  %v4190_v13 = vmax.f32 %v4186_v46, 0.0  ;;  %v179_v0 = vld [vmem:[%s8346_s7 + $0x228] sm:$0xff]  ;;  %v202_v6 = vld [vmem:[%s8346_s7 + $0x2e0] sm:$0xff] }
0x1063   :  { %v240_v46 = vpack.c.bf16 %v179_v0, %v178_v49  ;;  %v252_v9 = vpack.c.bf16 %v203_v52, %v202_v6 }
0x1064   :  { %v4192_v14 = vpack.c.bf16 %v4190_v13, %v4188_v48  ;;  %v201_v48 = vld [vmem:[%s8346_s7 + $0x2d8] sm:$0xff]  ;;  %v239_v13 = vpack.c.bf16 %v177_v19, %v176_v63 }
0x1066   :  { %5196 = vmatprep.mubr.msk.bf16.mxu0 %vm8365_vm8, %v4192_v14  ;;  %5197 = vmatprep.mubr.msk.bf16.mxu1 %vm8366_vm4, %v4192_v14 }
0x1067   :  { %4229 = vmatmul.mubr.bf16.vlgmr.msra.gmra.mxu0 %v8172_v7  ;;  %4270 = vmatmul.mubr.bf16.vlgmr.msra.gmra.mxu1 %v8172_v7 }
0x1068   :  { %4281 = vmatpush1.bf16.msra.mxu0 %v237_v17  ;;  %4324 = vmatpush1.bf16.msra.mxu1 %v249_v18  ;;  %v174_v17 = vld [vmem:[%s8346_s7 + $0x200] sm:$0xff]  ;;  %v175_v18 = vld [vmem:[%s8346_s7 + $0x208] sm:$0xff]  ;;  %s5243_s7 = smov [#allocation3]  }
0x1069   :  { %5198 = vmatprep.mubr.msk.bf16.mxu0 %vm8367_vm6, %v4192_v14  ;;  %5199 = vmatprep.mubr.msk.bf16.mxu1 %vm8368_vm7, %v4192_v14  ;;  %v251_v14 = vpack.c.bf16 %v201_v48, %v200_v53  ;;  %v238_v25 = vpack.c.bf16 %v175_v18, %v174_v17  ;;  %s4374_s0 = sshll.u32 %s5243_s7, 4  ;;  %s4375_s0 = int_to_ptr.vmem [resolvable:$true] %s4374_s0 }
0x106a   :  { %4282 = vmatprep.subr.bf16.mxu0 %v5241_v8  ;;  %4325 = vmatprep.subr.bf16.mxu1 %v5241_v8  ;;  %s5219_s13 = scalar_lea.vmem %s4375_s0, 256  ;;  %p5224_p1 = scmp.lt.s32.totalorder %s4375_s0, %s4375_s0 }
0x106b   :  { %p5220_p0 = scmp.ne.s32.totalorder %s4375_s0, %s5219_s13  ;;  %p5225_p2 = scmp.lt.s32.totalorder %s5219_s13, %s5219_s13 }
0x106c   :  { %4283 = vmatpush1.bf16.msra.mxu0 %v236_v27  ;;  %4326 = vmatpush1.bf16.msra.mxu1 %v248_v28 }
0x106d   :  { %4284 = vmatprep.subr.bf16.mxu0 %v5241_v8  ;;  %4327 = vmatprep.subr.bf16.mxu1 %v5241_v8  ;;  %p5226_p3 = por %p5225_p2, %p5224_p1 }
0x106f   :  { %p5227_p4 = pnand %p5226_p3, %p5220_p0 }
0x1070   :  { %4285 = vmatpush1.bf16.msra.mxu0 %v235_v33  ;;  %4328 = vmatpush1.bf16.msra.mxu1 %v247_v34 }
0x1071   :  { %4286 = vmatprep.subr.bf16.mxu0 %v5241_v8  ;;  %4329 = vmatprep.subr.bf16.mxu1 %v5241_v8 }
0x1074   :  { %4287 = vmatpush1.bf16.msra.mxu0 %v234_v39  ;;  %4330 = vmatpush1.bf16.msra.mxu1 %v246_v40 }
0x1075   :  { %4288 = vmatprep.subr.bf16.mxu0 %v5241_v8  ;;  %4331 = vmatprep.subr.bf16.mxu1 %v5241_v8 }
0x1078   :  { %4289 = vmatpush1.bf16.msra.mxu0 %v233_v20  ;;  %4332 = vmatpush1.bf16.msra.mxu1 %v245_v62 }
0x1079   :  { %4290 = vmatprep.subr.bf16.mxu0 %v5241_v8  ;;  %4333 = vmatprep.subr.bf16.mxu1 %v5241_v8 }
0x107c   :  { %4291 = vmatpush1.bf16.msra.mxu0 %v232_v15  ;;  %4334 = vmatpush1.bf16.msra.mxu1 %v244_v2 }
0x107d   :  { %4292 = vmatprep.subr.bf16.mxu0 %v5241_v8  ;;  %4335 = vmatprep.subr.bf16.mxu1 %v5241_v8 }
0x1080   :  { %4293 = vmatpush1.bf16.msra.mxu0 %v231_v3  ;;  %4336 = vmatpush1.bf16.msra.mxu1 %v243_v4 }
0x1081   :  { %4294 = vmatprep.subr.bf16.mxu0 %v5241_v8  ;;  %4337 = vmatprep.subr.bf16.mxu1 %v5241_v8 }
0x1084   :  { %4295 = vmatpush1.bf16.msra.mxu0 %v230_v61  ;;  %4338 = vmatpush1.bf16.msra.mxu1 %v242_v54 }
0x1085   :  { %4304 = vmatprep.subr.bf16.mxu0 %v5241_v8  ;;  %4347 = vmatprep.subr.bf16.mxu1 %v5241_v8 }
0x1088   :  { %4305 = vmatpush2.bf16.msra.mxu0 %v241_v56  ;;  %4348 = vmatpush2.bf16.msra.mxu1 %v253_v44 }
0x1089   :  { %4306 = vmatprep.subr.bf16.mxu0 %v5241_v8  ;;  %4349 = vmatprep.subr.bf16.mxu1 %v5241_v8 }
0x108c   :  { %4307 = vmatpush2.bf16.msra.mxu0 %v240_v46  ;;  %4350 = vmatpush2.bf16.msra.mxu1 %v252_v9 }
0x108d   :  { %4308 = vmatprep.subr.bf16.mxu0 %v5241_v8  ;;  %4351 = vmatprep.subr.bf16.mxu1 %v5241_v8 }
0x1090   :  { %4309 = vmatpush2.bf16.msra.mxu0 %v239_v13  ;;  %4352 = vmatpush2.bf16.msra.mxu1 %v251_v14 }
0x1091   :  { %4310 = vmatprep.subr.bf16.mxu0 %v5241_v8  ;;  %4353 = vmatprep.subr.bf16.mxu1 %v5241_v8 }
0x1094   :  { %4311 = vmatpush2.bf16.msra.mxu0 %v238_v25  ;;  %4354 = vmatpush2.bf16.msra.mxu1 %v250_v26 }
0x1097   :  { %4313 = vmatmul.mubr.bf16.vlgmr.msra.gmra.mxu0 %v8172_v7  ;;  %4356 = vmatmul.mubr.bf16.vlgmr.msra.gmra.mxu1 %v8172_v7 }
0x1127   :  { %v4230_v27 = vpop.f32.mrf.mxu0  ;;  %v4271_v28 = vpop.f32.mrf.mxu1 }
0x1128   :  { %v4278_v35 = vmax.f32 %v4230_v27, %v4271_v28 }
0x1129   :  { %v4232_v29 = vpop.f32.mrf.mxu0  ;;  %v4273_v30 = vpop.f32.mrf.mxu1 }
0x112b   :  { %v4233_v31 = vpop.f32.mrf.mxu0  ;;  %v4274_v32 = vpop.f32.mrf.mxu1 }
0x112c   :  { %v4279_v40 = vmax.f32 %v4233_v31, %v4274_v32 }
0x112d   :  { %v4235_v33 = vpop.f32.mrf.mxu0  ;;  %v4276_v34 = vpop.f32.mrf.mxu1 }
0x1157   :  { %v4314_v36 = vpop.f32.mrf.mxu0  ;;  %v4357_v37 = vpop.f32.mrf.mxu1 }
0x1158   :  { %v4321_v38 = vmax.f32 %v4278_v35, %v4314_v36 }
0x1159   :  { %v4316_v8 = vpop.f32.mrf.mxu0  ;;  %v4359_v39 = vpop.f32.mrf.mxu1 }
0x115a   :  { %v4364_v41 = vmax.f32 %v4321_v38, %v4357_v37 }
0x115b   :  { %v4317_v7 = vpop.f32.mrf.mxu0  ;;  %v4360_v42 = vpop.f32.mrf.mxu1 }
0x115c   :  { %4367 = vst.msk [vmem:[#allocation3] sm:$0xff] %vm4366_vm11, %v4364_v41  ;;  %v4322_v55 = vmax.f32 %v4279_v40, %v4317_v7 }
0x115d   :  { %v4319_v59 = vpop.f32.mrf.mxu0  ;;  %v4362_v20 = vpop.f32.mrf.mxu1 }
0x115e   :  { %v4365_v62 = vmax.f32 %v4322_v55, %v4360_v42 }
0x1160   :  { %4368 = vst.msk [vmem:[#allocation3 + $0x8] sm:$0xff] %vm4366_vm11, %v4365_v62 }
0x1161   :  { %5230 = shalt.err (!%p5227_p4)
}
0x1162   :  { %s5244_s14 = smov 128   ;;  %s5245_s15 = smov 8  }
0x1163   :  { %4380 = dma.vmem_to_hbm [thread:$0]  %s4375_s0, 256, %s8347_s8, [#allocation4], %s5244_s14, %s5244_s14, %s5245_s15  }
0x1164   :  { %5239 = dma.done.wait [#allocation4], 256  }
0x1165   :  { %5240 = vsyncadd [#allocation4], 4294967040 }
0x1166   :  { %4384 = vsyncpa [#allocation4], 1 }

</bundles_post_ra>
